<compile_context>
chip_gen: v7x
topology: tpu7x:2x2x1
jax: 0.10.0
libtpu: 0.0.40
codegen_flags: <defaults>
</compile_context>

<pallas_src>
import math
import numpy as np

import jax
import jax.numpy as jnp
from jax.experimental import pallas as pl
from jax.experimental.pallas import tpu as pltpu

# ------------------------- model hyper-parameters ---------------------------
B = 2          # batch. The original forward does `out, f_st = attention_lstm_pool(y)`
               # which tuple-unpacks a (B, 160) tensor along dim 0 -> B must be 2.
D = 16         # d_size (input channels); must be even for the symmetric conv
T = 32         # input time length
TS = 16        # t_size (spectral pooling target length)
L1 = TS        # length after conv1 (same padding)
L2 = TS // 2   # length after MaxPool1d(2)  -> LSTM sequence length
HID = 32       # LSTM hidden size
FEAT = 128     # conv3 output channels
NCLS = 9
# TODO(synk): the original module declares nn.LSTM(input_size=64) and
# nn.Linear(64+64, 9), which is inconsistent with the data flow it produces
# (128 conv features -> 32+128=160 pooled vector); LSTM/fc are sized to the
# actual data flow so the forward is runnable.
LSTM_IN = FEAT
FC_IN = HID + FEAT
EPS = 1e-5

# ------------------------- packed-slab row offsets --------------------------
# 32-lane slab
R32_CSC, R32_CAS2, R32_CASN2, R32_W1, R32_SEL, R32_TAPS, R32_S1, R32_F1, R32_ATTW = \
    0, 16, 48, 80, 160, 192, 195, 196, 197
R32_TOTAL = 200
# 64-lane slab
R64_CAST, R64_CASNT, R64_W2, R64_S2, R64_F2 = 0, 64, 128, 224, 225
R64_TOTAL = 232
# 128-lane slab
R128_W3, R128_WIH0, R128_WHH0, R128_WC1, R128_WC2, R128_FCW = 0, 192, 320, 352, 416, 480
R128_BL0, R128_BL1, R128_BL2, R128_S3, R128_F3, R128_FCB = 640, 641, 642, 643, 644, 645
R128_TOTAL = 648


# ------------------------------- the kernel ---------------------------------
def _convlstm_kernel(xpad_ref, w32_ref, w64_ref, w128_ref,   # inputs
                     head_ref, yfeat_ref,                    # outputs
                     seq_scr):                               # VMEM scratch (B*L2, HID)
    f32 = jnp.float32
    dot = lambda a, b: jnp.dot(a, b, preferred_element_type=f32)

    # -------- unpack the packed weight slabs (static 8-aligned slices) ------
    csC   = w32_ref[R32_CSC:R32_CSC + D, :]            # (D, 2D) [cosC | sinC]
    cas2  = w32_ref[R32_CAS2:R32_CAS2 + B * TS, :]     # (B*TS, B*TS)
    casn2 = w32_ref[R32_CASN2:R32_CASN2 + B * TS, :]
    w1    = w32_ref[R32_W1:R32_W1 + 5 * D, :]          # (5D, 32)
    selEO = w32_ref[R32_SEL:R32_SEL + 2 * B * L2, :]   # (2*B*L2, B*L1) stacked even/odd
    taps  = w32_ref[R32_TAPS:R32_TAPS + 3, :][:, 0:D]  # (3, D) softmax'd, flip-half folded
    s1    = w32_ref[R32_S1:R32_S1 + 1, :]
    f1    = w32_ref[R32_F1:R32_F1 + 1, :]
    attw  = w32_ref[R32_ATTW:R32_ATTW + 1, :]

    casT  = w64_ref[R64_CAST:R64_CAST + B * T, :]      # (B*T, B*T) block-diag
    casnT = w64_ref[R64_CASNT:R64_CASNT + B * T, :]
    w2    = w64_ref[R64_W2:R64_W2 + 3 * 32, :]         # (96, 64)
    s2    = w64_ref[R64_S2:R64_S2 + 1, :]
    f2    = w64_ref[R64_F2:R64_F2 + 1, :]

    w3    = w128_ref[R128_W3:R128_W3 + 3 * 64, :]      # (192, 128)
    wih0  = w128_ref[R128_WIH0:R128_WIH0 + LSTM_IN, :] # (128, 128)
    whh0  = w128_ref[R128_WHH0:R128_WHH0 + HID, :]     # (32, 128)
    wc1   = w128_ref[R128_WC1:R128_WC1 + 2 * HID, :]   # (64, 128) = [wih1; whh1]
    wc2   = w128_ref[R128_WC2:R128_WC2 + 2 * HID, :]   # (64, 128) = [wih2; whh2]
    fcw   = w128_ref[R128_FCW:R128_FCW + FC_IN, :]     # (160, 128) lane-padded fc weight
    bl0   = w128_ref[R128_BL0:R128_BL0 + 1, :]
    bl1   = w128_ref[R128_BL1:R128_BL1 + 1, :]
    bl2   = w128_ref[R128_BL2:R128_BL2 + 1, :]
    s3    = w128_ref[R128_S3:R128_S3 + 1, :]
    f3    = w128_ref[R128_F3:R128_F3 + 1, :]
    fcb   = w128_ref[R128_FCB:R128_FCB + 1, :]

    # ---------------- SymmetricLightweightConv (depthwise, k=3, p=1) --------
    # TODO(synk): F.dropout(weight, 0.1, training=True) is stochastic in the
    # original module; inference semantics (no dropout) are used here.
    # TODO(synk): flip_half() is not defined in the source; assumed to reverse
    # the time axis of the second half of the channels.  flip -> depthwise
    # conv -> flip is folded into time-reversed taps (done in pack_inputs).
    xp0 = xpad_ref[0]                                   # (T+2, D) pre-padded in wrapper
    xp1 = xpad_ref[1]

    def lw(xp):                                         # VPU only, no MXU
        return (taps[0:1, :] * xp[0:T, :] +
                taps[1:2, :] * xp[1:T + 1, :] +
                taps[2:3, :] * xp[2:T + 2, :])

    y0 = jnp.concatenate([lw(xp0), lw(xp1)], axis=0)    # (B*T, D)

    # ---------------- spectral pooling: DHT -> crop(time) -> DHT ------------
    # time-major DHT:  dht = (casT_blk @ y @ cosC + casnT_blk @ y @ sinC)/sqrt(D*T)
    yc = dot(y0, csC)                                    # (B*T, 2D)
    dh = (dot(casT, yc[:, :D]) +
          dot(casnT, yc[:, D:])) * (1.0 / math.sqrt(D * T))          # (B*T, D)

    cw = TS // 2                                         # even t_size crop
    hc = jnp.concatenate([dh[0:cw], dh[T - cw:T],        # batch 0: low+high freqs
                          dh[T:T + cw], dh[2 * T - cw:2 * T]],        # batch 1
                         axis=0)                         # (B*TS, D)
    hc2 = dot(hc, csC)                                   # (B*TS, 2D)
    y1 = (dot(cas2, hc2[:, :D]) +
          dot(casn2, hc2[:, D:])) * (1.0 / math.sqrt(D * TS))        # (B*TS, D)

    # ---------------- Conv1DEncoder (time-major, im2col, 1 matmul/stage) ----
    def conv_bn_relu(blocks, w_mat, s_row, f_row, k, pad, Lb):
        rows = []
        for xb in blocks:                                # per-batch (Lb, Cin) blocks
            zp = jnp.zeros((pad, xb.shape[1]), f32)
            xp = jnp.concatenate([zp, xb, zp], axis=0)   # (Lb + 2*pad, Cin)
            rows.append(jnp.concatenate([xp[j:j + Lb, :] for j in range(k)], axis=1))
        a = dot(jnp.concatenate(rows, axis=0), w_mat)    # (B*Lb, Cout)
        # conv bias pre-folded into the eval-mode BatchNorm shift f_row
        return jnp.maximum(a * s_row + f_row, 0.0)

    c1 = conv_bn_relu([y1[:TS], y1[TS:]], w1, s1, f1, 5, 2, L1)       # (B*L1, 32)
    # MaxPool1d(2): one matmul with stacked even/odd selectors, then max of halves
    pool = dot(selEO, c1)                                             # (2*B*L2, 32)
    c1 = jnp.maximum(pool[:B * L2], pool[B * L2:])                    # (B*L2, 32)
    c2 = conv_bn_relu([c1[:L2], c1[L2:]], w2, s2, f2, 3, 1, L2)       # (B*L2, 64)
    c3 = conv_bn_relu([c2[:L2], c2[L2:]], w3, s3, f3, 3, 1, L2)       # (B*L2, 128)

    # conv features, already time-major and lane-dense (B*L2, 128)
    yfeat_ref[...] = c3

    # ---------------- 3-layer LSTM, wavefront over (layer, time) ------------
    # seq rows are batch-major: [b0 t0..t7, b1 t0..t7]; gates carried as (B, 4H).
    xw0 = dot(c3, wih0) + bl0                            # layer-0 input proj, all t

    def lstm_step(g, c):
        # one sigmoid + one tanh over the full (2, 128) gate row (2 EUP pushes),
        # per-gate lanes sliced afterwards.  PyTorch gate order: i, f, g, o.
        sg = jax.nn.sigmoid(g)
        tg = jnp.tanh(g)
        c_new = sg[:, HID:2 * HID] * c + sg[:, 0:HID] * tg[:, 2 * HID:3 * HID]
        h_new = sg[:, 3 * HID:4 * HID] * jnp.tanh(c_new)
        return h_new, c_new

    hs = [jnp.zeros((B, HID), f32) for _ in range(3)]
    cs = [jnp.zeros((B, HID), f32) for _ in range(3)]

    for wv in range(L2 + 2):
        # Process deepest layer first inside the wave so each layer consumes the
        # PREVIOUS wave's output of the layer below (the three bodies below are
        # mutually independent and can be co-scheduled).
        t2 = wv - 2
        if 0 <= t2 < L2:                                 # layer 2, timestep t2
            g = dot(jnp.concatenate([hs[1], hs[2]], axis=1), wc2) + bl2
            hs[2], cs[2] = lstm_step(g, cs[2])
            seq_scr[t2:t2 + 1, :] = hs[2][0:1]           # scratch bounds live ranges
            seq_scr[L2 + t2:L2 + t2 + 1, :] = hs[2][1:2]
        t1 = wv - 1
        if 0 <= t1 < L2:                                 # layer 1, timestep t1
            g = dot(jnp.concatenate([hs[0], hs[1]], axis=1), wc1) + bl1
            hs[1], cs[1] = lstm_step(g, cs[1])
        t0 = wv
        if 0 <= t0 < L2:                                 # layer 0, timestep t0
            xr = jnp.concatenate([xw0[t0:t0 + 1], xw0[L2 + t0:L2 + t0 + 1]], axis=0)
            g = xr + dot(hs[0], whh0)
            hs[0], cs[0] = lstm_step(g, cs[0])

    seq = seq_scr[...]                                   # (B*L2, HID) final-layer h's

    # ---------------- Attention1D + max-pool of conv features ----------------
    m = jnp.tanh(seq)
    # Linear(32,1) as a VPU multiply + lane reduce.  The Linear bias is omitted:
    # it shifts every logit in the softmax equally, so alpha (and thus every
    # returned value) is exactly unchanged.
    logits = jnp.sum(m * attw, axis=1, keepdims=True)    # (B*L2, 1)

    pooled = []
    for b in range(B):
        lb = logits[b * L2:(b + 1) * L2]
        lb = lb - jnp.max(lb, axis=0, keepdims=True)
        alpha = jnp.exp(lb)
        alpha = alpha / jnp.sum(alpha, axis=0, keepdims=True)
        hb = seq[b * L2:(b + 1) * L2]                                 # (L2, HID)
        r = jnp.sum(hb * alpha, axis=0, keepdims=True)                # (1, HID)
        x2 = jnp.max(c3[b * L2:(b + 1) * L2], axis=0, keepdims=True)  # (1, FEAT)
        pooled.append(jnp.concatenate([r, x2], axis=1))               # (1, FC_IN)

    # Original forward: `out, f_st = attention_lstm_pool(y)` unpacks the
    # (B=2, 160) pooled tensor along the batch axis; fc is applied to pooled[0]
    # only and f_st = pooled[1].  fc weights are lane-padded to 128, and both
    # outputs are merged into a single lane-padded (1, 128+160) row.
    fc_out = dot(pooled[0], fcw) + fcb                   # (1, 128), lanes >= NCLS are 0
    head_ref[...] = jnp.concatenate([fc_out, pooled[1]], axis=1)      # (1, 288)


# ------------------------------ parameter setup ------------------------------
def init_params(key):
    keys = jax.random.split(key, 48)
    it = iter(keys)

    def nrm(shape, scale=0.1):
        return scale * jax.random.normal(next(it), shape, dtype=jnp.float32)

    p = {}
    p["lw"] = nrm((D // 2, 3), 0.5)                # SymmetricLightweightConv weight

    def conv_flat(k, cout, cin):
        # conv weight generated as (k, Cout, Cin), flattened to (k*Cin, Cout)
        # matching the im2col column order (tap-major, channel-minor).
        w = nrm((k, cout, cin))
        b = nrm((1, cout))
        wT = jnp.concatenate([w[j].T for j in range(k)], axis=0)
        return wT, b

    def bn(c):                                     # eval-mode BatchNorm1d folded
        gamma = 1.0 + 0.1 * jax.random.normal(next(it), (1, c), jnp.float32)
        beta = nrm((1, c))
        rmean = nrm((1, c))
        rvar = 1.0 + 0.1 * jax.random.uniform(next(it), (1, c), jnp.float32)
        s = gamma / jnp.sqrt(rvar + EPS)
        return s, beta - rmean * s

    w1, b1 = conv_flat(5, 32, D);    s1, f1 = bn(32)
    w2, b2 = conv_flat(3, 64, 32);   s2, f2 = bn(64)
    w3, b3 = conv_flat(3, FEAT, 64); s3, f3 = bn(FEAT)
    # fold the conv bias into the BN shift: s*(Wx + b) + f == s*Wx + (s*b + f)
    p["w1"], p["s1"], p["f1"] = w1, s1, f1 + s1 * b1
    p["w2"], p["s2"], p["f2"] = w2, s2, f2 + s2 * b2
    p["w3"], p["s3"], p["f3"] = w3, s3, f3 + s3 * b3

    def lstm_layer(in_dim):   # PyTorch gate order (i, f, g, o); weights transposed
        wihT = nrm((in_dim, 4 * HID), 0.2)
        whhT = nrm((HID, 4 * HID), 0.2)
        bias = nrm((1, 4 * HID), 0.1) + nrm((1, 4 * HID), 0.1)   # b_ih + b_hh
        return wihT, whhT, bias

    p["l0"] = lstm_layer(LSTM_IN)
    p["l1"] = lstm_layer(HID)
    p["l2"] = lstm_layer(HID)

    # Attention Linear(32,1) bias is omitted: softmax shift-invariance makes it
    # exactly irrelevant to every returned value.
    p["attw"] = nrm((1, HID))
    p["fcw"] = nrm((FC_IN, NCLS));  p["fcb"] = nrm((1, NCLS))
    return p


def build_constants():
    def cas_mats(n):
        idx = np.arange(n)
        ang = 2.0 * np.pi * np.outer(idx, idx) / n
        return ((np.cos(ang) + np.sin(ang)).astype(np.float32),
                (np.cos(ang) - np.sin(ang)).astype(np.float32))

    idx = np.arange(D)
    angC = 2.0 * np.pi * np.outer(idx, idx) / D
    cosC = np.cos(angC).astype(np.float32)
    sinC = np.sin(angC).astype(np.float32)
    csC = np.concatenate([cosC, sinC], axis=1)                    # (D, 2D)

    casT, casnT = cas_mats(T)
    cas2, casn2 = cas_mats(TS)

    def blkdiag2(m):                                              # batch block-diag
        n = m.shape[0]
        z = np.zeros((n, n), np.float32)
        return np.block([[m, z], [z, m]]).astype(np.float32)

    selE = np.zeros((B * L2, B * L1), np.float32)                 # MaxPool1d(2) selectors
    selO = np.zeros((B * L2, B * L1), np.float32)
    for b in range(B):
        for i in range(L2):
            selE[b * L2 + i, b * L1 + 2 * i] = 1.0
            selO[b * L2 + i, b * L1 + 2 * i + 1] = 1.0
    selEO = np.concatenate([selE, selO], axis=0)                  # (2*B*L2, B*L1)

    c = dict(csC=csC,
             casT_blk=blkdiag2(casT), casnT_blk=blkdiag2(casnT),
             cas2_blk=blkdiag2(cas2), casn2_blk=blkdiag2(casn2),
             selEO=selEO)
    return {k: jnp.asarray(v) for k, v in c.items()}


def pack_inputs(params, consts):
    """One-time packing of all weights/constants into 3 lane-width slabs."""
    f32 = jnp.float32

    def pad_cols(a, cols):
        return jnp.pad(a, ((0, 0), (0, cols - a.shape[1])))

    # lightweight conv taps: softmax over kernel axis, flip_half folded as
    # time-reversed taps on the second channel half (exact).
    w = jax.nn.softmax(params["lw"], axis=-1)                     # (D//2, 3)
    taps = jnp.stack([jnp.concatenate([w[:, j], w[:, 2 - j]]) for j in range(3)],
                     axis=0)                                      # (3, D)

    w32 = jnp.concatenate([
        consts["csC"],                       # 0   : 16
        consts["cas2_blk"],                  # 16  : 48
        consts["casn2_blk"],                 # 48  : 80
        params["w1"],                        # 80  : 160
        consts["selEO"],                     # 160 : 192
        pad_cols(taps, 2 * D),               # 192 : 195
        params["s1"],                        # 195
        params["f1"],                        # 196
        params["attw"],                      # 197
        jnp.zeros((R32_TOTAL - 198, 2 * D), f32),
    ], axis=0)

    w64 = jnp.concatenate([
        consts["casT_blk"],                  # 0   : 64
        consts["casnT_blk"],                 # 64  : 128
        params["w2"],                        # 128 : 224
        params["s2"],                        # 224
        params["f2"],                        # 225
        jnp.zeros((R64_TOTAL - 226, 64), f32),
    ], axis=0)

    wih0, whh0, bl0 = params["l0"]
    wih1, whh1, bl1 = params["l1"]
    wih2, whh2, bl2 = params["l2"]
    w128 = jnp.concatenate([
        params["w3"],                            # 0   : 192
        wih0,                                    # 192 : 320
        whh0,                                    # 320 : 352
        jnp.concatenate([wih1, whh1], axis=0),   # 352 : 416
        jnp.concatenate([wih2, whh2], axis=0),   # 416 : 480
        pad_cols(params["fcw"], 128),            # 480 : 640
        bl0, bl1, bl2,                           # 640, 641, 642
        params["s3"], params["f3"],              # 643, 644
        pad_cols(params["fcb"], 128),            # 645
        jnp.zeros((R128_TOTAL - 646, 128), f32),
    ], axis=0)

    return {"w32": w32, "w64": w64, "w128": w128}


# ------------------------------- the wrapper ---------------------------------
@jax.jit
def conv1d_lstm_all(x_bdt, packed):
    """x_bdt: (B, D, T) float32 (PyTorch input already .squeeze(1)'d)."""
    # layout glue only: time-major input, zero-padded for the k=3 depthwise conv
    x_tm = jnp.transpose(x_bdt, (0, 2, 1))                        # (B, T, D)
    x_pad = jnp.pad(x_tm, ((0, 0), (1, 1), (0, 0)))               # (B, T+2, D)

    vmem = pl.BlockSpec(memory_space=pltpu.MemorySpace.VMEM)
    out_shapes = (
        jax.ShapeDtypeStruct((1, 128 + FC_IN), jnp.float32),      # [fc out | f_st]
        jax.ShapeDtypeStruct((B * L2, FEAT), jnp.float32),        # lane-dense conv feats
    )
    head, yfeat = pl.pallas_call(
        _convlstm_kernel,
        out_shape=out_shapes,
        in_specs=[vmem] * 4,
        out_specs=(vmem, vmem),
        scratch_shapes=[pltpu.VMEM((B * L2, HID), jnp.float32)],
    )(x_pad, packed["w32"], packed["w64"], packed["w128"])

    # match PyTorch return shapes exactly: out (9,), f_st (160,), y (B, T', 128)
    out = head[0, :NCLS]
    f_st = head[0, 128:128 + FC_IN]
    return out, f_st, yfeat.reshape(B, L2, FEAT)


# ---------------------------------- main -------------------------------------
if __name__ == "__main__":
    key = jax.random.PRNGKey(0)
    kx, kp = jax.random.split(key)

    # PyTorch input is (B, 1, d_size, T); the forward does x.squeeze(1) first.
    x = jax.random.normal(kx, (B, 1, D, T), dtype=jnp.float32)
    params = init_params(kp)
    consts = build_constants()
    packed = pack_inputs(params, consts)       # one-time weight packing (4 operands total)

    out, f_st, y = conv1d_lstm_all(x[:, 0], packed)
    jax.block_until_ready((out, f_st, y))

    assert out.shape == (NCLS,)
    assert f_st.shape == (FC_IN,)
    assert y.shape == (B, L2, FEAT)
    print("KERNEL_OK")
</pallas_src>

<mosaic_0001>
module attributes {stable_mosaic.version = 11 : i64} {
  func.func @_convlstm_kernel(%arg0: memref<2x34x16xf32, #tpu.memory_space<vmem>>, %arg1: memref<200x32xf32, #tpu.memory_space<vmem>>, %arg2: memref<232x64xf32, #tpu.memory_space<vmem>>, %arg3: memref<648x128xf32, #tpu.memory_space<vmem>>, %arg4: memref<1x288xf32, #tpu.memory_space<vmem>>, %arg5: memref<16x128xf32, #tpu.memory_space<vmem>>, %arg6: memref<16x32xf32, #tpu.memory_space<vmem>>) attributes {dimension_semantics = [], scalar_prefetch = 0 : i64, scratch_operands = 1 : i64, tpu.core_type = #tpu.core_type<tc>} {
    %c0 = arith.constant 0 : index
    %c0_0 = arith.constant 0 : index
    %0 = vector.load %arg1[%c0, %c0_0] : memref<200x32xf32, #tpu.memory_space<vmem>>, vector<16x32xf32>
    %c16 = arith.constant 16 : index
    %c0_1 = arith.constant 0 : index
    %1 = vector.load %arg1[%c16, %c0_1] : memref<200x32xf32, #tpu.memory_space<vmem>>, vector<32x32xf32>
    %c48 = arith.constant 48 : index
    %c0_2 = arith.constant 0 : index
    %2 = vector.load %arg1[%c48, %c0_2] : memref<200x32xf32, #tpu.memory_space<vmem>>, vector<32x32xf32>
    %c80 = arith.constant 80 : index
    %c0_3 = arith.constant 0 : index
    %3 = vector.load %arg1[%c80, %c0_3] : memref<200x32xf32, #tpu.memory_space<vmem>>, vector<80x32xf32>
    %c160 = arith.constant 160 : index
    %c0_4 = arith.constant 0 : index
    %4 = vector.load %arg1[%c160, %c0_4] : memref<200x32xf32, #tpu.memory_space<vmem>>, vector<32x32xf32>
    %c192 = arith.constant 192 : index
    %c0_5 = arith.constant 0 : index
    %5 = vector.load %arg1[%c192, %c0_5] : memref<200x32xf32, #tpu.memory_space<vmem>>, vector<3x32xf32>
    %6 = vector.extract_strided_slice %5 {offsets = [0, 0], sizes = [3, 16], strides = [1, 1]} : vector<3x32xf32> to vector<3x16xf32>
    %c195 = arith.constant 195 : index
    %c0_6 = arith.constant 0 : index
    %7 = vector.load %arg1[%c195, %c0_6] : memref<200x32xf32, #tpu.memory_space<vmem>>, vector<1x32xf32>
    %c196 = arith.constant 196 : index
    %c0_7 = arith.constant 0 : index
    %8 = vector.load %arg1[%c196, %c0_7] : memref<200x32xf32, #tpu.memory_space<vmem>>, vector<1x32xf32>
    %c197 = arith.constant 197 : index
    %c0_8 = arith.constant 0 : index
    %9 = vector.load %arg1[%c197, %c0_8] : memref<200x32xf32, #tpu.memory_space<vmem>>, vector<1x32xf32>
    %c0_9 = arith.constant 0 : index
    %c0_10 = arith.constant 0 : index
    %10 = vector.load %arg2[%c0_9, %c0_10] : memref<232x64xf32, #tpu.memory_space<vmem>>, vector<64x64xf32>
    %c64 = arith.constant 64 : index
    %c0_11 = arith.constant 0 : index
    %11 = vector.load %arg2[%c64, %c0_11] : memref<232x64xf32, #tpu.memory_space<vmem>>, vector<64x64xf32>
    %c128 = arith.constant 128 : index
    %c0_12 = arith.constant 0 : index
    %12 = vector.load %arg2[%c128, %c0_12] : memref<232x64xf32, #tpu.memory_space<vmem>>, vector<96x64xf32>
    %c224 = arith.constant 224 : index
    %c0_13 = arith.constant 0 : index
    %13 = vector.load %arg2[%c224, %c0_13] : memref<232x64xf32, #tpu.memory_space<vmem>>, vector<1x64xf32>
    %c225 = arith.constant 225 : index
    %c0_14 = arith.constant 0 : index
    %14 = vector.load %arg2[%c225, %c0_14] : memref<232x64xf32, #tpu.memory_space<vmem>>, vector<1x64xf32>
    %c0_15 = arith.constant 0 : index
    %c0_16 = arith.constant 0 : index
    %15 = vector.load %arg3[%c0_15, %c0_16] : memref<648x128xf32, #tpu.memory_space<vmem>>, vector<192x128xf32>
    %c192_17 = arith.constant 192 : index
    %c0_18 = arith.constant 0 : index
    %16 = vector.load %arg3[%c192_17, %c0_18] : memref<648x128xf32, #tpu.memory_space<vmem>>, vector<128x128xf32>
    %c320 = arith.constant 320 : index
    %c0_19 = arith.constant 0 : index
    %17 = vector.load %arg3[%c320, %c0_19] : memref<648x128xf32, #tpu.memory_space<vmem>>, vector<32x128xf32>
    %c352 = arith.constant 352 : index
    %c0_20 = arith.constant 0 : index
    %18 = vector.load %arg3[%c352, %c0_20] : memref<648x128xf32, #tpu.memory_space<vmem>>, vector<64x128xf32>
    %c416 = arith.constant 416 : index
    %c0_21 = arith.constant 0 : index
    %19 = vector.load %arg3[%c416, %c0_21] : memref<648x128xf32, #tpu.memory_space<vmem>>, vector<64x128xf32>
    %c480 = arith.constant 480 : index
    %c0_22 = arith.constant 0 : index
    %20 = vector.load %arg3[%c480, %c0_22] : memref<648x128xf32, #tpu.memory_space<vmem>>, vector<160x128xf32>
    %c640 = arith.constant 640 : index
    %c0_23 = arith.constant 0 : index
    %21 = vector.load %arg3[%c640, %c0_23] : memref<648x128xf32, #tpu.memory_space<vmem>>, vector<1x128xf32>
    %c641 = arith.constant 641 : index
    %c0_24 = arith.constant 0 : index
    %22 = vector.load %arg3[%c641, %c0_24] : memref<648x128xf32, #tpu.memory_space<vmem>>, vector<1x128xf32>
    %c642 = arith.constant 642 : index
    %c0_25 = arith.constant 0 : index
    %23 = vector.load %arg3[%c642, %c0_25] : memref<648x128xf32, #tpu.memory_space<vmem>>, vector<1x128xf32>
    %c643 = arith.constant 643 : index
    %c0_26 = arith.constant 0 : index
    %24 = vector.load %arg3[%c643, %c0_26] : memref<648x128xf32, #tpu.memory_space<vmem>>, vector<1x128xf32>
    %c644 = arith.constant 644 : index
    %c0_27 = arith.constant 0 : index
    %25 = vector.load %arg3[%c644, %c0_27] : memref<648x128xf32, #tpu.memory_space<vmem>>, vector<1x128xf32>
    %c645 = arith.constant 645 : index
    %c0_28 = arith.constant 0 : index
    %26 = vector.load %arg3[%c645, %c0_28] : memref<648x128xf32, #tpu.memory_space<vmem>>, vector<1x128xf32>
    %c0_29 = arith.constant 0 : index
    %c0_30 = arith.constant 0 : index
    %c0_31 = arith.constant 0 : index
    %27 = vector.load %arg0[%c0_29, %c0_30, %c0_31] : memref<2x34x16xf32, #tpu.memory_space<vmem>>, vector<1x34x16xf32>
    %28 = vector.shape_cast %27 : vector<1x34x16xf32> to vector<34x16xf32>
    %c1 = arith.constant 1 : index
    %c0_32 = arith.constant 0 : index
    %c0_33 = arith.constant 0 : index
    %29 = vector.load %arg0[%c1, %c0_32, %c0_33] : memref<2x34x16xf32, #tpu.memory_space<vmem>>, vector<1x34x16xf32>
    %30 = vector.shape_cast %29 : vector<1x34x16xf32> to vector<34x16xf32>
    %31 = vector.extract_strided_slice %6 {offsets = [0, 0], sizes = [1, 16], strides = [1, 1]} : vector<3x16xf32> to vector<1x16xf32>
    %32 = vector.extract_strided_slice %28 {offsets = [0, 0], sizes = [32, 16], strides = [1, 1]} : vector<34x16xf32> to vector<32x16xf32>
    %33 = vector.broadcast %31 : vector<1x16xf32> to vector<32x16xf32>
    %34 = arith.mulf %33, %32 : vector<32x16xf32>
    %35 = vector.extract_strided_slice %6 {offsets = [1, 0], sizes = [1, 16], strides = [1, 1]} : vector<3x16xf32> to vector<1x16xf32>
    %36 = vector.extract_strided_slice %28 {offsets = [1, 0], sizes = [32, 16], strides = [1, 1]} : vector<34x16xf32> to vector<32x16xf32>
    %37 = vector.broadcast %35 : vector<1x16xf32> to vector<32x16xf32>
    %38 = arith.mulf %37, %36 : vector<32x16xf32>
    %39 = arith.addf %34, %38 : vector<32x16xf32>
    %40 = vector.extract_strided_slice %6 {offsets = [2, 0], sizes = [1, 16], strides = [1, 1]} : vector<3x16xf32> to vector<1x16xf32>
    %41 = vector.extract_strided_slice %28 {offsets = [2, 0], sizes = [32, 16], strides = [1, 1]} : vector<34x16xf32> to vector<32x16xf32>
    %42 = vector.broadcast %40 : vector<1x16xf32> to vector<32x16xf32>
    %43 = arith.mulf %42, %41 : vector<32x16xf32>
    %44 = arith.addf %39, %43 : vector<32x16xf32>
    %45 = vector.extract_strided_slice %6 {offsets = [0, 0], sizes = [1, 16], strides = [1, 1]} : vector<3x16xf32> to vector<1x16xf32>
    %46 = vector.extract_strided_slice %30 {offsets = [0, 0], sizes = [32, 16], strides = [1, 1]} : vector<34x16xf32> to vector<32x16xf32>
    %47 = vector.broadcast %45 : vector<1x16xf32> to vector<32x16xf32>
    %48 = arith.mulf %47, %46 : vector<32x16xf32>
    %49 = vector.extract_strided_slice %6 {offsets = [1, 0], sizes = [1, 16], strides = [1, 1]} : vector<3x16xf32> to vector<1x16xf32>
    %50 = vector.extract_strided_slice %30 {offsets = [1, 0], sizes = [32, 16], strides = [1, 1]} : vector<34x16xf32> to vector<32x16xf32>
    %51 = vector.broadcast %49 : vector<1x16xf32> to vector<32x16xf32>
    %52 = arith.mulf %51, %50 : vector<32x16xf32>
    %53 = arith.addf %48, %52 : vector<32x16xf32>
    %54 = vector.extract_strided_slice %6 {offsets = [2, 0], sizes = [1, 16], strides = [1, 1]} : vector<3x16xf32> to vector<1x16xf32>
    %55 = vector.extract_strided_slice %30 {offsets = [2, 0], sizes = [32, 16], strides = [1, 1]} : vector<34x16xf32> to vector<32x16xf32>
    %56 = vector.broadcast %54 : vector<1x16xf32> to vector<32x16xf32>
    %57 = arith.mulf %56, %55 : vector<32x16xf32>
    %58 = arith.addf %53, %57 : vector<32x16xf32>
    %59 = tpu.concatenate %44, %58 in 0 : vector<32x16xf32>, vector<32x16xf32> -> vector<64x16xf32>
    %cst = arith.constant dense<0.000000e+00> : vector<64x32xf32>
    %60 = tpu.matmul %59, %0, %cst {dimension_numbers = #tpu.dot_dimension_numbers<[1], [0], [0], [1], [0, 0, 1, 1], [], []>} : vector<64x16xf32>, vector<16x32xf32>, vector<64x32xf32> -> vector<64x32xf32>
    %61 = vector.extract_strided_slice %60 {offsets = [0, 0], sizes = [64, 16], strides = [1, 1]} : vector<64x32xf32> to vector<64x16xf32>
    %cst_34 = arith.constant dense<0.000000e+00> : vector<64x16xf32>
    %62 = tpu.matmul %10, %61, %cst_34 {dimension_numbers = #tpu.dot_dimension_numbers<[1], [0], [0], [1], [0, 0, 1, 1], [], []>} : vector<64x64xf32>, vector<64x16xf32>, vector<64x16xf32> -> vector<64x16xf32>
    %63 = vector.extract_strided_slice %60 {offsets = [0, 16], sizes = [64, 16], strides = [1, 1]} : vector<64x32xf32> to vector<64x16xf32>
    %cst_35 = arith.constant dense<0.000000e+00> : vector<64x16xf32>
    %64 = tpu.matmul %11, %63, %cst_35 {dimension_numbers = #tpu.dot_dimension_numbers<[1], [0], [0], [1], [0, 0, 1, 1], [], []>} : vector<64x64xf32>, vector<64x16xf32>, vector<64x16xf32> -> vector<64x16xf32>
    %65 = arith.addf %62, %64 : vector<64x16xf32>
    %cst_36 = arith.constant 0.0441941731 : f32
    %66 = vector.broadcast %cst_36 : f32 to vector<64x16xf32>
    %67 = arith.mulf %65, %66 : vector<64x16xf32>
    %68 = vector.extract_strided_slice %67 {offsets = [0, 0], sizes = [8, 16], strides = [1, 1]} : vector<64x16xf32> to vector<8x16xf32>
    %69 = vector.extract_strided_slice %67 {offsets = [24, 0], sizes = [8, 16], strides = [1, 1]} : vector<64x16xf32> to vector<8x16xf32>
    %70 = vector.extract_strided_slice %67 {offsets = [32, 0], sizes = [8, 16], strides = [1, 1]} : vector<64x16xf32> to vector<8x16xf32>
    %71 = vector.extract_strided_slice %67 {offsets = [56, 0], sizes = [8, 16], strides = [1, 1]} : vector<64x16xf32> to vector<8x16xf32>
    %72 = tpu.concatenate %68, %69, %70, %71 in 0 : vector<8x16xf32>, vector<8x16xf32>, vector<8x16xf32>, vector<8x16xf32> -> vector<32x16xf32>
    %cst_37 = arith.constant dense<0.000000e+00> : vector<32x32xf32>
    %73 = tpu.matmul %72, %0, %cst_37 {dimension_numbers = #tpu.dot_dimension_numbers<[1], [0], [0], [1], [0, 0, 1, 1], [], []>} : vector<32x16xf32>, vector<16x32xf32>, vector<32x32xf32> -> vector<32x32xf32>
    %74 = vector.extract_strided_slice %73 {offsets = [0, 0], sizes = [32, 16], strides = [1, 1]} : vector<32x32xf32> to vector<32x16xf32>
    %cst_38 = arith.constant dense<0.000000e+00> : vector<32x16xf32>
    %75 = tpu.matmul %1, %74, %cst_38 {dimension_numbers = #tpu.dot_dimension_numbers<[1], [0], [0], [1], [0, 0, 1, 1], [], []>} : vector<32x32xf32>, vector<32x16xf32>, vector<32x16xf32> -> vector<32x16xf32>
    %76 = vector.extract_strided_slice %73 {offsets = [0, 16], sizes = [32, 16], strides = [1, 1]} : vector<32x32xf32> to vector<32x16xf32>
    %cst_39 = arith.constant dense<0.000000e+00> : vector<32x16xf32>
    %77 = tpu.matmul %2, %76, %cst_39 {dimension_numbers = #tpu.dot_dimension_numbers<[1], [0], [0], [1], [0, 0, 1, 1], [], []>} : vector<32x32xf32>, vector<32x16xf32>, vector<32x16xf32> -> vector<32x16xf32>
    %78 = arith.addf %75, %77 : vector<32x16xf32>
    %cst_40 = arith.constant 6.250000e-02 : f32
    %79 = vector.broadcast %cst_40 : f32 to vector<32x16xf32>
    %80 = arith.mulf %78, %79 : vector<32x16xf32>
    %81 = vector.extract_strided_slice %80 {offsets = [0, 0], sizes = [16, 16], strides = [1, 1]} : vector<32x16xf32> to vector<16x16xf32>
    %82 = vector.extract_strided_slice %80 {offsets = [16, 0], sizes = [16, 16], strides = [1, 1]} : vector<32x16xf32> to vector<16x16xf32>
    %cst_41 = arith.constant 0.000000e+00 : f32
    %83 = vector.broadcast %cst_41 : f32 to vector<2x16xf32>
    %84 = tpu.concatenate %83, %81, %83 in 0 : vector<2x16xf32>, vector<16x16xf32>, vector<2x16xf32> -> vector<20x16xf32>
    %85 = vector.extract_strided_slice %84 {offsets = [0, 0], sizes = [16, 16], strides = [1, 1]} : vector<20x16xf32> to vector<16x16xf32>
    %86 = vector.extract_strided_slice %84 {offsets = [1, 0], sizes = [16, 16], strides = [1, 1]} : vector<20x16xf32> to vector<16x16xf32>
    %87 = vector.extract_strided_slice %84 {offsets = [2, 0], sizes = [16, 16], strides = [1, 1]} : vector<20x16xf32> to vector<16x16xf32>
    %88 = vector.extract_strided_slice %84 {offsets = [3, 0], sizes = [16, 16], strides = [1, 1]} : vector<20x16xf32> to vector<16x16xf32>
    %89 = vector.extract_strided_slice %84 {offsets = [4, 0], sizes = [16, 16], strides = [1, 1]} : vector<20x16xf32> to vector<16x16xf32>
    %90 = tpu.concatenate %85, %86, %87, %88, %89 in 1 : vector<16x16xf32>, vector<16x16xf32>, vector<16x16xf32>, vector<16x16xf32>, vector<16x16xf32> -> vector<16x80xf32>
    %cst_42 = arith.constant 0.000000e+00 : f32
    %91 = vector.broadcast %cst_42 : f32 to vector<2x16xf32>
    %92 = tpu.concatenate %91, %82, %91 in 0 : vector<2x16xf32>, vector<16x16xf32>, vector<2x16xf32> -> vector<20x16xf32>
    %93 = vector.extract_strided_slice %92 {offsets = [0, 0], sizes = [16, 16], strides = [1, 1]} : vector<20x16xf32> to vector<16x16xf32>
    %94 = vector.extract_strided_slice %92 {offsets = [1, 0], sizes = [16, 16], strides = [1, 1]} : vector<20x16xf32> to vector<16x16xf32>
    %95 = vector.extract_strided_slice %92 {offsets = [2, 0], sizes = [16, 16], strides = [1, 1]} : vector<20x16xf32> to vector<16x16xf32>
    %96 = vector.extract_strided_slice %92 {offsets = [3, 0], sizes = [16, 16], strides = [1, 1]} : vector<20x16xf32> to vector<16x16xf32>
    %97 = vector.extract_strided_slice %92 {offsets = [4, 0], sizes = [16, 16], strides = [1, 1]} : vector<20x16xf32> to vector<16x16xf32>
    %98 = tpu.concatenate %93, %94, %95, %96, %97 in 1 : vector<16x16xf32>, vector<16x16xf32>, vector<16x16xf32>, vector<16x16xf32>, vector<16x16xf32> -> vector<16x80xf32>
    %99 = tpu.concatenate %90, %98 in 0 : vector<16x80xf32>, vector<16x80xf32> -> vector<32x80xf32>
    %cst_43 = arith.constant dense<0.000000e+00> : vector<32x32xf32>
    %100 = tpu.matmul %99, %3, %cst_43 {dimension_numbers = #tpu.dot_dimension_numbers<[1], [0], [0], [1], [0, 0, 1, 1], [], []>} : vector<32x80xf32>, vector<80x32xf32>, vector<32x32xf32> -> vector<32x32xf32>
    %101 = vector.broadcast %7 : vector<1x32xf32> to vector<32x32xf32>
    %102 = arith.mulf %100, %101 : vector<32x32xf32>
    %103 = vector.broadcast %8 : vector<1x32xf32> to vector<32x32xf32>
    %104 = arith.addf %102, %103 : vector<32x32xf32>
    %cst_44 = arith.constant 0.000000e+00 : f32
    %105 = vector.broadcast %cst_44 : f32 to vector<32x32xf32>
    %106 = arith.maximumf %104, %105 : vector<32x32xf32>
    %cst_45 = arith.constant dense<0.000000e+00> : vector<32x32xf32>
    %107 = tpu.matmul %4, %106, %cst_45 {dimension_numbers = #tpu.dot_dimension_numbers<[1], [0], [0], [1], [0, 0, 1, 1], [], []>} : vector<32x32xf32>, vector<32x32xf32>, vector<32x32xf32> -> vector<32x32xf32>
    %108 = vector.extract_strided_slice %107 {offsets = [0, 0], sizes = [16, 32], strides = [1, 1]} : vector<32x32xf32> to vector<16x32xf32>
    %109 = vector.extract_strided_slice %107 {offsets = [16, 0], sizes = [16, 32], strides = [1, 1]} : vector<32x32xf32> to vector<16x32xf32>
    %110 = arith.maximumf %108, %109 : vector<16x32xf32>
    %111 = vector.extract_strided_slice %110 {offsets = [0, 0], sizes = [8, 32], strides = [1, 1]} : vector<16x32xf32> to vector<8x32xf32>
    %112 = vector.extract_strided_slice %110 {offsets = [8, 0], sizes = [8, 32], strides = [1, 1]} : vector<16x32xf32> to vector<8x32xf32>
    %cst_46 = arith.constant 0.000000e+00 : f32
    %113 = vector.broadcast %cst_46 : f32 to vector<1x32xf32>
    %114 = tpu.concatenate %113, %111, %113 in 0 : vector<1x32xf32>, vector<8x32xf32>, vector<1x32xf32> -> vector<10x32xf32>
    %115 = vector.extract_strided_slice %114 {offsets = [0, 0], sizes = [8, 32], strides = [1, 1]} : vector<10x32xf32> to vector<8x32xf32>
    %116 = vector.extract_strided_slice %114 {offsets = [1, 0], sizes = [8, 32], strides = [1, 1]} : vector<10x32xf32> to vector<8x32xf32>
    %117 = vector.extract_strided_slice %114 {offsets = [2, 0], sizes = [8, 32], strides = [1, 1]} : vector<10x32xf32> to vector<8x32xf32>
    %118 = tpu.concatenate %115, %116, %117 in 1 : vector<8x32xf32>, vector<8x32xf32>, vector<8x32xf32> -> vector<8x96xf32>
    %cst_47 = arith.constant 0.000000e+00 : f32
    %119 = vector.broadcast %cst_47 : f32 to vector<1x32xf32>
    %120 = tpu.concatenate %119, %112, %119 in 0 : vector<1x32xf32>, vector<8x32xf32>, vector<1x32xf32> -> vector<10x32xf32>
    %121 = vector.extract_strided_slice %120 {offsets = [0, 0], sizes = [8, 32], strides = [1, 1]} : vector<10x32xf32> to vector<8x32xf32>
    %122 = vector.extract_strided_slice %120 {offsets = [1, 0], sizes = [8, 32], strides = [1, 1]} : vector<10x32xf32> to vector<8x32xf32>
    %123 = vector.extract_strided_slice %120 {offsets = [2, 0], sizes = [8, 32], strides = [1, 1]} : vector<10x32xf32> to vector<8x32xf32>
    %124 = tpu.concatenate %121, %122, %123 in 1 : vector<8x32xf32>, vector<8x32xf32>, vector<8x32xf32> -> vector<8x96xf32>
    %125 = tpu.concatenate %118, %124 in 0 : vector<8x96xf32>, vector<8x96xf32> -> vector<16x96xf32>
    %cst_48 = arith.constant dense<0.000000e+00> : vector<16x64xf32>
    %126 = tpu.matmul %125, %12, %cst_48 {dimension_numbers = #tpu.dot_dimension_numbers<[1], [0], [0], [1], [0, 0, 1, 1], [], []>} : vector<16x96xf32>, vector<96x64xf32>, vector<16x64xf32> -> vector<16x64xf32>
    %127 = vector.broadcast %13 : vector<1x64xf32> to vector<16x64xf32>
    %128 = arith.mulf %126, %127 : vector<16x64xf32>
    %129 = vector.broadcast %14 : vector<1x64xf32> to vector<16x64xf32>
    %130 = arith.addf %128, %129 : vector<16x64xf32>
    %cst_49 = arith.constant 0.000000e+00 : f32
    %131 = vector.broadcast %cst_49 : f32 to vector<16x64xf32>
    %132 = arith.maximumf %130, %131 : vector<16x64xf32>
    %133 = vector.extract_strided_slice %132 {offsets = [0, 0], sizes = [8, 64], strides = [1, 1]} : vector<16x64xf32> to vector<8x64xf32>
    %134 = vector.extract_strided_slice %132 {offsets = [8, 0], sizes = [8, 64], strides = [1, 1]} : vector<16x64xf32> to vector<8x64xf32>
    %cst_50 = arith.constant 0.000000e+00 : f32
    %135 = vector.broadcast %cst_50 : f32 to vector<1x64xf32>
    %136 = tpu.concatenate %135, %133, %135 in 0 : vector<1x64xf32>, vector<8x64xf32>, vector<1x64xf32> -> vector<10x64xf32>
    %137 = vector.extract_strided_slice %136 {offsets = [0, 0], sizes = [8, 64], strides = [1, 1]} : vector<10x64xf32> to vector<8x64xf32>
    %138 = vector.extract_strided_slice %136 {offsets = [1, 0], sizes = [8, 64], strides = [1, 1]} : vector<10x64xf32> to vector<8x64xf32>
    %139 = vector.extract_strided_slice %136 {offsets = [2, 0], sizes = [8, 64], strides = [1, 1]} : vector<10x64xf32> to vector<8x64xf32>
    %140 = tpu.concatenate %137, %138, %139 in 1 : vector<8x64xf32>, vector<8x64xf32>, vector<8x64xf32> -> vector<8x192xf32>
    %cst_51 = arith.constant 0.000000e+00 : f32
    %141 = vector.broadcast %cst_51 : f32 to vector<1x64xf32>
    %142 = tpu.concatenate %141, %134, %141 in 0 : vector<1x64xf32>, vector<8x64xf32>, vector<1x64xf32> -> vector<10x64xf32>
    %143 = vector.extract_strided_slice %142 {offsets = [0, 0], sizes = [8, 64], strides = [1, 1]} : vector<10x64xf32> to vector<8x64xf32>
    %144 = vector.extract_strided_slice %142 {offsets = [1, 0], sizes = [8, 64], strides = [1, 1]} : vector<10x64xf32> to vector<8x64xf32>
    %145 = vector.extract_strided_slice %142 {offsets = [2, 0], sizes = [8, 64], strides = [1, 1]} : vector<10x64xf32> to vector<8x64xf32>
    %146 = tpu.concatenate %143, %144, %145 in 1 : vector<8x64xf32>, vector<8x64xf32>, vector<8x64xf32> -> vector<8x192xf32>
    %147 = tpu.concatenate %140, %146 in 0 : vector<8x192xf32>, vector<8x192xf32> -> vector<16x192xf32>
    %cst_52 = arith.constant dense<0.000000e+00> : vector<16x128xf32>
    %148 = tpu.matmul %147, %15, %cst_52 {dimension_numbers = #tpu.dot_dimension_numbers<[1], [0], [0], [1], [0, 0, 1, 1], [], []>} : vector<16x192xf32>, vector<192x128xf32>, vector<16x128xf32> -> vector<16x128xf32>
    %149 = vector.broadcast %24 : vector<1x128xf32> to vector<16x128xf32>
    %150 = arith.mulf %148, %149 : vector<16x128xf32>
    %151 = vector.broadcast %25 : vector<1x128xf32> to vector<16x128xf32>
    %152 = arith.addf %150, %151 : vector<16x128xf32>
    %cst_53 = arith.constant 0.000000e+00 : f32
    %153 = vector.broadcast %cst_53 : f32 to vector<16x128xf32>
    %154 = arith.maximumf %152, %153 : vector<16x128xf32>
    %c0_54 = arith.constant 0 : index
    %c0_55 = arith.constant 0 : index
    %155 = vector.load %arg5[%c0_54, %c0_55] : memref<16x128xf32, #tpu.memory_space<vmem>>, vector<16x128xf32>
    tpu.vector_store %arg5[%c0_54, %c0_55], %154 {strides = array<i32>} : memref<16x128xf32, #tpu.memory_space<vmem>>, vector<16x128xf32>,
    %cst_56 = arith.constant dense<0.000000e+00> : vector<16x128xf32>
    %156 = tpu.matmul %154, %16, %cst_56 {dimension_numbers = #tpu.dot_dimension_numbers<[1], [0], [0], [1], [0, 0, 1, 1], [], []>} : vector<16x128xf32>, vector<128x128xf32>, vector<16x128xf32> -> vector<16x128xf32>
    %157 = vector.broadcast %21 : vector<1x128xf32> to vector<16x128xf32>
    %158 = arith.addf %156, %157 : vector<16x128xf32>
    %cst_57 = arith.constant 0.000000e+00 : f32
    %159 = vector.broadcast %cst_57 : f32 to vector<2x32xf32>
    %cst_58 = arith.constant 0.000000e+00 : f32
    %160 = vector.broadcast %cst_58 : f32 to vector<2x32xf32>
    %cst_59 = arith.constant 0.000000e+00 : f32
    %161 = vector.broadcast %cst_59 : f32 to vector<2x32xf32>
    %cst_60 = arith.constant 0.000000e+00 : f32
    %162 = vector.broadcast %cst_60 : f32 to vector<2x32xf32>
    %cst_61 = arith.constant 0.000000e+00 : f32
    %163 = vector.broadcast %cst_61 : f32 to vector<2x32xf32>
    %cst_62 = arith.constant 0.000000e+00 : f32
    %164 = vector.broadcast %cst_62 : f32 to vector<2x32xf32>
    %165 = vector.extract_strided_slice %158 {offsets = [0, 0], sizes = [1, 128], strides = [1, 1]} : vector<16x128xf32> to vector<1x128xf32>
    %166 = vector.extract_strided_slice %158 {offsets = [8, 0], sizes = [1, 128], strides = [1, 1]} : vector<16x128xf32> to vector<1x128xf32>
    %167 = tpu.concatenate %165, %166 in 0 : vector<1x128xf32>, vector<1x128xf32> -> vector<2x128xf32>
    %cst_63 = arith.constant dense<0.000000e+00> : vector<2x128xf32>
    %168 = tpu.matmul %159, %17, %cst_63 {dimension_numbers = #tpu.dot_dimension_numbers<[1], [0], [0], [1], [0, 0, 1, 1], [], []>} : vector<2x32xf32>, vector<32x128xf32>, vector<2x128xf32> -> vector<2x128xf32>
    %169 = arith.addf %167, %168 : vector<2x128xf32>
    %170 = arith.negf %169 : vector<2x128xf32>
    %171 = math.exp %170 : vector<2x128xf32>
    %cst_64 = arith.constant 1.000000e+00 : f32
    %172 = vector.broadcast %cst_64 : f32 to vector<2x128xf32>
    %173 = arith.addf %172, %171 : vector<2x128xf32>
    %174 = arith.divf %172, %173 : vector<2x128xf32>
    %175 = math.tanh %169 : vector<2x128xf32>
    %176 = vector.extract_strided_slice %174 {offsets = [0, 32], sizes = [2, 32], strides = [1, 1]} : vector<2x128xf32> to vector<2x32xf32>
    %177 = arith.mulf %176, %162 : vector<2x32xf32>
    %178 = vector.extract_strided_slice %174 {offsets = [0, 0], sizes = [2, 32], strides = [1, 1]} : vector<2x128xf32> to vector<2x32xf32>
    %179 = vector.extract_strided_slice %175 {offsets = [0, 64], sizes = [2, 32], strides = [1, 1]} : vector<2x128xf32> to vector<2x32xf32>
    %180 = arith.mulf %178, %179 : vector<2x32xf32>
    %181 = arith.addf %177, %180 : vector<2x32xf32>
    %182 = vector.extract_strided_slice %174 {offsets = [0, 96], sizes = [2, 32], strides = [1, 1]} : vector<2x128xf32> to vector<2x32xf32>
    %183 = math.tanh %181 : vector<2x32xf32>
    %184 = arith.mulf %182, %183 : vector<2x32xf32>
    %185 = tpu.concatenate %184, %160 in 1 : vector<2x32xf32>, vector<2x32xf32> -> vector<2x64xf32>
    %cst_65 = arith.constant dense<0.000000e+00> : vector<2x128xf32>
    %186 = tpu.matmul %185, %18, %cst_65 {dimension_numbers = #tpu.dot_dimension_numbers<[1], [0], [0], [1], [0, 0, 1, 1], [], []>} : vector<2x64xf32>, vector<64x128xf32>, vector<2x128xf32> -> vector<2x128xf32>
    %187 = vector.broadcast %22 : vector<1x128xf32> to vector<2x128xf32>
    %188 = arith.addf %186, %187 : vector<2x128xf32>
    %189 = arith.negf %188 : vector<2x128xf32>
    %190 = math.exp %189 : vector<2x128xf32>
    %cst_66 = arith.constant 1.000000e+00 : f32
    %191 = vector.broadcast %cst_66 : f32 to vector<2x128xf32>
    %192 = arith.addf %191, %190 : vector<2x128xf32>
    %193 = arith.divf %191, %192 : vector<2x128xf32>
    %194 = math.tanh %188 : vector<2x128xf32>
    %195 = vector.extract_strided_slice %193 {offsets = [0, 32], sizes = [2, 32], strides = [1, 1]} : vector<2x128xf32> to vector<2x32xf32>
    %196 = arith.mulf %195, %163 : vector<2x32xf32>
    %197 = vector.extract_strided_slice %193 {offsets = [0, 0], sizes = [2, 32], strides = [1, 1]} : vector<2x128xf32> to vector<2x32xf32>
    %198 = vector.extract_strided_slice %194 {offsets = [0, 64], sizes = [2, 32], strides = [1, 1]} : vector<2x128xf32> to vector<2x32xf32>
    %199 = arith.mulf %197, %198 : vector<2x32xf32>
    %200 = arith.addf %196, %199 : vector<2x32xf32>
    %201 = vector.extract_strided_slice %193 {offsets = [0, 96], sizes = [2, 32], strides = [1, 1]} : vector<2x128xf32> to vector<2x32xf32>
    %202 = math.tanh %200 : vector<2x32xf32>
    %203 = arith.mulf %201, %202 : vector<2x32xf32>
    %204 = vector.extract_strided_slice %158 {offsets = [1, 0], sizes = [1, 128], strides = [1, 1]} : vector<16x128xf32> to vector<1x128xf32>
    %205 = vector.extract_strided_slice %158 {offsets = [9, 0], sizes = [1, 128], strides = [1, 1]} : vector<16x128xf32> to vector<1x128xf32>
    %206 = tpu.concatenate %204, %205 in 0 : vector<1x128xf32>, vector<1x128xf32> -> vector<2x128xf32>
    %cst_67 = arith.constant dense<0.000000e+00> : vector<2x128xf32>
    %207 = tpu.matmul %184, %17, %cst_67 {dimension_numbers = #tpu.dot_dimension_numbers<[1], [0], [0], [1], [0, 0, 1, 1], [], []>} : vector<2x32xf32>, vector<32x128xf32>, vector<2x128xf32> -> vector<2x128xf32>
    %208 = arith.addf %206, %207 : vector<2x128xf32>
    %209 = arith.negf %208 : vector<2x128xf32>
    %210 = math.exp %209 : vector<2x128xf32>
    %cst_68 = arith.constant 1.000000e+00 : f32
    %211 = vector.broadcast %cst_68 : f32 to vector<2x128xf32>
    %212 = arith.addf %211, %210 : vector<2x128xf32>
    %213 = arith.divf %211, %212 : vector<2x128xf32>
    %214 = math.tanh %208 : vector<2x128xf32>
    %215 = vector.extract_strided_slice %213 {offsets = [0, 32], sizes = [2, 32], strides = [1, 1]} : vector<2x128xf32> to vector<2x32xf32>
    %216 = arith.mulf %215, %181 : vector<2x32xf32>
    %217 = vector.extract_strided_slice %213 {offsets = [0, 0], sizes = [2, 32], strides = [1, 1]} : vector<2x128xf32> to vector<2x32xf32>
    %218 = vector.extract_strided_slice %214 {offsets = [0, 64], sizes = [2, 32], strides = [1, 1]} : vector<2x128xf32> to vector<2x32xf32>
    %219 = arith.mulf %217, %218 : vector<2x32xf32>
    %220 = arith.addf %216, %219 : vector<2x32xf32>
    %221 = vector.extract_strided_slice %213 {offsets = [0, 96], sizes = [2, 32], strides = [1, 1]} : vector<2x128xf32> to vector<2x32xf32>
    %222 = math.tanh %220 : vector<2x32xf32>
    %223 = arith.mulf %221, %222 : vector<2x32xf32>
    %224 = tpu.concatenate %203, %161 in 1 : vector<2x32xf32>, vector<2x32xf32> -> vector<2x64xf32>
    %cst_69 = arith.constant dense<0.000000e+00> : vector<2x128xf32>
    %225 = tpu.matmul %224, %19, %cst_69 {dimension_numbers = #tpu.dot_dimension_numbers<[1], [0], [0], [1], [0, 0, 1, 1], [], []>} : vector<2x64xf32>, vector<64x128xf32>, vector<2x128xf32> -> vector<2x128xf32>
    %226 = vector.broadcast %23 : vector<1x128xf32> to vector<2x128xf32>
    %227 = arith.addf %225, %226 : vector<2x128xf32>
    %228 = arith.negf %227 : vector<2x128xf32>
    %229 = math.exp %228 : vector<2x128xf32>
    %cst_70 = arith.constant 1.000000e+00 : f32
    %230 = vector.broadcast %cst_70 : f32 to vector<2x128xf32>
    %231 = arith.addf %230, %229 : vector<2x128xf32>
    %232 = arith.divf %230, %231 : vector<2x128xf32>
    %233 = math.tanh %227 : vector<2x128xf32>
    %234 = vector.extract_strided_slice %232 {offsets = [0, 32], sizes = [2, 32], strides = [1, 1]} : vector<2x128xf32> to vector<2x32xf32>
    %235 = arith.mulf %234, %164 : vector<2x32xf32>
    %236 = vector.extract_strided_slice %232 {offsets = [0, 0], sizes = [2, 32], strides = [1, 1]} : vector<2x128xf32> to vector<2x32xf32>
    %237 = vector.extract_strided_slice %233 {offsets = [0, 64], sizes = [2, 32], strides = [1, 1]} : vector<2x128xf32> to vector<2x32xf32>
    %238 = arith.mulf %236, %237 : vector<2x32xf32>
    %239 = arith.addf %235, %238 : vector<2x32xf32>
    %240 = vector.extract_strided_slice %232 {offsets = [0, 96], sizes = [2, 32], strides = [1, 1]} : vector<2x128xf32> to vector<2x32xf32>
    %241 = math.tanh %239 : vector<2x32xf32>
    %242 = arith.mulf %240, %241 : vector<2x32xf32>
    %243 = vector.extract_strided_slice %242 {offsets = [0, 0], sizes = [1, 32], strides = [1, 1]} : vector<2x32xf32> to vector<1x32xf32>
    %c0_71 = arith.constant 0 : index
    %c0_72 = arith.constant 0 : index
    %244 = vector.load %arg6[%c0_71, %c0_72] : memref<16x32xf32, #tpu.memory_space<vmem>>, vector<1x32xf32>
    tpu.vector_store %arg6[%c0_71, %c0_72], %243 {strides = array<i32>} : memref<16x32xf32, #tpu.memory_space<vmem>>, vector<1x32xf32>,
    %245 = vector.extract_strided_slice %242 {offsets = [1, 0], sizes = [1, 32], strides = [1, 1]} : vector<2x32xf32> to vector<1x32xf32>
    %c8 = arith.constant 8 : index
    %c0_73 = arith.constant 0 : index
    %246 = vector.load %arg6[%c8, %c0_73] : memref<16x32xf32, #tpu.memory_space<vmem>>, vector<1x32xf32>
    tpu.vector_store %arg6[%c8, %c0_73], %245 {strides = array<i32>} : memref<16x32xf32, #tpu.memory_space<vmem>>, vector<1x32xf32>,
    %247 = tpu.concatenate %223, %203 in 1 : vector<2x32xf32>, vector<2x32xf32> -> vector<2x64xf32>
    %cst_74 = arith.constant dense<0.000000e+00> : vector<2x128xf32>
    %248 = tpu.matmul %247, %18, %cst_74 {dimension_numbers = #tpu.dot_dimension_numbers<[1], [0], [0], [1], [0, 0, 1, 1], [], []>} : vector<2x64xf32>, vector<64x128xf32>, vector<2x128xf32> -> vector<2x128xf32>
    %249 = vector.broadcast %22 : vector<1x128xf32> to vector<2x128xf32>
    %250 = arith.addf %248, %249 : vector<2x128xf32>
    %251 = arith.negf %250 : vector<2x128xf32>
    %252 = math.exp %251 : vector<2x128xf32>
    %cst_75 = arith.constant 1.000000e+00 : f32
    %253 = vector.broadcast %cst_75 : f32 to vector<2x128xf32>
    %254 = arith.addf %253, %252 : vector<2x128xf32>
    %255 = arith.divf %253, %254 : vector<2x128xf32>
    %256 = math.tanh %250 : vector<2x128xf32>
    %257 = vector.extract_strided_slice %255 {offsets = [0, 32], sizes = [2, 32], strides = [1, 1]} : vector<2x128xf32> to vector<2x32xf32>
    %258 = arith.mulf %257, %200 : vector<2x32xf32>
    %259 = vector.extract_strided_slice %255 {offsets = [0, 0], sizes = [2, 32], strides = [1, 1]} : vector<2x128xf32> to vector<2x32xf32>
    %260 = vector.extract_strided_slice %256 {offsets = [0, 64], sizes = [2, 32], strides = [1, 1]} : vector<2x128xf32> to vector<2x32xf32>
    %261 = arith.mulf %259, %260 : vector<2x32xf32>
    %262 = arith.addf %258, %261 : vector<2x32xf32>
    %263 = vector.extract_strided_slice %255 {offsets = [0, 96], sizes = [2, 32], strides = [1, 1]} : vector<2x128xf32> to vector<2x32xf32>
    %264 = math.tanh %262 : vector<2x32xf32>
    %265 = arith.mulf %263, %264 : vector<2x32xf32>
    %266 = vector.extract_strided_slice %158 {offsets = [2, 0], sizes = [1, 128], strides = [1, 1]} : vector<16x128xf32> to vector<1x128xf32>
    %267 = vector.extract_strided_slice %158 {offsets = [10, 0], sizes = [1, 128], strides = [1, 1]} : vector<16x128xf32> to vector<1x128xf32>
    %268 = tpu.concatenate %266, %267 in 0 : vector<1x128xf32>, vector<1x128xf32> -> vector<2x128xf32>
    %cst_76 = arith.constant dense<0.000000e+00> : vector<2x128xf32>
    %269 = tpu.matmul %223, %17, %cst_76 {dimension_numbers = #tpu.dot_dimension_numbers<[1], [0], [0], [1], [0, 0, 1, 1], [], []>} : vector<2x32xf32>, vector<32x128xf32>, vector<2x128xf32> -> vector<2x128xf32>
    %270 = arith.addf %268, %269 : vector<2x128xf32>
    %271 = arith.negf %270 : vector<2x128xf32>
    %272 = math.exp %271 : vector<2x128xf32>
    %cst_77 = arith.constant 1.000000e+00 : f32
    %273 = vector.broadcast %cst_77 : f32 to vector<2x128xf32>
    %274 = arith.addf %273, %272 : vector<2x128xf32>
    %275 = arith.divf %273, %274 : vector<2x128xf32>
    %276 = math.tanh %270 : vector<2x128xf32>
    %277 = vector.extract_strided_slice %275 {offsets = [0, 32], sizes = [2, 32], strides = [1, 1]} : vector<2x128xf32> to vector<2x32xf32>
    %278 = arith.mulf %277, %220 : vector<2x32xf32>
    %279 = vector.extract_strided_slice %275 {offsets = [0, 0], sizes = [2, 32], strides = [1, 1]} : vector<2x128xf32> to vector<2x32xf32>
    %280 = vector.extract_strided_slice %276 {offsets = [0, 64], sizes = [2, 32], strides = [1, 1]} : vector<2x128xf32> to vector<2x32xf32>
    %281 = arith.mulf %279, %280 : vector<2x32xf32>
    %282 = arith.addf %278, %281 : vector<2x32xf32>
    %283 = vector.extract_strided_slice %275 {offsets = [0, 96], sizes = [2, 32], strides = [1, 1]} : vector<2x128xf32> to vector<2x32xf32>
    %284 = math.tanh %282 : vector<2x32xf32>
    %285 = arith.mulf %283, %284 : vector<2x32xf32>
    %286 = tpu.concatenate %265, %242 in 1 : vector<2x32xf32>, vector<2x32xf32> -> vector<2x64xf32>
    %cst_78 = arith.constant dense<0.000000e+00> : vector<2x128xf32>
    %287 = tpu.matmul %286, %19, %cst_78 {dimension_numbers = #tpu.dot_dimension_numbers<[1], [0], [0], [1], [0, 0, 1, 1], [], []>} : vector<2x64xf32>, vector<64x128xf32>, vector<2x128xf32> -> vector<2x128xf32>
    %288 = vector.broadcast %23 : vector<1x128xf32> to vector<2x128xf32>
    %289 = arith.addf %287, %288 : vector<2x128xf32>
    %290 = arith.negf %289 : vector<2x128xf32>
    %291 = math.exp %290 : vector<2x128xf32>
    %cst_79 = arith.constant 1.000000e+00 : f32
    %292 = vector.broadcast %cst_79 : f32 to vector<2x128xf32>
    %293 = arith.addf %292, %291 : vector<2x128xf32>
    %294 = arith.divf %292, %293 : vector<2x128xf32>
    %295 = math.tanh %289 : vector<2x128xf32>
    %296 = vector.extract_strided_slice %294 {offsets = [0, 32], sizes = [2, 32], strides = [1, 1]} : vector<2x128xf32> to vector<2x32xf32>
    %297 = arith.mulf %296, %239 : vector<2x32xf32>
    %298 = vector.extract_strided_slice %294 {offsets = [0, 0], sizes = [2, 32], strides = [1, 1]} : vector<2x128xf32> to vector<2x32xf32>
    %299 = vector.extract_strided_slice %295 {offsets = [0, 64], sizes = [2, 32], strides = [1, 1]} : vector<2x128xf32> to vector<2x32xf32>
    %300 = arith.mulf %298, %299 : vector<2x32xf32>
    %301 = arith.addf %297, %300 : vector<2x32xf32>
    %302 = vector.extract_strided_slice %294 {offsets = [0, 96], sizes = [2, 32], strides = [1, 1]} : vector<2x128xf32> to vector<2x32xf32>
    %303 = math.tanh %301 : vector<2x32xf32>
    %304 = arith.mulf %302, %303 : vector<2x32xf32>
    %305 = vector.extract_strided_slice %304 {offsets = [0, 0], sizes = [1, 32], strides = [1, 1]} : vector<2x32xf32> to vector<1x32xf32>
    %c1_80 = arith.constant 1 : index
    %c0_81 = arith.constant 0 : index
    %306 = vector.load %arg6[%c1_80, %c0_81] : memref<16x32xf32, #tpu.memory_space<vmem>>, vector<1x32xf32>
    tpu.vector_store %arg6[%c1_80, %c0_81], %305 {strides = array<i32>} : memref<16x32xf32, #tpu.memory_space<vmem>>, vector<1x32xf32>,
    %307 = vector.extract_strided_slice %304 {offsets = [1, 0], sizes = [1, 32], strides = [1, 1]} : vector<2x32xf32> to vector<1x32xf32>
    %c9 = arith.constant 9 : index
    %c0_82 = arith.constant 0 : index
    %308 = vector.load %arg6[%c9, %c0_82] : memref<16x32xf32, #tpu.memory_space<vmem>>, vector<1x32xf32>
    tpu.vector_store %arg6[%c9, %c0_82], %307 {strides = array<i32>} : memref<16x32xf32, #tpu.memory_space<vmem>>, vector<1x32xf32>,
    %309 = tpu.concatenate %285, %265 in 1 : vector<2x32xf32>, vector<2x32xf32> -> vector<2x64xf32>
    %cst_83 = arith.constant dense<0.000000e+00> : vector<2x128xf32>
    %310 = tpu.matmul %309, %18, %cst_83 {dimension_numbers = #tpu.dot_dimension_numbers<[1], [0], [0], [1], [0, 0, 1, 1], [], []>} : vector<2x64xf32>, vector<64x128xf32>, vector<2x128xf32> -> vector<2x128xf32>
    %311 = vector.broadcast %22 : vector<1x128xf32> to vector<2x128xf32>
    %312 = arith.addf %310, %311 : vector<2x128xf32>
    %313 = arith.negf %312 : vector<2x128xf32>
    %314 = math.exp %313 : vector<2x128xf32>
    %cst_84 = arith.constant 1.000000e+00 : f32
    %315 = vector.broadcast %cst_84 : f32 to vector<2x128xf32>
    %316 = arith.addf %315, %314 : vector<2x128xf32>
    %317 = arith.divf %315, %316 : vector<2x128xf32>
    %318 = math.tanh %312 : vector<2x128xf32>
    %319 = vector.extract_strided_slice %317 {offsets = [0, 32], sizes = [2, 32], strides = [1, 1]} : vector<2x128xf32> to vector<2x32xf32>
    %320 = arith.mulf %319, %262 : vector<2x32xf32>
    %321 = vector.extract_strided_slice %317 {offsets = [0, 0], sizes = [2, 32], strides = [1, 1]} : vector<2x128xf32> to vector<2x32xf32>
    %322 = vector.extract_strided_slice %318 {offsets = [0, 64], sizes = [2, 32], strides = [1, 1]} : vector<2x128xf32> to vector<2x32xf32>
    %323 = arith.mulf %321, %322 : vector<2x32xf32>
    %324 = arith.addf %320, %323 : vector<2x32xf32>
    %325 = vector.extract_strided_slice %317 {offsets = [0, 96], sizes = [2, 32], strides = [1, 1]} : vector<2x128xf32> to vector<2x32xf32>
    %326 = math.tanh %324 : vector<2x32xf32>
    %327 = arith.mulf %325, %326 : vector<2x32xf32>
    %328 = vector.extract_strided_slice %158 {offsets = [3, 0], sizes = [1, 128], strides = [1, 1]} : vector<16x128xf32> to vector<1x128xf32>
    %329 = vector.extract_strided_slice %158 {offsets = [11, 0], sizes = [1, 128], strides = [1, 1]} : vector<16x128xf32> to vector<1x128xf32>
    %330 = tpu.concatenate %328, %329 in 0 : vector<1x128xf32>, vector<1x128xf32> -> vector<2x128xf32>
    %cst_85 = arith.constant dense<0.000000e+00> : vector<2x128xf32>
    %331 = tpu.matmul %285, %17, %cst_85 {dimension_numbers = #tpu.dot_dimension_numbers<[1], [0], [0], [1], [0, 0, 1, 1], [], []>} : vector<2x32xf32>, vector<32x128xf32>, vector<2x128xf32> -> vector<2x128xf32>
    %332 = arith.addf %330, %331 : vector<2x128xf32>
    %333 = arith.negf %332 : vector<2x128xf32>
    %334 = math.exp %333 : vector<2x128xf32>
    %cst_86 = arith.constant 1.000000e+00 : f32
    %335 = vector.broadcast %cst_86 : f32 to vector<2x128xf32>
    %336 = arith.addf %335, %334 : vector<2x128xf32>
    %337 = arith.divf %335, %336 : vector<2x128xf32>
    %338 = math.tanh %332 : vector<2x128xf32>
    %339 = vector.extract_strided_slice %337 {offsets = [0, 32], sizes = [2, 32], strides = [1, 1]} : vector<2x128xf32> to vector<2x32xf32>
    %340 = arith.mulf %339, %282 : vector<2x32xf32>
    %341 = vector.extract_strided_slice %337 {offsets = [0, 0], sizes = [2, 32], strides = [1, 1]} : vector<2x128xf32> to vector<2x32xf32>
    %342 = vector.extract_strided_slice %338 {offsets = [0, 64], sizes = [2, 32], strides = [1, 1]} : vector<2x128xf32> to vector<2x32xf32>
    %343 = arith.mulf %341, %342 : vector<2x32xf32>
    %344 = arith.addf %340, %343 : vector<2x32xf32>
    %345 = vector.extract_strided_slice %337 {offsets = [0, 96], sizes = [2, 32], strides = [1, 1]} : vector<2x128xf32> to vector<2x32xf32>
    %346 = math.tanh %344 : vector<2x32xf32>
    %347 = arith.mulf %345, %346 : vector<2x32xf32>
    %348 = tpu.concatenate %327, %304 in 1 : vector<2x32xf32>, vector<2x32xf32> -> vector<2x64xf32>
    %cst_87 = arith.constant dense<0.000000e+00> : vector<2x128xf32>
    %349 = tpu.matmul %348, %19, %cst_87 {dimension_numbers = #tpu.dot_dimension_numbers<[1], [0], [0], [1], [0, 0, 1, 1], [], []>} : vector<2x64xf32>, vector<64x128xf32>, vector<2x128xf32> -> vector<2x128xf32>
    %350 = vector.broadcast %23 : vector<1x128xf32> to vector<2x128xf32>
    %351 = arith.addf %349, %350 : vector<2x128xf32>
    %352 = arith.negf %351 : vector<2x128xf32>
    %353 = math.exp %352 : vector<2x128xf32>
    %cst_88 = arith.constant 1.000000e+00 : f32
    %354 = vector.broadcast %cst_88 : f32 to vector<2x128xf32>
    %355 = arith.addf %354, %353 : vector<2x128xf32>
    %356 = arith.divf %354, %355 : vector<2x128xf32>
    %357 = math.tanh %351 : vector<2x128xf32>
    %358 = vector.extract_strided_slice %356 {offsets = [0, 32], sizes = [2, 32], strides = [1, 1]} : vector<2x128xf32> to vector<2x32xf32>
    %359 = arith.mulf %358, %301 : vector<2x32xf32>
    %360 = vector.extract_strided_slice %356 {offsets = [0, 0], sizes = [2, 32], strides = [1, 1]} : vector<2x128xf32> to vector<2x32xf32>
    %361 = vector.extract_strided_slice %357 {offsets = [0, 64], sizes = [2, 32], strides = [1, 1]} : vector<2x128xf32> to vector<2x32xf32>
    %362 = arith.mulf %360, %361 : vector<2x32xf32>
    %363 = arith.addf %359, %362 : vector<2x32xf32>
    %364 = vector.extract_strided_slice %356 {offsets = [0, 96], sizes = [2, 32], strides = [1, 1]} : vector<2x128xf32> to vector<2x32xf32>
    %365 = math.tanh %363 : vector<2x32xf32>
    %366 = arith.mulf %364, %365 : vector<2x32xf32>
    %367 = vector.extract_strided_slice %366 {offsets = [0, 0], sizes = [1, 32], strides = [1, 1]} : vector<2x32xf32> to vector<1x32xf32>
    %c2 = arith.constant 2 : index
    %c0_89 = arith.constant 0 : index
    %368 = vector.load %arg6[%c2, %c0_89] : memref<16x32xf32, #tpu.memory_space<vmem>>, vector<1x32xf32>
    tpu.vector_store %arg6[%c2, %c0_89], %367 {strides = array<i32>} : memref<16x32xf32, #tpu.memory_space<vmem>>, vector<1x32xf32>,
    %369 = vector.extract_strided_slice %366 {offsets = [1, 0], sizes = [1, 32], strides = [1, 1]} : vector<2x32xf32> to vector<1x32xf32>
    %c10 = arith.constant 10 : index
    %c0_90 = arith.constant 0 : index
    %370 = vector.load %arg6[%c10, %c0_90] : memref<16x32xf32, #tpu.memory_space<vmem>>, vector<1x32xf32>
    tpu.vector_store %arg6[%c10, %c0_90], %369 {strides = array<i32>} : memref<16x32xf32, #tpu.memory_space<vmem>>, vector<1x32xf32>,
    %371 = tpu.concatenate %347, %327 in 1 : vector<2x32xf32>, vector<2x32xf32> -> vector<2x64xf32>
    %cst_91 = arith.constant dense<0.000000e+00> : vector<2x128xf32>
    %372 = tpu.matmul %371, %18, %cst_91 {dimension_numbers = #tpu.dot_dimension_numbers<[1], [0], [0], [1], [0, 0, 1, 1], [], []>} : vector<2x64xf32>, vector<64x128xf32>, vector<2x128xf32> -> vector<2x128xf32>
    %373 = vector.broadcast %22 : vector<1x128xf32> to vector<2x128xf32>
    %374 = arith.addf %372, %373 : vector<2x128xf32>
    %375 = arith.negf %374 : vector<2x128xf32>
    %376 = math.exp %375 : vector<2x128xf32>
    %cst_92 = arith.constant 1.000000e+00 : f32
    %377 = vector.broadcast %cst_92 : f32 to vector<2x128xf32>
    %378 = arith.addf %377, %376 : vector<2x128xf32>
    %379 = arith.divf %377, %378 : vector<2x128xf32>
    %380 = math.tanh %374 : vector<2x128xf32>
    %381 = vector.extract_strided_slice %379 {offsets = [0, 32], sizes = [2, 32], strides = [1, 1]} : vector<2x128xf32> to vector<2x32xf32>
    %382 = arith.mulf %381, %324 : vector<2x32xf32>
    %383 = vector.extract_strided_slice %379 {offsets = [0, 0], sizes = [2, 32], strides = [1, 1]} : vector<2x128xf32> to vector<2x32xf32>
    %384 = vector.extract_strided_slice %380 {offsets = [0, 64], sizes = [2, 32], strides = [1, 1]} : vector<2x128xf32> to vector<2x32xf32>
    %385 = arith.mulf %383, %384 : vector<2x32xf32>
    %386 = arith.addf %382, %385 : vector<2x32xf32>
    %387 = vector.extract_strided_slice %379 {offsets = [0, 96], sizes = [2, 32], strides = [1, 1]} : vector<2x128xf32> to vector<2x32xf32>
    %388 = math.tanh %386 : vector<2x32xf32>
    %389 = arith.mulf %387, %388 : vector<2x32xf32>
    %390 = vector.extract_strided_slice %158 {offsets = [4, 0], sizes = [1, 128], strides = [1, 1]} : vector<16x128xf32> to vector<1x128xf32>
    %391 = vector.extract_strided_slice %158 {offsets = [12, 0], sizes = [1, 128], strides = [1, 1]} : vector<16x128xf32> to vector<1x128xf32>
    %392 = tpu.concatenate %390, %391 in 0 : vector<1x128xf32>, vector<1x128xf32> -> vector<2x128xf32>
    %cst_93 = arith.constant dense<0.000000e+00> : vector<2x128xf32>
    %393 = tpu.matmul %347, %17, %cst_93 {dimension_numbers = #tpu.dot_dimension_numbers<[1], [0], [0], [1], [0, 0, 1, 1], [], []>} : vector<2x32xf32>, vector<32x128xf32>, vector<2x128xf32> -> vector<2x128xf32>
    %394 = arith.addf %392, %393 : vector<2x128xf32>
    %395 = arith.negf %394 : vector<2x128xf32>
    %396 = math.exp %395 : vector<2x128xf32>
    %cst_94 = arith.constant 1.000000e+00 : f32
    %397 = vector.broadcast %cst_94 : f32 to vector<2x128xf32>
    %398 = arith.addf %397, %396 : vector<2x128xf32>
    %399 = arith.divf %397, %398 : vector<2x128xf32>
    %400 = math.tanh %394 : vector<2x128xf32>
    %401 = vector.extract_strided_slice %399 {offsets = [0, 32], sizes = [2, 32], strides = [1, 1]} : vector<2x128xf32> to vector<2x32xf32>
    %402 = arith.mulf %401, %344 : vector<2x32xf32>
    %403 = vector.extract_strided_slice %399 {offsets = [0, 0], sizes = [2, 32], strides = [1, 1]} : vector<2x128xf32> to vector<2x32xf32>
    %404 = vector.extract_strided_slice %400 {offsets = [0, 64], sizes = [2, 32], strides = [1, 1]} : vector<2x128xf32> to vector<2x32xf32>
    %405 = arith.mulf %403, %404 : vector<2x32xf32>
    %406 = arith.addf %402, %405 : vector<2x32xf32>
    %407 = vector.extract_strided_slice %399 {offsets = [0, 96], sizes = [2, 32], strides = [1, 1]} : vector<2x128xf32> to vector<2x32xf32>
    %408 = math.tanh %406 : vector<2x32xf32>
    %409 = arith.mulf %407, %408 : vector<2x32xf32>
    %410 = tpu.concatenate %389, %366 in 1 : vector<2x32xf32>, vector<2x32xf32> -> vector<2x64xf32>
    %cst_95 = arith.constant dense<0.000000e+00> : vector<2x128xf32>
    %411 = tpu.matmul %410, %19, %cst_95 {dimension_numbers = #tpu.dot_dimension_numbers<[1], [0], [0], [1], [0, 0, 1, 1], [], []>} : vector<2x64xf32>, vector<64x128xf32>, vector<2x128xf32> -> vector<2x128xf32>
    %412 = vector.broadcast %23 : vector<1x128xf32> to vector<2x128xf32>
    %413 = arith.addf %411, %412 : vector<2x128xf32>
    %414 = arith.negf %413 : vector<2x128xf32>
    %415 = math.exp %414 : vector<2x128xf32>
    %cst_96 = arith.constant 1.000000e+00 : f32
    %416 = vector.broadcast %cst_96 : f32 to vector<2x128xf32>
    %417 = arith.addf %416, %415 : vector<2x128xf32>
    %418 = arith.divf %416, %417 : vector<2x128xf32>
    %419 = math.tanh %413 : vector<2x128xf32>
    %420 = vector.extract_strided_slice %418 {offsets = [0, 32], sizes = [2, 32], strides = [1, 1]} : vector<2x128xf32> to vector<2x32xf32>
    %421 = arith.mulf %420, %363 : vector<2x32xf32>
    %422 = vector.extract_strided_slice %418 {offsets = [0, 0], sizes = [2, 32], strides = [1, 1]} : vector<2x128xf32> to vector<2x32xf32>
    %423 = vector.extract_strided_slice %419 {offsets = [0, 64], sizes = [2, 32], strides = [1, 1]} : vector<2x128xf32> to vector<2x32xf32>
    %424 = arith.mulf %422, %423 : vector<2x32xf32>
    %425 = arith.addf %421, %424 : vector<2x32xf32>
    %426 = vector.extract_strided_slice %418 {offsets = [0, 96], sizes = [2, 32], strides = [1, 1]} : vector<2x128xf32> to vector<2x32xf32>
    %427 = math.tanh %425 : vector<2x32xf32>
    %428 = arith.mulf %426, %427 : vector<2x32xf32>
    %429 = vector.extract_strided_slice %428 {offsets = [0, 0], sizes = [1, 32], strides = [1, 1]} : vector<2x32xf32> to vector<1x32xf32>
    %c3 = arith.constant 3 : index
    %c0_97 = arith.constant 0 : index
    %430 = vector.load %arg6[%c3, %c0_97] : memref<16x32xf32, #tpu.memory_space<vmem>>, vector<1x32xf32>
    tpu.vector_store %arg6[%c3, %c0_97], %429 {strides = array<i32>} : memref<16x32xf32, #tpu.memory_space<vmem>>, vector<1x32xf32>,
    %431 = vector.extract_strided_slice %428 {offsets = [1, 0], sizes = [1, 32], strides = [1, 1]} : vector<2x32xf32> to vector<1x32xf32>
    %c11 = arith.constant 11 : index
    %c0_98 = arith.constant 0 : index
    %432 = vector.load %arg6[%c11, %c0_98] : memref<16x32xf32, #tpu.memory_space<vmem>>, vector<1x32xf32>
    tpu.vector_store %arg6[%c11, %c0_98], %431 {strides = array<i32>} : memref<16x32xf32, #tpu.memory_space<vmem>>, vector<1x32xf32>,
    %433 = tpu.concatenate %409, %389 in 1 : vector<2x32xf32>, vector<2x32xf32> -> vector<2x64xf32>
    %cst_99 = arith.constant dense<0.000000e+00> : vector<2x128xf32>
    %434 = tpu.matmul %433, %18, %cst_99 {dimension_numbers = #tpu.dot_dimension_numbers<[1], [0], [0], [1], [0, 0, 1, 1], [], []>} : vector<2x64xf32>, vector<64x128xf32>, vector<2x128xf32> -> vector<2x128xf32>
    %435 = vector.broadcast %22 : vector<1x128xf32> to vector<2x128xf32>
    %436 = arith.addf %434, %435 : vector<2x128xf32>
    %437 = arith.negf %436 : vector<2x128xf32>
    %438 = math.exp %437 : vector<2x128xf32>
    %cst_100 = arith.constant 1.000000e+00 : f32
    %439 = vector.broadcast %cst_100 : f32 to vector<2x128xf32>
    %440 = arith.addf %439, %438 : vector<2x128xf32>
    %441 = arith.divf %439, %440 : vector<2x128xf32>
    %442 = math.tanh %436 : vector<2x128xf32>
    %443 = vector.extract_strided_slice %441 {offsets = [0, 32], sizes = [2, 32], strides = [1, 1]} : vector<2x128xf32> to vector<2x32xf32>
    %444 = arith.mulf %443, %386 : vector<2x32xf32>
    %445 = vector.extract_strided_slice %441 {offsets = [0, 0], sizes = [2, 32], strides = [1, 1]} : vector<2x128xf32> to vector<2x32xf32>
    %446 = vector.extract_strided_slice %442 {offsets = [0, 64], sizes = [2, 32], strides = [1, 1]} : vector<2x128xf32> to vector<2x32xf32>
    %447 = arith.mulf %445, %446 : vector<2x32xf32>
    %448 = arith.addf %444, %447 : vector<2x32xf32>
    %449 = vector.extract_strided_slice %441 {offsets = [0, 96], sizes = [2, 32], strides = [1, 1]} : vector<2x128xf32> to vector<2x32xf32>
    %450 = math.tanh %448 : vector<2x32xf32>
    %451 = arith.mulf %449, %450 : vector<2x32xf32>
    %452 = vector.extract_strided_slice %158 {offsets = [5, 0], sizes = [1, 128], strides = [1, 1]} : vector<16x128xf32> to vector<1x128xf32>
    %453 = vector.extract_strided_slice %158 {offsets = [13, 0], sizes = [1, 128], strides = [1, 1]} : vector<16x128xf32> to vector<1x128xf32>
    %454 = tpu.concatenate %452, %453 in 0 : vector<1x128xf32>, vector<1x128xf32> -> vector<2x128xf32>
    %cst_101 = arith.constant dense<0.000000e+00> : vector<2x128xf32>
    %455 = tpu.matmul %409, %17, %cst_101 {dimension_numbers = #tpu.dot_dimension_numbers<[1], [0], [0], [1], [0, 0, 1, 1], [], []>} : vector<2x32xf32>, vector<32x128xf32>, vector<2x128xf32> -> vector<2x128xf32>
    %456 = arith.addf %454, %455 : vector<2x128xf32>
    %457 = arith.negf %456 : vector<2x128xf32>
    %458 = math.exp %457 : vector<2x128xf32>
    %cst_102 = arith.constant 1.000000e+00 : f32
    %459 = vector.broadcast %cst_102 : f32 to vector<2x128xf32>
    %460 = arith.addf %459, %458 : vector<2x128xf32>
    %461 = arith.divf %459, %460 : vector<2x128xf32>
    %462 = math.tanh %456 : vector<2x128xf32>
    %463 = vector.extract_strided_slice %461 {offsets = [0, 32], sizes = [2, 32], strides = [1, 1]} : vector<2x128xf32> to vector<2x32xf32>
    %464 = arith.mulf %463, %406 : vector<2x32xf32>
    %465 = vector.extract_strided_slice %461 {offsets = [0, 0], sizes = [2, 32], strides = [1, 1]} : vector<2x128xf32> to vector<2x32xf32>
    %466 = vector.extract_strided_slice %462 {offsets = [0, 64], sizes = [2, 32], strides = [1, 1]} : vector<2x128xf32> to vector<2x32xf32>
    %467 = arith.mulf %465, %466 : vector<2x32xf32>
    %468 = arith.addf %464, %467 : vector<2x32xf32>
    %469 = vector.extract_strided_slice %461 {offsets = [0, 96], sizes = [2, 32], strides = [1, 1]} : vector<2x128xf32> to vector<2x32xf32>
    %470 = math.tanh %468 : vector<2x32xf32>
    %471 = arith.mulf %469, %470 : vector<2x32xf32>
    %472 = tpu.concatenate %451, %428 in 1 : vector<2x32xf32>, vector<2x32xf32> -> vector<2x64xf32>
    %cst_103 = arith.constant dense<0.000000e+00> : vector<2x128xf32>
    %473 = tpu.matmul %472, %19, %cst_103 {dimension_numbers = #tpu.dot_dimension_numbers<[1], [0], [0], [1], [0, 0, 1, 1], [], []>} : vector<2x64xf32>, vector<64x128xf32>, vector<2x128xf32> -> vector<2x128xf32>
    %474 = vector.broadcast %23 : vector<1x128xf32> to vector<2x128xf32>
    %475 = arith.addf %473, %474 : vector<2x128xf32>
    %476 = arith.negf %475 : vector<2x128xf32>
    %477 = math.exp %476 : vector<2x128xf32>
    %cst_104 = arith.constant 1.000000e+00 : f32
    %478 = vector.broadcast %cst_104 : f32 to vector<2x128xf32>
    %479 = arith.addf %478, %477 : vector<2x128xf32>
    %480 = arith.divf %478, %479 : vector<2x128xf32>
    %481 = math.tanh %475 : vector<2x128xf32>
    %482 = vector.extract_strided_slice %480 {offsets = [0, 32], sizes = [2, 32], strides = [1, 1]} : vector<2x128xf32> to vector<2x32xf32>
    %483 = arith.mulf %482, %425 : vector<2x32xf32>
    %484 = vector.extract_strided_slice %480 {offsets = [0, 0], sizes = [2, 32], strides = [1, 1]} : vector<2x128xf32> to vector<2x32xf32>
    %485 = vector.extract_strided_slice %481 {offsets = [0, 64], sizes = [2, 32], strides = [1, 1]} : vector<2x128xf32> to vector<2x32xf32>
    %486 = arith.mulf %484, %485 : vector<2x32xf32>
    %487 = arith.addf %483, %486 : vector<2x32xf32>
    %488 = vector.extract_strided_slice %480 {offsets = [0, 96], sizes = [2, 32], strides = [1, 1]} : vector<2x128xf32> to vector<2x32xf32>
    %489 = math.tanh %487 : vector<2x32xf32>
    %490 = arith.mulf %488, %489 : vector<2x32xf32>
    %491 = vector.extract_strided_slice %490 {offsets = [0, 0], sizes = [1, 32], strides = [1, 1]} : vector<2x32xf32> to vector<1x32xf32>
    %c4 = arith.constant 4 : index
    %c0_105 = arith.constant 0 : index
    %492 = vector.load %arg6[%c4, %c0_105] : memref<16x32xf32, #tpu.memory_space<vmem>>, vector<1x32xf32>
    tpu.vector_store %arg6[%c4, %c0_105], %491 {strides = array<i32>} : memref<16x32xf32, #tpu.memory_space<vmem>>, vector<1x32xf32>,
    %493 = vector.extract_strided_slice %490 {offsets = [1, 0], sizes = [1, 32], strides = [1, 1]} : vector<2x32xf32> to vector<1x32xf32>
    %c12 = arith.constant 12 : index
    %c0_106 = arith.constant 0 : index
    %494 = vector.load %arg6[%c12, %c0_106] : memref<16x32xf32, #tpu.memory_space<vmem>>, vector<1x32xf32>
    tpu.vector_store %arg6[%c12, %c0_106], %493 {strides = array<i32>} : memref<16x32xf32, #tpu.memory_space<vmem>>, vector<1x32xf32>,
    %495 = tpu.concatenate %471, %451 in 1 : vector<2x32xf32>, vector<2x32xf32> -> vector<2x64xf32>
    %cst_107 = arith.constant dense<0.000000e+00> : vector<2x128xf32>
    %496 = tpu.matmul %495, %18, %cst_107 {dimension_numbers = #tpu.dot_dimension_numbers<[1], [0], [0], [1], [0, 0, 1, 1], [], []>} : vector<2x64xf32>, vector<64x128xf32>, vector<2x128xf32> -> vector<2x128xf32>
    %497 = vector.broadcast %22 : vector<1x128xf32> to vector<2x128xf32>
    %498 = arith.addf %496, %497 : vector<2x128xf32>
    %499 = arith.negf %498 : vector<2x128xf32>
    %500 = math.exp %499 : vector<2x128xf32>
    %cst_108 = arith.constant 1.000000e+00 : f32
    %501 = vector.broadcast %cst_108 : f32 to vector<2x128xf32>
    %502 = arith.addf %501, %500 : vector<2x128xf32>
    %503 = arith.divf %501, %502 : vector<2x128xf32>
    %504 = math.tanh %498 : vector<2x128xf32>
    %505 = vector.extract_strided_slice %503 {offsets = [0, 32], sizes = [2, 32], strides = [1, 1]} : vector<2x128xf32> to vector<2x32xf32>
    %506 = arith.mulf %505, %448 : vector<2x32xf32>
    %507 = vector.extract_strided_slice %503 {offsets = [0, 0], sizes = [2, 32], strides = [1, 1]} : vector<2x128xf32> to vector<2x32xf32>
    %508 = vector.extract_strided_slice %504 {offsets = [0, 64], sizes = [2, 32], strides = [1, 1]} : vector<2x128xf32> to vector<2x32xf32>
    %509 = arith.mulf %507, %508 : vector<2x32xf32>
    %510 = arith.addf %506, %509 : vector<2x32xf32>
    %511 = vector.extract_strided_slice %503 {offsets = [0, 96], sizes = [2, 32], strides = [1, 1]} : vector<2x128xf32> to vector<2x32xf32>
    %512 = math.tanh %510 : vector<2x32xf32>
    %513 = arith.mulf %511, %512 : vector<2x32xf32>
    %514 = vector.extract_strided_slice %158 {offsets = [6, 0], sizes = [1, 128], strides = [1, 1]} : vector<16x128xf32> to vector<1x128xf32>
    %515 = vector.extract_strided_slice %158 {offsets = [14, 0], sizes = [1, 128], strides = [1, 1]} : vector<16x128xf32> to vector<1x128xf32>
    %516 = tpu.concatenate %514, %515 in 0 : vector<1x128xf32>, vector<1x128xf32> -> vector<2x128xf32>
    %cst_109 = arith.constant dense<0.000000e+00> : vector<2x128xf32>
    %517 = tpu.matmul %471, %17, %cst_109 {dimension_numbers = #tpu.dot_dimension_numbers<[1], [0], [0], [1], [0, 0, 1, 1], [], []>} : vector<2x32xf32>, vector<32x128xf32>, vector<2x128xf32> -> vector<2x128xf32>
    %518 = arith.addf %516, %517 : vector<2x128xf32>
    %519 = arith.negf %518 : vector<2x128xf32>
    %520 = math.exp %519 : vector<2x128xf32>
    %cst_110 = arith.constant 1.000000e+00 : f32
    %521 = vector.broadcast %cst_110 : f32 to vector<2x128xf32>
    %522 = arith.addf %521, %520 : vector<2x128xf32>
    %523 = arith.divf %521, %522 : vector<2x128xf32>
    %524 = math.tanh %518 : vector<2x128xf32>
    %525 = vector.extract_strided_slice %523 {offsets = [0, 32], sizes = [2, 32], strides = [1, 1]} : vector<2x128xf32> to vector<2x32xf32>
    %526 = arith.mulf %525, %468 : vector<2x32xf32>
    %527 = vector.extract_strided_slice %523 {offsets = [0, 0], sizes = [2, 32], strides = [1, 1]} : vector<2x128xf32> to vector<2x32xf32>
    %528 = vector.extract_strided_slice %524 {offsets = [0, 64], sizes = [2, 32], strides = [1, 1]} : vector<2x128xf32> to vector<2x32xf32>
    %529 = arith.mulf %527, %528 : vector<2x32xf32>
    %530 = arith.addf %526, %529 : vector<2x32xf32>
    %531 = vector.extract_strided_slice %523 {offsets = [0, 96], sizes = [2, 32], strides = [1, 1]} : vector<2x128xf32> to vector<2x32xf32>
    %532 = math.tanh %530 : vector<2x32xf32>
    %533 = arith.mulf %531, %532 : vector<2x32xf32>
    %534 = tpu.concatenate %513, %490 in 1 : vector<2x32xf32>, vector<2x32xf32> -> vector<2x64xf32>
    %cst_111 = arith.constant dense<0.000000e+00> : vector<2x128xf32>
    %535 = tpu.matmul %534, %19, %cst_111 {dimension_numbers = #tpu.dot_dimension_numbers<[1], [0], [0], [1], [0, 0, 1, 1], [], []>} : vector<2x64xf32>, vector<64x128xf32>, vector<2x128xf32> -> vector<2x128xf32>
    %536 = vector.broadcast %23 : vector<1x128xf32> to vector<2x128xf32>
    %537 = arith.addf %535, %536 : vector<2x128xf32>
    %538 = arith.negf %537 : vector<2x128xf32>
    %539 = math.exp %538 : vector<2x128xf32>
    %cst_112 = arith.constant 1.000000e+00 : f32
    %540 = vector.broadcast %cst_112 : f32 to vector<2x128xf32>
    %541 = arith.addf %540, %539 : vector<2x128xf32>
    %542 = arith.divf %540, %541 : vector<2x128xf32>
    %543 = math.tanh %537 : vector<2x128xf32>
    %544 = vector.extract_strided_slice %542 {offsets = [0, 32], sizes = [2, 32], strides = [1, 1]} : vector<2x128xf32> to vector<2x32xf32>
    %545 = arith.mulf %544, %487 : vector<2x32xf32>
    %546 = vector.extract_strided_slice %542 {offsets = [0, 0], sizes = [2, 32], strides = [1, 1]} : vector<2x128xf32> to vector<2x32xf32>
    %547 = vector.extract_strided_slice %543 {offsets = [0, 64], sizes = [2, 32], strides = [1, 1]} : vector<2x128xf32> to vector<2x32xf32>
    %548 = arith.mulf %546, %547 : vector<2x32xf32>
    %549 = arith.addf %545, %548 : vector<2x32xf32>
    %550 = vector.extract_strided_slice %542 {offsets = [0, 96], sizes = [2, 32], strides = [1, 1]} : vector<2x128xf32> to vector<2x32xf32>
    %551 = math.tanh %549 : vector<2x32xf32>
    %552 = arith.mulf %550, %551 : vector<2x32xf32>
    %553 = vector.extract_strided_slice %552 {offsets = [0, 0], sizes = [1, 32], strides = [1, 1]} : vector<2x32xf32> to vector<1x32xf32>
    %c5 = arith.constant 5 : index
    %c0_113 = arith.constant 0 : index
    %554 = vector.load %arg6[%c5, %c0_113] : memref<16x32xf32, #tpu.memory_space<vmem>>, vector<1x32xf32>
    tpu.vector_store %arg6[%c5, %c0_113], %553 {strides = array<i32>} : memref<16x32xf32, #tpu.memory_space<vmem>>, vector<1x32xf32>,
    %555 = vector.extract_strided_slice %552 {offsets = [1, 0], sizes = [1, 32], strides = [1, 1]} : vector<2x32xf32> to vector<1x32xf32>
    %c13 = arith.constant 13 : index
    %c0_114 = arith.constant 0 : index
    %556 = vector.load %arg6[%c13, %c0_114] : memref<16x32xf32, #tpu.memory_space<vmem>>, vector<1x32xf32>
    tpu.vector_store %arg6[%c13, %c0_114], %555 {strides = array<i32>} : memref<16x32xf32, #tpu.memory_space<vmem>>, vector<1x32xf32>,
    %557 = tpu.concatenate %533, %513 in 1 : vector<2x32xf32>, vector<2x32xf32> -> vector<2x64xf32>
    %cst_115 = arith.constant dense<0.000000e+00> : vector<2x128xf32>
    %558 = tpu.matmul %557, %18, %cst_115 {dimension_numbers = #tpu.dot_dimension_numbers<[1], [0], [0], [1], [0, 0, 1, 1], [], []>} : vector<2x64xf32>, vector<64x128xf32>, vector<2x128xf32> -> vector<2x128xf32>
    %559 = vector.broadcast %22 : vector<1x128xf32> to vector<2x128xf32>
    %560 = arith.addf %558, %559 : vector<2x128xf32>
    %561 = arith.negf %560 : vector<2x128xf32>
    %562 = math.exp %561 : vector<2x128xf32>
    %cst_116 = arith.constant 1.000000e+00 : f32
    %563 = vector.broadcast %cst_116 : f32 to vector<2x128xf32>
    %564 = arith.addf %563, %562 : vector<2x128xf32>
    %565 = arith.divf %563, %564 : vector<2x128xf32>
    %566 = math.tanh %560 : vector<2x128xf32>
    %567 = vector.extract_strided_slice %565 {offsets = [0, 32], sizes = [2, 32], strides = [1, 1]} : vector<2x128xf32> to vector<2x32xf32>
    %568 = arith.mulf %567, %510 : vector<2x32xf32>
    %569 = vector.extract_strided_slice %565 {offsets = [0, 0], sizes = [2, 32], strides = [1, 1]} : vector<2x128xf32> to vector<2x32xf32>
    %570 = vector.extract_strided_slice %566 {offsets = [0, 64], sizes = [2, 32], strides = [1, 1]} : vector<2x128xf32> to vector<2x32xf32>
    %571 = arith.mulf %569, %570 : vector<2x32xf32>
    %572 = arith.addf %568, %571 : vector<2x32xf32>
    %573 = vector.extract_strided_slice %565 {offsets = [0, 96], sizes = [2, 32], strides = [1, 1]} : vector<2x128xf32> to vector<2x32xf32>
    %574 = math.tanh %572 : vector<2x32xf32>
    %575 = arith.mulf %573, %574 : vector<2x32xf32>
    %576 = vector.extract_strided_slice %158 {offsets = [7, 0], sizes = [1, 128], strides = [1, 1]} : vector<16x128xf32> to vector<1x128xf32>
    %577 = vector.extract_strided_slice %158 {offsets = [15, 0], sizes = [1, 128], strides = [1, 1]} : vector<16x128xf32> to vector<1x128xf32>
    %578 = tpu.concatenate %576, %577 in 0 : vector<1x128xf32>, vector<1x128xf32> -> vector<2x128xf32>
    %cst_117 = arith.constant dense<0.000000e+00> : vector<2x128xf32>
    %579 = tpu.matmul %533, %17, %cst_117 {dimension_numbers = #tpu.dot_dimension_numbers<[1], [0], [0], [1], [0, 0, 1, 1], [], []>} : vector<2x32xf32>, vector<32x128xf32>, vector<2x128xf32> -> vector<2x128xf32>
    %580 = arith.addf %578, %579 : vector<2x128xf32>
    %581 = arith.negf %580 : vector<2x128xf32>
    %582 = math.exp %581 : vector<2x128xf32>
    %cst_118 = arith.constant 1.000000e+00 : f32
    %583 = vector.broadcast %cst_118 : f32 to vector<2x128xf32>
    %584 = arith.addf %583, %582 : vector<2x128xf32>
    %585 = arith.divf %583, %584 : vector<2x128xf32>
    %586 = math.tanh %580 : vector<2x128xf32>
    %587 = vector.extract_strided_slice %585 {offsets = [0, 32], sizes = [2, 32], strides = [1, 1]} : vector<2x128xf32> to vector<2x32xf32>
    %588 = arith.mulf %587, %530 : vector<2x32xf32>
    %589 = vector.extract_strided_slice %585 {offsets = [0, 0], sizes = [2, 32], strides = [1, 1]} : vector<2x128xf32> to vector<2x32xf32>
    %590 = vector.extract_strided_slice %586 {offsets = [0, 64], sizes = [2, 32], strides = [1, 1]} : vector<2x128xf32> to vector<2x32xf32>
    %591 = arith.mulf %589, %590 : vector<2x32xf32>
    %592 = arith.addf %588, %591 : vector<2x32xf32>
    %593 = vector.extract_strided_slice %585 {offsets = [0, 96], sizes = [2, 32], strides = [1, 1]} : vector<2x128xf32> to vector<2x32xf32>
    %594 = math.tanh %592 : vector<2x32xf32>
    %595 = arith.mulf %593, %594 : vector<2x32xf32>
    %596 = tpu.concatenate %575, %552 in 1 : vector<2x32xf32>, vector<2x32xf32> -> vector<2x64xf32>
    %cst_119 = arith.constant dense<0.000000e+00> : vector<2x128xf32>
    %597 = tpu.matmul %596, %19, %cst_119 {dimension_numbers = #tpu.dot_dimension_numbers<[1], [0], [0], [1], [0, 0, 1, 1], [], []>} : vector<2x64xf32>, vector<64x128xf32>, vector<2x128xf32> -> vector<2x128xf32>
    %598 = vector.broadcast %23 : vector<1x128xf32> to vector<2x128xf32>
    %599 = arith.addf %597, %598 : vector<2x128xf32>
    %600 = arith.negf %599 : vector<2x128xf32>
    %601 = math.exp %600 : vector<2x128xf32>
    %cst_120 = arith.constant 1.000000e+00 : f32
    %602 = vector.broadcast %cst_120 : f32 to vector<2x128xf32>
    %603 = arith.addf %602, %601 : vector<2x128xf32>
    %604 = arith.divf %602, %603 : vector<2x128xf32>
    %605 = math.tanh %599 : vector<2x128xf32>
    %606 = vector.extract_strided_slice %604 {offsets = [0, 32], sizes = [2, 32], strides = [1, 1]} : vector<2x128xf32> to vector<2x32xf32>
    %607 = arith.mulf %606, %549 : vector<2x32xf32>
    %608 = vector.extract_strided_slice %604 {offsets = [0, 0], sizes = [2, 32], strides = [1, 1]} : vector<2x128xf32> to vector<2x32xf32>
    %609 = vector.extract_strided_slice %605 {offsets = [0, 64], sizes = [2, 32], strides = [1, 1]} : vector<2x128xf32> to vector<2x32xf32>
    %610 = arith.mulf %608, %609 : vector<2x32xf32>
    %611 = arith.addf %607, %610 : vector<2x32xf32>
    %612 = vector.extract_strided_slice %604 {offsets = [0, 96], sizes = [2, 32], strides = [1, 1]} : vector<2x128xf32> to vector<2x32xf32>
    %613 = math.tanh %611 : vector<2x32xf32>
    %614 = arith.mulf %612, %613 : vector<2x32xf32>
    %615 = vector.extract_strided_slice %614 {offsets = [0, 0], sizes = [1, 32], strides = [1, 1]} : vector<2x32xf32> to vector<1x32xf32>
    %c6 = arith.constant 6 : index
    %c0_121 = arith.constant 0 : index
    %616 = vector.load %arg6[%c6, %c0_121] : memref<16x32xf32, #tpu.memory_space<vmem>>, vector<1x32xf32>
    tpu.vector_store %arg6[%c6, %c0_121], %615 {strides = array<i32>} : memref<16x32xf32, #tpu.memory_space<vmem>>, vector<1x32xf32>,
    %617 = vector.extract_strided_slice %614 {offsets = [1, 0], sizes = [1, 32], strides = [1, 1]} : vector<2x32xf32> to vector<1x32xf32>
    %c14 = arith.constant 14 : index
    %c0_122 = arith.constant 0 : index
    %618 = vector.load %arg6[%c14, %c0_122] : memref<16x32xf32, #tpu.memory_space<vmem>>, vector<1x32xf32>
    tpu.vector_store %arg6[%c14, %c0_122], %617 {strides = array<i32>} : memref<16x32xf32, #tpu.memory_space<vmem>>, vector<1x32xf32>,
    %619 = tpu.concatenate %595, %575 in 1 : vector<2x32xf32>, vector<2x32xf32> -> vector<2x64xf32>
    %cst_123 = arith.constant dense<0.000000e+00> : vector<2x128xf32>
    %620 = tpu.matmul %619, %18, %cst_123 {dimension_numbers = #tpu.dot_dimension_numbers<[1], [0], [0], [1], [0, 0, 1, 1], [], []>} : vector<2x64xf32>, vector<64x128xf32>, vector<2x128xf32> -> vector<2x128xf32>
    %621 = vector.broadcast %22 : vector<1x128xf32> to vector<2x128xf32>
    %622 = arith.addf %620, %621 : vector<2x128xf32>
    %623 = arith.negf %622 : vector<2x128xf32>
    %624 = math.exp %623 : vector<2x128xf32>
    %cst_124 = arith.constant 1.000000e+00 : f32
    %625 = vector.broadcast %cst_124 : f32 to vector<2x128xf32>
    %626 = arith.addf %625, %624 : vector<2x128xf32>
    %627 = arith.divf %625, %626 : vector<2x128xf32>
    %628 = math.tanh %622 : vector<2x128xf32>
    %629 = vector.extract_strided_slice %627 {offsets = [0, 32], sizes = [2, 32], strides = [1, 1]} : vector<2x128xf32> to vector<2x32xf32>
    %630 = arith.mulf %629, %572 : vector<2x32xf32>
    %631 = vector.extract_strided_slice %627 {offsets = [0, 0], sizes = [2, 32], strides = [1, 1]} : vector<2x128xf32> to vector<2x32xf32>
    %632 = vector.extract_strided_slice %628 {offsets = [0, 64], sizes = [2, 32], strides = [1, 1]} : vector<2x128xf32> to vector<2x32xf32>
    %633 = arith.mulf %631, %632 : vector<2x32xf32>
    %634 = arith.addf %630, %633 : vector<2x32xf32>
    %635 = vector.extract_strided_slice %627 {offsets = [0, 96], sizes = [2, 32], strides = [1, 1]} : vector<2x128xf32> to vector<2x32xf32>
    %636 = math.tanh %634 : vector<2x32xf32>
    %637 = arith.mulf %635, %636 : vector<2x32xf32>
    %638 = tpu.concatenate %637, %614 in 1 : vector<2x32xf32>, vector<2x32xf32> -> vector<2x64xf32>
    %cst_125 = arith.constant dense<0.000000e+00> : vector<2x128xf32>
    %639 = tpu.matmul %638, %19, %cst_125 {dimension_numbers = #tpu.dot_dimension_numbers<[1], [0], [0], [1], [0, 0, 1, 1], [], []>} : vector<2x64xf32>, vector<64x128xf32>, vector<2x128xf32> -> vector<2x128xf32>
    %640 = vector.broadcast %23 : vector<1x128xf32> to vector<2x128xf32>
    %641 = arith.addf %639, %640 : vector<2x128xf32>
    %642 = arith.negf %641 : vector<2x128xf32>
    %643 = math.exp %642 : vector<2x128xf32>
    %cst_126 = arith.constant 1.000000e+00 : f32
    %644 = vector.broadcast %cst_126 : f32 to vector<2x128xf32>
    %645 = arith.addf %644, %643 : vector<2x128xf32>
    %646 = arith.divf %644, %645 : vector<2x128xf32>
    %647 = math.tanh %641 : vector<2x128xf32>
    %648 = vector.extract_strided_slice %646 {offsets = [0, 32], sizes = [2, 32], strides = [1, 1]} : vector<2x128xf32> to vector<2x32xf32>
    %649 = arith.mulf %648, %611 : vector<2x32xf32>
    %650 = vector.extract_strided_slice %646 {offsets = [0, 0], sizes = [2, 32], strides = [1, 1]} : vector<2x128xf32> to vector<2x32xf32>
    %651 = vector.extract_strided_slice %647 {offsets = [0, 64], sizes = [2, 32], strides = [1, 1]} : vector<2x128xf32> to vector<2x32xf32>
    %652 = arith.mulf %650, %651 : vector<2x32xf32>
    %653 = arith.addf %649, %652 : vector<2x32xf32>
    %654 = vector.extract_strided_slice %646 {offsets = [0, 96], sizes = [2, 32], strides = [1, 1]} : vector<2x128xf32> to vector<2x32xf32>
    %655 = math.tanh %653 : vector<2x32xf32>
    %656 = arith.mulf %654, %655 : vector<2x32xf32>
    %657 = vector.extract_strided_slice %656 {offsets = [0, 0], sizes = [1, 32], strides = [1, 1]} : vector<2x32xf32> to vector<1x32xf32>
    %c7 = arith.constant 7 : index
    %c0_127 = arith.constant 0 : index
    %658 = vector.load %arg6[%c7, %c0_127] : memref<16x32xf32, #tpu.memory_space<vmem>>, vector<1x32xf32>
    tpu.vector_store %arg6[%c7, %c0_127], %657 {strides = array<i32>} : memref<16x32xf32, #tpu.memory_space<vmem>>, vector<1x32xf32>,
    %659 = vector.extract_strided_slice %656 {offsets = [1, 0], sizes = [1, 32], strides = [1, 1]} : vector<2x32xf32> to vector<1x32xf32>
    %c15 = arith.constant 15 : index
    %c0_128 = arith.constant 0 : index
    %660 = vector.load %arg6[%c15, %c0_128] : memref<16x32xf32, #tpu.memory_space<vmem>>, vector<1x32xf32>
    tpu.vector_store %arg6[%c15, %c0_128], %659 {strides = array<i32>} : memref<16x32xf32, #tpu.memory_space<vmem>>, vector<1x32xf32>,
    %c0_129 = arith.constant 0 : index
    %c0_130 = arith.constant 0 : index
    %661 = vector.load %arg6[%c0_129, %c0_130] : memref<16x32xf32, #tpu.memory_space<vmem>>, vector<16x32xf32>
    %662 = math.tanh %661 : vector<16x32xf32>
    %663 = vector.broadcast %9 : vector<1x32xf32> to vector<16x32xf32>
    %664 = arith.mulf %662, %663 : vector<16x32xf32>
    %cst_131 = arith.constant dense<0.000000e+00> : vector<16xf32>
    %665 = vector.multi_reduction <add>, %664, %cst_131 [1] : vector<16x32xf32> to vector<16xf32>
    %666 = vector.shape_cast %665 : vector<16xf32> to vector<16x1xf32>
    %667 = vector.extract_strided_slice %666 {offsets = [0, 0], sizes = [8, 1], strides = [1, 1]} : vector<16x1xf32> to vector<8x1xf32>
    %cst_132 = arith.constant dense<0xFF800000> : vector<1xf32>
    %668 = vector.multi_reduction <maximumf>, %667, %cst_132 [0] : vector<8x1xf32> to vector<1xf32>
    %669 = vector.shape_cast %668 : vector<1xf32> to vector<1x1xf32>
    %670 = vector.broadcast %669 : vector<1x1xf32> to vector<8x1xf32>
    %671 = arith.subf %667, %670 : vector<8x1xf32>
    %672 = math.exp %671 : vector<8x1xf32>
    %cst_133 = arith.constant dense<0.000000e+00> : vector<1xf32>
    %673 = vector.multi_reduction <add>, %672, %cst_133 [0] : vector<8x1xf32> to vector<1xf32>
    %674 = vector.shape_cast %673 : vector<1xf32> to vector<1x1xf32>
    %675 = vector.broadcast %674 : vector<1x1xf32> to vector<8x1xf32>
    %676 = arith.divf %672, %675 : vector<8x1xf32>
    %677 = vector.extract_strided_slice %661 {offsets = [0, 0], sizes = [8, 32], strides = [1, 1]} : vector<16x32xf32> to vector<8x32xf32>
    %678 = vector.broadcast %676 : vector<8x1xf32> to vector<8x32xf32>
    %679 = arith.mulf %677, %678 : vector<8x32xf32>
    %cst_134 = arith.constant dense<0.000000e+00> : vector<32xf32>
    %680 = vector.multi_reduction <add>, %679, %cst_134 [0] : vector<8x32xf32> to vector<32xf32>
    %681 = vector.shape_cast %680 : vector<32xf32> to vector<1x32xf32>
    %682 = vector.extract_strided_slice %154 {offsets = [0, 0], sizes = [8, 128], strides = [1, 1]} : vector<16x128xf32> to vector<8x128xf32>
    %cst_135 = arith.constant dense<0xFF800000> : vector<128xf32>
    %683 = vector.multi_reduction <maximumf>, %682, %cst_135 [0] : vector<8x128xf32> to vector<128xf32>
    %684 = vector.shape_cast %683 : vector<128xf32> to vector<1x128xf32>
    %685 = tpu.concatenate %681, %684 in 1 : vector<1x32xf32>, vector<1x128xf32> -> vector<1x160xf32>
    %686 = vector.extract_strided_slice %666 {offsets = [8, 0], sizes = [8, 1], strides = [1, 1]} : vector<16x1xf32> to vector<8x1xf32>
    %cst_136 = arith.constant dense<0xFF800000> : vector<1xf32>
    %687 = vector.multi_reduction <maximumf>, %686, %cst_136 [0] : vector<8x1xf32> to vector<1xf32>
    %688 = vector.shape_cast %687 : vector<1xf32> to vector<1x1xf32>
    %689 = vector.broadcast %688 : vector<1x1xf32> to vector<8x1xf32>
    %690 = arith.subf %686, %689 : vector<8x1xf32>
    %691 = math.exp %690 : vector<8x1xf32>
    %cst_137 = arith.constant dense<0.000000e+00> : vector<1xf32>
    %692 = vector.multi_reduction <add>, %691, %cst_137 [0] : vector<8x1xf32> to vector<1xf32>
    %693 = vector.shape_cast %692 : vector<1xf32> to vector<1x1xf32>
    %694 = vector.broadcast %693 : vector<1x1xf32> to vector<8x1xf32>
    %695 = arith.divf %691, %694 : vector<8x1xf32>
    %696 = vector.extract_strided_slice %661 {offsets = [8, 0], sizes = [8, 32], strides = [1, 1]} : vector<16x32xf32> to vector<8x32xf32>
    %697 = vector.broadcast %695 : vector<8x1xf32> to vector<8x32xf32>
    %698 = arith.mulf %696, %697 : vector<8x32xf32>
    %cst_138 = arith.constant dense<0.000000e+00> : vector<32xf32>
    %699 = vector.multi_reduction <add>, %698, %cst_138 [0] : vector<8x32xf32> to vector<32xf32>
    %700 = vector.shape_cast %699 : vector<32xf32> to vector<1x32xf32>
    %701 = vector.extract_strided_slice %154 {offsets = [8, 0], sizes = [8, 128], strides = [1, 1]} : vector<16x128xf32> to vector<8x128xf32>
    %cst_139 = arith.constant dense<0xFF800000> : vector<128xf32>
    %702 = vector.multi_reduction <maximumf>, %701, %cst_139 [0] : vector<8x128xf32> to vector<128xf32>
    %703 = vector.shape_cast %702 : vector<128xf32> to vector<1x128xf32>
    %704 = tpu.concatenate %700, %703 in 1 : vector<1x32xf32>, vector<1x128xf32> -> vector<1x160xf32>
    %cst_140 = arith.constant dense<0.000000e+00> : vector<1x128xf32>
    %705 = tpu.matmul %685, %20, %cst_140 {dimension_numbers = #tpu.dot_dimension_numbers<[1], [0], [0], [1], [0, 0, 1, 1], [], []>} : vector<1x160xf32>, vector<160x128xf32>, vector<1x128xf32> -> vector<1x128xf32>
    %706 = arith.addf %705, %26 : vector<1x128xf32>
    %707 = tpu.concatenate %706, %704 in 1 : vector<1x128xf32>, vector<1x160xf32> -> vector<1x288xf32>
    %c0_141 = arith.constant 0 : index
    %c0_142 = arith.constant 0 : index
    %708 = vector.load %arg4[%c0_141, %c0_142] : memref<1x288xf32, #tpu.memory_space<vmem>>, vector<1x288xf32>
    tpu.vector_store %arg4[%c0_141, %c0_142], %707 {strides = array<i32>} : memref<1x288xf32, #tpu.memory_space<vmem>>, vector<1x288xf32>,
    return
  }
}

</mosaic_0001>

<bundles_post_ra>
// kernel: conv1d_lstm_all.1
= control target key start
LH: loop header
LB: loop body
LE: loop exit
PB: predicated region body
PF: predicated region fallthrough
CT: control target
= control target key end

     0   :  { %v175_v2 = vlaneseq  ;;  %s7578_s0 = inlined_call_operand.vmem [shape: f32[2,34,16], index: 0, kind: input, shape index: {}]   ;;  %s7579_s1 = inlined_call_operand.vmem [shape: f32[200,32], index: 1, kind: input, shape index: {}]   ;;  %s7580_s2 = inlined_call_operand.vmem [shape: f32[232,64], index: 2, kind: input, shape index: {}]   ;;  %s7581_s3 = inlined_call_operand.vmem [shape: f32[648,128], index: 3, kind: input, shape index: {}]   ;;  %s7582_s4 = inlined_call_operand.vmem [shape: f32[1,288], index: 4, kind: output, shape index: {0}]   ;;  %s7583_s5 = inlined_call_operand.hbm [shape: f32[16,128], index: 5, kind: output, shape index: {1}]  }
   0x1   :  { %v20_v0 = vld [vmem:[%s7579_s1] sm:$0xff]  ;;  %v21_v1 = vld [vmem:[%s7579_s1 + $0x8] sm:$0xff] }
   0x2   :  { %v6281_v3 = vpack.c.bf16 %v21_v1, %v20_v0  ;;  %v6284_v4 = vshrl.u32 %v175_v2, 7  ;;  %v44_v5 = vld [vmem:[%s7579_s1 + $0xc0] sm:$0x7]  ;;  %v165_v10 = vld [vmem:[%s7578_s0 + $0x8] sm:$0xff] }
   0x3   :  { %v164_v9 = vld [vmem:[%s7578_s0] sm:$0xff] }
   0x4   :  { %5506 = vmatprep.subr.bf16.mxu1 %v6281_v3  ;;  %v177_v6 = vsub.s32 0, %v6284_v4  ;;  %v185_v7 = vsub.s32 1, %v6284_v4  ;;  %v217_v8 = vsub.s32 2, %v6284_v4 }
   0x5   :  { %5508 = vmatpush3.bf16.msra.mxu1 %v6281_v3 }
   0x6   :  { %11 = vsyncpa [#allocation4], 0  ;;  %v6300_v11 = vrot.slane %v44_v5, %v177_v6  ;;  %v6302_v12 = vrot.slane %v44_v5, %v185_v7  ;;  %v6304_v13 = vrot.slane %v44_v5, %v217_v8  ;;  %v166_v14 = vld [vmem:[%s7578_s0 + $0x10] sm:$0xff]  ;;  %vm197_vm0 = vcmask 1046528   ;;  %v167_v19 = vld [vmem:[%s7578_s0 + $0x18] sm:$0xff]  ;;  %s6235_s7 = smov 32  }
   0x7   :  { %vm229_vm1 = vcmask 1045504   ;;  %vm305_vm2 = vcmask 130048   ;;  %v168_v24 = vld [vmem:[%s7578_s0 + $0x20] sm:$0x3]  ;;  %v4488_v37 = vld [vmem:[%s7578_s0 + $0x28] sm:$0xff]  ;;  %v4489_v46 = vld [vmem:[%s7578_s0 + $0x30] sm:$0xff] }
   0x8   :  { %v179_v15 = vmul.f32 %v6300_v11, %v164_v9  ;;  %v187_v16 = vmul.f32 %v6302_v12, %v164_v9  ;;  %v188_v17 = vmul.f32 %v6302_v12, %v165_v10  ;;  %v219_v18 = vmul.f32 %v6304_v13, %v164_v9  ;;  %v4490_v55 = vld [vmem:[%s7578_s0 + $0x38] sm:$0xff]  ;;  %v4491_v0 = vld [vmem:[%s7578_s0 + $0x40] sm:$0xff]  ;;  %s6236_s12 = smov 48   ;;  %s6237_s13 = smov 64  }
   0x9   :  { %v220_v20 = vmul.f32 %v6304_v13, %v165_v10  ;;  %v180_v21 = vmul.f32 %v6300_v11, %v165_v10  ;;  %v189_v22 = vmul.f32 %v6302_v12, %v166_v14  ;;  %v221_v23 = vmul.f32 %v6304_v13, %v166_v14  ;;  %s6241_s27 = smov [#allocation3]  }
   0xa   :  { %v198_v25 = vrot.slane %v187_v16, 1  ;;  %v199_v26 = vrot.slane %v188_v17, 1  ;;  %v230_v27 = vrot.slane %v219_v18, 2  ;;  %v181_v28 = vmul.f32 %v6300_v11, %v166_v14  ;;  %s4475_s28 = sshll.u32 %s6241_s27, 4  ;;  %s4476_s28 = int_to_ptr.vmem [resolvable:$true] %s4475_s28 }
   0xb   :  { %v231_v29 = vrot.slane %v220_v20, 2  ;;  %v201_v30 = vrot.slane %v189_v22, 1  ;;  %v233_v31 = vrot.slane %v221_v23, 2  ;;  %v190_v32 = vmul.f32 %v6302_v12, %v167_v19  ;;  %s6209_s29 = scalar_lea.vmem %s4476_s28, 256  ;;  %p6214_p1 = scmp.lt.s32.totalorder %s4476_s28, %s4476_s28 }
   0xc   :  { %v200_v33 = vsel %vm197_vm0, %v198_v25, %v199_v26  ;;  %v222_v34 = vmul.f32 %v6304_v13, %v167_v19  ;;  %v182_v35 = vmul.f32 %v6300_v11, %v167_v19  ;;  %v191_v36 = vmul.f32 %v6302_v12, %v168_v24  ;;  %p6210_p0 = scmp.ne.s32.totalorder %s4476_s28, %s6209_s29  ;;  %p6215_p2 = scmp.lt.s32.totalorder %s6209_s29, %s6209_s29 }
   0xd   :  { %v211_v38 = vadd.f32 %v200_v33, %v179_v15  ;;  %v232_v39 = vsel %vm229_vm1, %v230_v27, %v231_v29  ;;  %v202_v40 = vsel %vm197_vm0, %v199_v26, %v201_v30  ;;  %v234_v41 = vsel %vm229_vm1, %v231_v29, %v233_v31  ;;  %v4492_v15 = vld [vmem:[%s7578_s0 + $0x48] sm:$0x3]  ;;  %s6233_s0 = smov 112  }
   0xe   :  { %v212_v42 = vadd.f32 %v202_v40, %v180_v21  ;;  %v203_v43 = vrot.slane %v190_v32, 1  ;;  %v235_v44 = vrot.slane %v222_v34, 2  ;;  %v205_v45 = vrot.slane %v191_v36, 1  ;;  %p6216_p3 = por %p6215_p2, %p6214_p1 }
   0xf   :  { %v243_v47 = vadd.f32 %v232_v39, %v211_v38  ;;  %v223_v48 = vmul.f32 %v6304_v13, %v168_v24  ;;  %v247_v49 = vmul.f32 %v4488_v37, %v6300_v11  ;;  %v251_v50 = vmul.f32 %v4488_v37, %v6302_v12 }
  0x10   :  { %v244_v51 = vadd.f32 %v234_v41, %v212_v42  ;;  %v204_v52 = vsel %vm197_vm0, %v201_v30, %v203_v43  ;;  %v236_v53 = vsel %vm229_vm1, %v233_v31, %v235_v44  ;;  %v206_v54 = vsel %vm197_vm0, %v203_v43, %v205_v45  ;;  %p6217_p4 = pnand %p6216_p3, %p6210_p0 }
  0x11   :  { %4905 = vmatprep.mubr.msk.f32.mxu1 %vm305_vm2, %v243_v47  ;;  %v213_v56 = vadd.f32 %v204_v52, %v181_v28  ;;  %v214_v57 = vadd.f32 %v206_v54, %v182_v35  ;;  %v237_v58 = vrot.slane %v223_v48, 2  ;;  %v252_v59 = vmul.f32 %v4489_v46, %v6302_v12 }
  0x12   :  { %4906 = vmatmul.mubr.msk.f32.vlgmr.msra.gmra.mrb[0].mxu1 %vm305_vm2, %v244_v51  ;;  %v261_v60 = vrot.slane %v251_v50, 1  ;;  %v278_v61 = vmul.f32 %v4488_v37, %v6304_v13  ;;  %v279_v62 = vmul.f32 %v4489_v46, %v6304_v13  ;;  %v248_v63 = vmul.f32 %v4489_v46, %v6300_v11  ;;  %v48_v50 = vld [vmem:[%s7580_s2] sm:$0xff] }
  0x13   :  { %v245_v1 = vadd.f32 %v236_v53, %v213_v56  ;;  %v238_v5 = vsel %vm229_vm1, %v235_v44, %v237_v58  ;;  %v262_v6 = vrot.slane %v252_v59, 1  ;;  %v253_v7 = vmul.f32 %v4490_v55, %v6302_v12  ;;  %v56_v51 = vld [vmem:[%s7580_s2 + $0x40] sm:$0xff]  ;;  %v49_v59 = vld [vmem:[%s7580_s2 + $0x8] sm:$0xff] }
  0x14   :  { %v246_v8 = vadd.f32 %v238_v5, %v214_v57  ;;  %v288_v9 = vrot.slane %v278_v61, 2  ;;  %v289_v10 = vrot.slane %v279_v62, 2  ;;  %v280_v14 = vmul.f32 %v4490_v55, %v6304_v13  ;;  %v51_v61 = vld [vmem:[%s7580_s2 + $0x18] sm:$0xff]  ;;  %v52_v62 = vld [vmem:[%s7580_s2 + $0x20] sm:$0xff] }
  0x15   :  { %4908 = vmatprep.mubr.msk.f32.mxu1 %vm305_vm2, %v245_v1  ;;  %v263_v16 = vsel %vm197_vm0, %v261_v60, %v262_v6  ;;  %v264_v17 = vrot.slane %v253_v7, 1  ;;  %v249_v18 = vmul.f32 %v4490_v55, %v6300_v11  ;;  %v254_v19 = vmul.f32 %v4491_v0, %v6302_v12  ;;  %v50_v60 = vld [vmem:[%s7580_s2 + $0x10] sm:$0xff]  ;;  %v55_v1 = vld [vmem:[%s7580_s2 + $0x38] sm:$0xff] }
  0x16   :  { %4909 = vmatmul.mubr.msk.f32.gmra.mrb[2].mxu1 %vm305_vm2, %v246_v8  ;;  %v274_v20 = vadd.f32 %v263_v16, %v247_v49  ;;  %v290_v21 = vsel %vm229_vm1, %v288_v9, %v289_v10  ;;  %v291_v22 = vrot.slane %v280_v14, 2  ;;  %v281_v23 = vmul.f32 %v4491_v0, %v6304_v13 }
  0x17   :  { %v265_v24 = vsel %vm197_vm0, %v262_v6, %v264_v17  ;;  %v266_v25 = vrot.slane %v254_v19, 1  ;;  %v250_v26 = vmul.f32 %v4491_v0, %v6300_v11  ;;  %v255_v27 = vmul.f32 %v4492_v15, %v6302_v12  ;;  %v54_v0 = vld [vmem:[%s7580_s2 + $0x30] sm:$0xff] }
  0x18   :  { %v301_v28 = vadd.f32 %v290_v21, %v274_v20  ;;  %v275_v29 = vadd.f32 %v265_v24, %v248_v63  ;;  %v292_v30 = vsel %vm229_vm1, %v289_v10, %v291_v22  ;;  %v293_v31 = vrot.slane %v281_v23, 2  ;;  %v53_v63 = vld [vmem:[%s7580_s2 + $0x28] sm:$0xff] }
  0x19   :  { %v267_v32 = vsel %vm197_vm0, %v264_v17, %v266_v25  ;;  %v268_v33 = vrot.slane %v255_v27, 1  ;;  %v282_v34 = vmul.f32 %v4492_v15, %v6304_v13  ;;  %vm467_vm3 = vcmask 523264   ;;  %v57_v24 = vld [vmem:[%s7580_s2 + $0x48] sm:$0xff]  ;;  %v60_v27 = vld [vmem:[%s7580_s2 + $0x60] sm:$0xff] }
  0x1a   :  { %4911 = vmatprep.mubr.msk.f32.mxu1 %vm305_vm2, %v301_v28  ;;  %v302_v35 = vadd.f32 %v292_v30, %v275_v29  ;;  %v276_v36 = vadd.f32 %v267_v32, %v249_v18  ;;  %v294_v37 = vsel %vm229_vm1, %v291_v22, %v293_v31  ;;  %4933 = vmatprep.mubr.msk.f32.mxu0 %vm467_vm3, %v56_v51  ;;  %v61_v28 = vld [vmem:[%s7580_s2 + $0x68] sm:$0xff]  ;;  %v62_v29 = vld [vmem:[%s7580_s2 + $0x70] sm:$0xff]  ;;  %vm835_vm4 = vcmask 261120  }
  0x1b   :  { %v269_v11 = vsel %vm197_vm0, %v266_v25, %v268_v33  ;;  %v295_v38 = vrot.slane %v282_v34, 2  ;;  %v58_v25 = vld [vmem:[%s7580_s2 + $0x50] sm:$0xff]  ;;  %vm1036_vm5 = vcmask 1041408   ;;  %vm1069_vm6 = vcmask 1044480  }
  0x1c   :  { %4912 = vmatmul.mubr.msk.f32.gmra.mrb[4].mxu1 %vm305_vm2, %v302_v35  ;;  %v303_v12 = vadd.f32 %v294_v37, %v276_v36  ;;  %v277_v39 = vadd.f32 %v269_v11, %v250_v26  ;;  %v59_v26 = vld [vmem:[%s7580_s2 + $0x58] sm:$0xff]  ;;  %vm1081_vm7 = vcmask 1043456   ;;  %vm1097_vm8 = vcmask 392192  }
  0x1d   :  { %v296_v40 = vsel %vm229_vm1, %v293_v31, %v295_v38  ;;  %vm1166_vm9 = vcmask 654336   ;;  %vm1386_vm10 = vcmask 1040384   ;;  %vm1426_vm11 = vcmask 785408  }
  0x1e   :  { %4914 = vmatprep.mubr.msk.f32.mxu1 %vm305_vm2, %v303_v12  ;;  %v304_v41 = vadd.f32 %v296_v40, %v277_v39  ;;  %vm6239_vm12 = vmmov 0   ;;  %vm2149_vm13 = vcmask 253952   ;;  %vm2151_vm14 = vcmask 254977  }
  0x20   :  { %4915 = vmatmul.mubr.msk.f32.gmra.mrb[6].mxu1 %vm305_vm2, %v304_v41 }
  0x21   :  { %4961 = vmatprep.mubr.msk.f32.mxu1 %vm467_vm3, %v48_v50 }
  0xe5   :  { %v4907_v13 = vpop.f32.mrb[0].mxu1 }
  0xe6   :  { %v396_v42 = vpop.f32.mrb[1].mxu1 }
  0xe7   :  { %v5525_v43 = vpack.c.bf16 %v4907_v13, %v396_v42  ;;  %v5971_v44 = vpack.i.bf16 %v4907_v13, %v396_v42 }
  0xe9   :  { %5972 = vrot.lane.b32.xlu0 %v5971_v44, %s6233_s0  ;;  %v4910_v45 = vpop.f32.mrb[2].mxu1  ;;  %5526 = vmatprep.subr.bf16.mxu1 %v5525_v43 }
  0xea   :  { %v406_v46 = vpop.f32.mrb[3].mxu1  ;;  %5528 = vmatpush3.bf16.msra.mxu1 %v5525_v43 }
  0xeb   :  { %v5976_v47 = vpack.i.bf16 %v4910_v45, %v406_v46  ;;  %v5529_v48 = vpack.c.bf16 %v4910_v45, %v406_v46 }
  0xed   :  { %5977 = vrot.lane.b32.xlu0 %v5976_v47, %s6233_s0  ;;  %5530 = vmatprep.subr.bf16.mxu1 %v5529_v48 }
  0xee   :  { %5532 = vmatpush3.bf16.msra.mxu1 %v5529_v48 }
  0xef   :  { %v4913_v49 = vpop.f32.mrb[4].mxu1 }
  0xf0   :  { %v416_v52 = vpop.f32.mrb[5].mxu1 }
  0xf1   :  { %v5533_v53 = vpack.c.bf16 %v4913_v49, %v416_v52  ;;  %v5981_v54 = vpack.i.bf16 %v4913_v49, %v416_v52 }
  0xf3   :  { %5982 = vrot.lane.b32.xlu1 %v5981_v54, %s6233_s0  ;;  %v4916_v55 = vpop.f32.mrb[6].mxu1  ;;  %5534 = vmatprep.subr.bf16.mxu1 %v5533_v53 }
  0xf4   :  { %v426_v56 = vpop.f32.mrb[7].mxu1  ;;  %5536 = vmatpush3.bf16.msra.mxu1 %v5533_v53 }
  0xf5   :  { %v5986_v57 = vpack.i.bf16 %v4916_v55, %v426_v56  ;;  %v5537_v58 = vpack.c.bf16 %v4916_v55, %v426_v56  ;;  %v26_v55 = vld [vmem:[%s7579_s1 + $0x30] sm:$0xff] }
  0xf7   :  { %5987 = vrot.lane.b32.xlu1 %v5986_v57, %s6233_s0  ;;  %5538 = vmatprep.subr.bf16.mxu1 %v5537_v58 }
  0xf8   :  { %5540 = vmatpush3.bf16.msra.mxu1 %v5537_v58 }
  0xfb   :  { %4962 = vmatmul.mubr.msk.f32.vlgmr.msra.gmra.mrb[8].mxu1 %vm467_vm3, %v49_v59 }
  0xfc   :  { %4964 = vmatprep.mubr.msk.f32.mxu1 %vm467_vm3, %v50_v60 }
  0xff   :  { %4965 = vmatmul.mubr.msk.f32.gmra.mrb[10].mxu1 %vm467_vm3, %v51_v61 }
 0x100   :  { %4967 = vmatprep.mubr.msk.f32.mxu1 %vm467_vm3, %v52_v62 }
 0x103   :  { %4968 = vmatmul.mubr.msk.f32.gmra.mrb[12].mxu1 %vm467_vm3, %v53_v63 }
 0x104   :  { %4970 = vmatprep.mubr.msk.f32.mxu1 %vm467_vm3, %v54_v0 }
 0x107   :  { %4971 = vmatmul.mubr.msk.f32.gmra.mrb[14].mxu1 %vm467_vm3, %v55_v1 }
 0x15b   :  { %v5973_v5 = vpop.permute.xlu0 %5972 }
 0x15c   :  { %v5975_v6 = vunpack.i.h.bf16 %v5973_v5  ;;  %v5974_v7 = vunpack.i.l.bf16 %v5973_v5 }
 0x15e   :  { %v5509_v8 = vpack.c.bf16 %v5975_v6, %v5974_v7  ;;  %v27_v7 = vld [vmem:[%s7579_s1 + $0x38] sm:$0xff] }
 0x15f   :  { %v5978_v9 = vpop.permute.xlu0 %5977 }
 0x160   :  { %v5980_v10 = vunpack.i.h.bf16 %v5978_v9  ;;  %v5979_v14 = vunpack.i.l.bf16 %v5978_v9  ;;  %5510 = vmatprep.subr.bf16.mxu0 %v5509_v8  ;;  %v29_v9 = vld [vmem:[%s7579_s1 + $0x48] sm:$0xff] }
 0x161   :  { %5512 = vmatpush3.bf16.msra.mxu0 %v5509_v8  ;;  %v28_v8 = vld [vmem:[%s7579_s1 + $0x40] sm:$0xff] }
 0x162   :  { %v5513_v15 = vpack.c.bf16 %v5980_v10, %v5979_v14  ;;  %v22_v10 = vld [vmem:[%s7579_s1 + $0x10] sm:$0xff]  ;;  %v23_v14 = vld [vmem:[%s7579_s1 + $0x18] sm:$0xff] }
 0x164   :  { %5514 = vmatprep.subr.bf16.mxu0 %v5513_v15 }
 0x165   :  { %v5983_v16 = vpop.permute.xlu1 %5982  ;;  %5516 = vmatpush3.bf16.msra.mxu0 %v5513_v15  ;;  %v24_v15 = vld [vmem:[%s7579_s1 + $0x20] sm:$0xff] }
 0x166   :  { %v5985_v17 = vunpack.i.h.bf16 %v5983_v16  ;;  %v5984_v18 = vunpack.i.l.bf16 %v5983_v16  ;;  %v25_v16 = vld [vmem:[%s7579_s1 + $0x28] sm:$0xff] }
 0x168   :  { %v5517_v19 = vpack.c.bf16 %v5985_v17, %v5984_v18  ;;  %v30_v17 = vld [vmem:[%s7579_s1 + $0x50] sm:$0xff]  ;;  %v31_v18 = vld [vmem:[%s7579_s1 + $0x58] sm:$0xff] }
 0x169   :  { %v5988_v20 = vpop.permute.xlu1 %5987 }
 0x16a   :  { %v5990_v21 = vunpack.i.h.bf16 %v5988_v20  ;;  %v5989_v22 = vunpack.i.l.bf16 %v5988_v20  ;;  %5518 = vmatprep.subr.bf16.mxu0 %v5517_v19  ;;  %v5561_v20 = vpack.c.bf16 %v31_v18, %v30_v17 }
 0x16b   :  { %5520 = vmatpush3.bf16.msra.mxu0 %v5517_v19  ;;  %v32_v19 = vld [vmem:[%s7579_s1 + $0x60] sm:$0xff] }
 0x16c   :  { %v5521_v23 = vpack.c.bf16 %v5990_v21, %v5989_v22  ;;  %v33_v21 = vld [vmem:[%s7579_s1 + $0x68] sm:$0xff]  ;;  %5562 = vmatprep.subr.bf16.mxu1 %v5561_v20 }
 0x16d   :  { %v5565_v22 = vpack.c.bf16 %v33_v21, %v32_v19  ;;  %5564 = vmatpush3.bf16.msra.mxu1 %v5561_v20 }
 0x16e   :  { %5522 = vmatprep.subr.bf16.mxu0 %v5521_v23 }
 0x16f   :  { %5524 = vmatpush3.bf16.msra.mxu0 %v5521_v23  ;;  %5566 = vmatprep.subr.bf16.mxu1 %v5565_v22  ;;  %v34_v23 = vld [vmem:[%s7579_s1 + $0x70] sm:$0xff] }
 0x170   :  { %5542 = vmatprep.subr.bf16.mxu0 %v6281_v3 }
 0x171   :  { %5568 = vmatpush3.bf16.msra.mxu1 %v5565_v22 }
 0x172   :  { %4934 = vmatmul.mubr.msk.f32.vlgmr.msra.gmra.mrb[0].mxu0 %vm467_vm3, %v57_v24  ;;  %v35_v24 = vld [vmem:[%s7579_s1 + $0x78] sm:$0xff] }
 0x173   :  { %4936 = vmatprep.mubr.msk.f32.mxu0 %vm467_vm3, %v58_v25  ;;  %5544 = vmatpush3.bf16.msra.mxu0 %v6281_v3  ;;  %v63_v3 = vld [vmem:[%s7580_s2 + $0x78] sm:$0xff]  ;;  %v5569_v25 = vpack.c.bf16 %v35_v24, %v34_v23 }
 0x175   :  { %5570 = vmatprep.subr.bf16.mxu1 %v5569_v25 }
 0x176   :  { %4937 = vmatmul.mubr.msk.f32.gmra.mrb[2].mxu0 %vm467_vm3, %v59_v26  ;;  %5572 = vmatpush3.bf16.msra.mxu1 %v5569_v25 }
 0x177   :  { %4939 = vmatprep.mubr.msk.f32.mxu0 %vm467_vm3, %v60_v27 }
 0x17a   :  { %4940 = vmatmul.mubr.msk.f32.gmra.mrb[4].mxu0 %vm467_vm3, %v61_v28 }
 0x17b   :  { %4942 = vmatprep.mubr.msk.f32.mxu0 %vm467_vm3, %v62_v29  ;;  %v36_v29 = vld [vmem:[%s7579_s1 + $0x80] sm:$0xff] }
 0x17e   :  { %4943 = vmatmul.mubr.msk.f32.gmra.mrb[6].mxu0 %vm467_vm3, %v63_v3  ;;  %v37_v3 = vld [vmem:[%s7579_s1 + $0x88] sm:$0xff] }
 0x1ce   :  { %v4963_v30 = vpop.f32.mrb[8].mxu1 }
 0x1cf   :  { %v683_v31 = vpop.f32.mrb[9].mxu1 }
 0x1d2   :  { %v4966_v32 = vpop.f32.mrb[10].mxu1 }
 0x1d3   :  { %v692_v33 = vpop.f32.mrb[11].mxu1 }
 0x1d6   :  { %v4969_v34 = vpop.f32.mrb[12].mxu1 }
 0x1d7   :  { %v701_v35 = vpop.f32.mrb[13].mxu1 }
 0x1da   :  { %v4972_v36 = vpop.f32.mrb[14].mxu1 }
 0x1db   :  { %v710_v37 = vpop.f32.mrb[15].mxu1 }
 0x245   :  { %v4935_v11 = vpop.f32.mrb[0].mxu0 }
 0x246   :  { %v558_v38 = vpop.f32.mrb[1].mxu0 }
 0x247   :  { %v684_v12 = vadd.f32 %v683_v31, %v558_v38  ;;  %v5573_v31 = vpack.c.bf16 %v37_v3, %v36_v29 }
 0x249   :  { %v718_v39 = vmul.f32 0.044194173, %v684_v12  ;;  %v4938_v40 = vpop.f32.mrb[2].mxu0  ;;  %5574 = vmatprep.subr.bf16.mxu1 %v5573_v31 }
 0x24a   :  { %v697_v41 = vadd.f32 %v4966_v32, %v4938_v40  ;;  %v567_v13 = vpop.f32.mrb[3].mxu0  ;;  %5576 = vmatpush3.bf16.msra.mxu1 %v5573_v31 }
 0x24b   :  { %4977 = vmatprep.mubr.msk.f32.mxu0 %vm305_vm2, %v718_v39 }
 0x24c   :  { %v719_v42 = vmul.f32 0.044194173, %v697_v41 }
 0x24d   :  { %v4941_v43 = vpop.f32.mrb[4].mxu0 }
 0x24e   :  { %v576_v44 = vpop.f32.mrb[5].mxu0  ;;  %4978 = vmatmul.mubr.msk.f32.vlgmr.msra.gmra.mrb[8].mxu0 %vm305_vm2, %v719_v42 }
 0x24f   :  { %v702_v45 = vadd.f32 %v701_v35, %v576_v44 }
 0x251   :  { %v720_v46 = vmul.f32 0.044194173, %v702_v45  ;;  %v4944_v47 = vpop.f32.mrb[6].mxu0 }
 0x252   :  { %v715_v48 = vadd.f32 %v4972_v36, %v4944_v47  ;;  %v585_v49 = vpop.f32.mrb[7].mxu0 }
 0x253   :  { %4980 = vmatprep.mubr.msk.f32.mxu0 %vm305_vm2, %v720_v46 }
 0x254   :  { %v721_v50 = vmul.f32 0.044194173, %v715_v48 }
 0x256   :  { %4981 = vmatmul.mubr.msk.f32.gmra.mrb[10].mxu0 %vm305_vm2, %v721_v50 }
 0x257   :  { %4991 = vmatprep.mubr.msk.f32.mxu0 %vm835_vm4, %v26_v55  ;;  %v39_v55 = vld [vmem:[%s7579_s1 + $0x98] sm:$0xff] }
 0x321   :  { %v4979_v51 = vpop.f32.mrb[8].mxu0 }
 0x322   :  { %v800_v52 = vpop.f32.mrb[9].mxu0 }
 0x323   :  { %v5991_v53 = vpack.i.bf16 %v4979_v51, %v800_v52  ;;  %v5553_v54 = vpack.c.bf16 %v4979_v51, %v800_v52 }
 0x325   :  { %5992 = vrot.lane.b32.xlu0 %v5991_v53, %s6233_s0 }
 0x329   :  { %v4982_v56 = vpop.f32.mrb[10].mxu0 }
 0x32a   :  { %v810_v57 = vpop.f32.mrb[11].mxu0 }
 0x32b   :  { %v5996_v58 = vpack.i.bf16 %v4982_v56, %v810_v57  ;;  %v5557_v59 = vpack.c.bf16 %v4982_v56, %v810_v57 }
 0x32d   :  { %5997 = vrot.lane.b32.xlu1 %v5996_v58, %s6233_s0  ;;  %s6234_s0 = smov 16  }
 0x397   :  { %v5993_v60 = vpop.permute.xlu0 %5992 }
 0x398   :  { %v5995_v61 = vunpack.i.h.bf16 %v5993_v60  ;;  %v5994_v62 = vunpack.i.l.bf16 %v5993_v60 }
 0x39a   :  { %v5545_v63 = vpack.c.bf16 %v5995_v61, %v5994_v62 }
 0x39c   :  { %5546 = vmatprep.subr.bf16.mxu0 %v5545_v63 }
 0x39d   :  { %5548 = vmatpush3.bf16.msra.mxu0 %v5545_v63 }
 0x39f   :  { %v5998_v0 = vpop.permute.xlu1 %5997 }
 0x3a0   :  { %v6000_v1 = vunpack.i.h.bf16 %v5998_v0  ;;  %v5999_v5 = vunpack.i.l.bf16 %v5998_v0 }
 0x3a2   :  { %v5549_v6 = vpack.c.bf16 %v6000_v1, %v5999_v5 }
 0x3a4   :  { %5550 = vmatprep.subr.bf16.mxu0 %v5549_v6 }
 0x3a5   :  { %5552 = vmatpush3.bf16.msra.mxu0 %v5549_v6 }
 0x3a6   :  { %5554 = vmatprep.subr.bf16.mxu0 %v5553_v54 }
 0x3a8   :  { %4992 = vmatmul.mubr.msk.f32.vlgmr.msra.gmra.mrb[12].mxu0 %vm835_vm4, %v27_v7 }
 0x3a9   :  { %5556 = vmatpush3.bf16.msra.mxu0 %v5553_v54  ;;  %4994 = vmatprep.mubr.msk.f32.mxu0 %vm835_vm4, %v28_v8  ;;  %v38_v54 = vld [vmem:[%s7579_s1 + $0x90] sm:$0xff] }
 0x3aa   :  { %5558 = vmatprep.subr.bf16.mxu0 %v5557_v59  ;;  %v5577_v61 = vpack.c.bf16 %v39_v55, %v38_v54 }
 0x3ac   :  { %4995 = vmatmul.mubr.msk.f32.gmra.mrb[14].mxu0 %vm835_vm4, %v29_v9  ;;  %5578 = vmatprep.subr.bf16.mxu1 %v5577_v61 }
 0x3ad   :  { %5560 = vmatpush3.bf16.msra.mxu0 %v5557_v59  ;;  %5005 = vmatprep.mubr.msk.f32.mxu0 %vm835_vm4, %v22_v10 }
 0x3ae   :  { %5580 = vmatpush3.bf16.msra.mxu1 %v5577_v61 }
 0x3b0   :  { %5006 = vmatmul.mubr.msk.f32.vlgmr.msra.gmra.mrb[12].mxu0 %vm835_vm4, %v23_v14 }
 0x3b1   :  { %5008 = vmatprep.mubr.msk.f32.mxu0 %vm835_vm4, %v24_v15 }
 0x3b4   :  { %5009 = vmatmul.mubr.msk.f32.gmra.mrb[14].mxu0 %vm835_vm4, %v25_v16 }
 0x483   :  { %v5007_v26 = vpop.f32.mrb[12].mxu0 }
 0x484   :  { %v1031_v27 = vmul.f32 0.0625, %v5007_v26  ;;  %v1011_v28 = vpop.f32.mrb[13].mxu0 }
 0x485   :  { %v1030_v30 = vmul.f32 0.0625, %v1011_v28 }
 0x486   :  { %v1038_v32 = vrot.slane %v1031_v27, 6 }
 0x487   :  { %v1037_v33 = vrot.slane %v1030_v30, 6  ;;  %v5010_v34 = vpop.f32.mrb[14].mxu0 }
 0x488   :  { %v1044_v35 = vsel %vm1036_vm5, %v1038_v32, 0.0  ;;  %v1033_v36 = vmul.f32 0.0625, %v5010_v34  ;;  %v1021_v37 = vpop.f32.mrb[15].mxu0 }
 0x489   :  { %v6516_v11 = vsel %vm1036_vm5, %v1037_v33, %v1038_v32  ;;  %v6519_v38 = vsel %vm1036_vm5, 0.0, %v1037_v33  ;;  %v1032_v12 = vmul.f32 0.0625, %v1021_v37  ;;  %v1050_v39 = vrot.slane %v1044_v35, 1 }
 0x48a   :  { %v1105_v40 = vrot.slane %v1033_v36, 6  ;;  %v1048_v41 = vrot.slane %v6516_v11, 1  ;;  %v1047_v13 = vrot.slane %v6519_v38, 1  ;;  %v1059_v43 = vrot.slane %v6516_v11, 2 }
 0x48b   :  { %v1104_v42 = vrot.slane %v1032_v12, 6  ;;  %v1061_v46 = vrot.slane %v1044_v35, 2  ;;  %v1058_v47 = vrot.slane %v6519_v38, 2  ;;  %v1071_v49 = vrot.slane %v6516_v11, 3 }
 0x48c   :  { %v1051_v44 = vsel %vm197_vm0, %v1048_v41, %v1050_v39  ;;  %v1049_v45 = vsel %vm197_vm0, %v1047_v13, %v1048_v41  ;;  %v1073_v50 = vrot.slane %v1044_v35, 3  ;;  %v1070_v53 = vrot.slane %v6519_v38, 3 }
 0x48d   :  { %v6528_v48 = vsel %vm1036_vm5, %v1104_v42, %v1105_v40  ;;  %1054 = vrot.lane.b32.xlu1 %v1051_v44, %s6234_s0  ;;  %1052 = vrot.lane.b32.xlu0 %v1049_v45, %s6234_s0  ;;  %v1062_v51 = vsel %vm229_vm1, %v1059_v43, %v1061_v46  ;;  %v1060_v52 = vsel %vm229_vm1, %v1058_v47, %v1059_v43  ;;  %v1083_v57 = vrot.slane %v6516_v11, 4 }
 0x48e   :  { %v1074_v56 = vsel %vm1069_vm6, %v1071_v49, %v1073_v50  ;;  %v1072_v58 = vsel %vm1069_vm6, %v1070_v53, %v1071_v49  ;;  %v1085_v59 = vrot.slane %v1044_v35, 4  ;;  %v1082_v60 = vrot.slane %v6519_v38, 4 }
 0x48f   :  { %v1111_v62 = vsel %vm1036_vm5, %v1105_v40, 0.0  ;;  %v6550_v63 = vsel %vm1036_vm5, 0.0, %v1104_v42  ;;  %v1115_v0 = vrot.slane %v6528_v48, 1  ;;  %v1126_v8 = vrot.slane %v6528_v48, 2 }
 0x490   :  { %v1086_v1 = vsel %vm1081_vm7, %v1083_v57, %v1085_v59  ;;  %v1084_v5 = vsel %vm1081_vm7, %v1082_v60, %v1083_v57  ;;  %v1117_v6 = vrot.slane %v1111_v62, 1  ;;  %v1114_v7 = vrot.slane %v6550_v63, 1  ;;  %v4533_v57 = vld [vmem:[%s7579_s1 + $0xc3] ss:$0 sm:$0xff] }
 0x491   :  { %1065 = vrot.lane.b32.xlu1 %v1062_v51, %s6235_s7  ;;  %1063 = vrot.lane.b32.xlu0 %v1060_v52, %s6235_s7  ;;  %v1128_v9 = vrot.slane %v1111_v62, 2  ;;  %v1125_v15 = vrot.slane %v6550_v63, 2  ;;  %v1137_v18 = vrot.slane %v6528_v48, 3  ;;  %v1139_v19 = vrot.slane %v1111_v62, 3 }
 0x492   :  { %v1118_v10 = vsel %vm197_vm0, %v1115_v0, %v1117_v6  ;;  %v1116_v14 = vsel %vm197_vm0, %v1114_v7, %v1115_v0  ;;  %v1136_v20 = vrot.slane %v6550_v63, 3  ;;  %v1148_v21 = vrot.slane %v6528_v48, 4 }
 0x493   :  { %v1129_v16 = vsel %vm229_vm1, %v1126_v8, %v1128_v9  ;;  %v1127_v17 = vsel %vm229_vm1, %v1125_v15, %v1126_v8  ;;  %v1140_v22 = vsel %vm1069_vm6, %v1137_v18, %v1139_v19  ;;  %v1150_v24 = vrot.slane %v1111_v62, 4  ;;  %v41_v19 = vld [vmem:[%s7579_s1 + $0xa8] sm:$0xff] }
 0x494   :  { %v1138_v23 = vsel %vm1069_vm6, %v1136_v20, %v1137_v18  ;;  %v1147_v25 = vrot.slane %v6550_v63, 4  ;;  %v42_v20 = vld [vmem:[%s7579_s1 + $0xb0] sm:$0xff] }
 0x495   :  { %1077 = vrot.lane.b32.xlu1 %v1074_v56, %s6236_s12  ;;  %1075 = vrot.lane.b32.xlu0 %v1072_v58, %s6236_s12  ;;  %v1151_v26 = vsel %vm1081_vm7, %v1148_v21, %v1150_v24  ;;  %v4534_v58 = vld [vmem:[%s7579_s1 + $0xc4] ss:$0 sm:$0xff]  ;;  %v66_v24 = vld [vmem:[%s7580_s2 + $0x90] sm:$0xff] }
 0x496   :  { %v1149_v27 = vsel %vm1081_vm7, %v1147_v25, %v1148_v21  ;;  %v43_v21 = vld [vmem:[%s7579_s1 + $0xb8] sm:$0xff] }
 0x499   :  { %1089 = vrot.lane.b32.xlu1 %v1086_v1, %s6237_s13  ;;  %1087 = vrot.lane.b32.xlu0 %v1084_v5, %s6237_s13 }
 0x49d   :  { %1121 = vrot.lane.b32.xlu1 %v1118_v10, %s6234_s0  ;;  %1119 = vrot.lane.b32.xlu0 %v1116_v14, %s6234_s0 }
 0x4a1   :  { %1132 = vrot.lane.b32.xlu1 %v1129_v16, %s6235_s7  ;;  %1130 = vrot.lane.b32.xlu0 %v1127_v17, %s6235_s7 }
 0x4a5   :  { %1143 = vrot.lane.b32.xlu1 %v1140_v22, %s6236_s12  ;;  %1141 = vrot.lane.b32.xlu0 %v1138_v23, %s6236_s12  ;;  %v64_v22 = vld [vmem:[%s7580_s2 + $0x80] sm:$0xff]  ;;  %v65_v23 = vld [vmem:[%s7580_s2 + $0x88] sm:$0xff] }
 0x4a6   :  { %v5589_v25 = vpack.c.bf16 %v65_v23, %v64_v22  ;;  %v86_v23 = vld [vmem:[%s7581_s3 + $0x40] sm:$0xff] }
 0x4a9   :  { %1154 = vrot.lane.b32.xlu1 %v1151_v26, %s6237_s13  ;;  %1152 = vrot.lane.b32.xlu0 %v1149_v27, %s6237_s13  ;;  %v67_v26 = vld [vmem:[%s7580_s2 + $0x98] sm:$0xff] }
 0x4aa   :  { %v5593_v27 = vpack.c.bf16 %v67_v26, %v66_v24  ;;  %v87_v24 = vld [vmem:[%s7581_s3 + $0x48] sm:$0xff]  ;;  %v88_v26 = vld [vmem:[%s7581_s3 + $0x50] sm:$0xff] }
 0x4ff   :  { %v1055_v28 = vpop.permute.xlu1 %1054  ;;  %v1053_v29 = vpop.permute.xlu0 %1052 }
 0x500   :  { %v1094_v33 = vsel %vm305_vm2, %v6516_v11, %v1055_v28  ;;  %v1093_v34 = vsel %vm305_vm2, %v6519_v38, %v1053_v29  ;;  %v68_v28 = vld [vmem:[%s7580_s2 + $0xa0] sm:$0xff]  ;;  %v69_v29 = vld [vmem:[%s7580_s2 + $0xa8] sm:$0xff] }
 0x503   :  { %v1066_v3 = vpop.permute.xlu1 %1065  ;;  %v1064_v30 = vpop.permute.xlu0 %1063 }
 0x504   :  { %v1096_v35 = vsel %vm835_vm4, %v1094_v33, %v1066_v3  ;;  %v1095_v36 = vsel %vm835_vm4, %v1093_v34, %v1064_v30  ;;  %v5597_v3 = vpack.c.bf16 %v69_v29, %v68_v28  ;;  %v70_v30 = vld [vmem:[%s7580_s2 + $0xb0] sm:$0xff]  ;;  %v72_v33 = vld [vmem:[%s7580_s2 + $0xc0] sm:$0xff]  ;;  %v73_v34 = vld [vmem:[%s7580_s2 + $0xc8] sm:$0xff] }
 0x505   :  { %v90_v29 = vld [vmem:[%s7581_s3 + $0x60] sm:$0xff] }
 0x507   :  { %v1078_v31 = vpop.permute.xlu1 %1077  ;;  %v1076_v32 = vpop.permute.xlu0 %1075 }
 0x508   :  { %v1099_v37 = vsel %vm1097_vm8, %v1096_v35, %v1078_v31  ;;  %v1098_v12 = vsel %vm1097_vm8, %v1095_v36, %v1076_v32  ;;  %v71_v31 = vld [vmem:[%s7580_s2 + $0xb8] sm:$0xff]  ;;  %v5605_v35 = vpack.c.bf16 %v73_v34, %v72_v33  ;;  %v94_v34 = vld [vmem:[%s7581_s3 + $0x80] sm:$0xff] }
 0x509   :  { %v5601_v32 = vpack.c.bf16 %v71_v31, %v70_v30  ;;  %v92_v31 = vld [vmem:[%s7581_s3 + $0x70] sm:$0xff] }
 0x50b   :  { %v1090_v39 = vpop.permute.xlu1 %1089  ;;  %v1088_v40 = vpop.permute.xlu0 %1087 }
 0x50c   :  { %v1101_v41 = vsel %vm467_vm3, %v1099_v37, %v1090_v39  ;;  %v1100_v13 = vsel %vm467_vm3, %v1098_v12, %v1088_v40  ;;  %v74_v12 = vld [vmem:[%s7580_s2 + $0xd0] sm:$0xff]  ;;  %v75_v39 = vld [vmem:[%s7580_s2 + $0xd8] sm:$0xff] }
 0x50d   :  { %5031 = vmatprep.mubr.msk.f32.mxu1 %vm1166_vm9, %v1100_v13  ;;  %v5609_v40 = vpack.c.bf16 %v75_v39, %v74_v12  ;;  %v97_v12 = vld [vmem:[%s7581_s3 + $0x98] sm:$0xff] }
 0x50e   :  { %5032 = vmatmul.mubr.msk.f32.vlgmr.msra.gmra.mrb[16].mxu1 %vm1166_vm9, %v1101_v41 }
 0x50f   :  { %v1122_v11 = vpop.permute.xlu1 %1121  ;;  %v1120_v38 = vpop.permute.xlu0 %1119 }
 0x510   :  { %v1159_v46 = vsel %vm305_vm2, %v6528_v48, %v1122_v11  ;;  %v1158_v47 = vsel %vm305_vm2, %v6550_v63, %v1120_v38  ;;  %v40_v48 = vld [vmem:[%s7579_s1 + $0xa0] sm:$0xff] }
 0x511   :  { %5045 = vmatprep.mubr.msk.f32.mxu0 %vm835_vm4, %v40_v48 }
 0x513   :  { %v1133_v42 = vpop.permute.xlu1 %1132  ;;  %v1131_v43 = vpop.permute.xlu0 %1130 }
 0x514   :  { %v1161_v49 = vsel %vm835_vm4, %v1159_v46, %v1133_v42  ;;  %v1160_v50 = vsel %vm835_vm4, %v1158_v47, %v1131_v43 }
 0x517   :  { %v1144_v44 = vpop.permute.xlu1 %1143  ;;  %v1142_v45 = vpop.permute.xlu0 %1141 }
 0x518   :  { %v1163_v51 = vsel %vm1097_vm8, %v1161_v49, %v1144_v44  ;;  %v1162_v52 = vsel %vm1097_vm8, %v1160_v50, %v1142_v45 }
 0x51b   :  { %v1155_v53 = vpop.permute.xlu1 %1154  ;;  %v1153_v54 = vpop.permute.xlu0 %1152 }
 0x51c   :  { %v1165_v55 = vsel %vm467_vm3, %v1163_v51, %v1155_v53  ;;  %v1164_v56 = vsel %vm467_vm3, %v1162_v52, %v1153_v54 }
 0x51d   :  { %5034 = vmatprep.mubr.msk.f32.mxu1 %vm1166_vm9, %v1164_v56 }
 0x51e   :  { %5035 = vmatmul.mubr.msk.f32.gmra.mrb[18].mxu1 %vm1166_vm9, %v1165_v55 }
 0x5e1   :  { %v5033_v59 = vpop.f32.mrb[16].mxu1 }
 0x5e2   :  { %v1269_v60 = vmul.f32 %v5033_v59, %v4533_v57  ;;  %v1245_v61 = vpop.f32.mrb[17].mxu1 }
 0x5e3   :  { %v1268_v62 = vmul.f32 %v4533_v57, %v1245_v61 }
 0x5e4   :  { %v1277_v63 = vadd.f32 %v4534_v58, %v1269_v60 }
 0x5e5   :  { %v1276_v0 = vadd.f32 %v4534_v58, %v1268_v62 }
 0x5e6   :  { %v1281_v1 = vmax.f32 %v1277_v63, 0.0 }
 0x5e7   :  { %v1280_v5 = vmax.f32 %v1276_v0, 0.0 }
 0x5e9   :  { %v5581_v6 = vpack.c.bf16 %v1281_v1, %v1280_v5 }
 0x5eb   :  { %5582 = vmatprep.subr.bf16.mxu0 %v5581_v6 }
 0x5ec   :  { %5584 = vmatpush3.bf16.msra.mxu0 %v5581_v6 }
 0x5f1   :  { %v5036_v7 = vpop.f32.mrb[18].mxu1 }
 0x5f2   :  { %v1271_v8 = vmul.f32 %v5036_v7, %v4533_v57  ;;  %v1255_v9 = vpop.f32.mrb[19].mxu1  ;;  %v78_v7 = vld [vmem:[%s7581_s3] sm:$0xff] }
 0x5f3   :  { %v1270_v10 = vmul.f32 %v4533_v57, %v1255_v9  ;;  %v80_v9 = vld [vmem:[%s7581_s3 + $0x10] sm:$0xff] }
 0x5f4   :  { %v1279_v14 = vadd.f32 %v4534_v58, %v1271_v8  ;;  %v79_v8 = vld [vmem:[%s7581_s3 + $0x8] sm:$0xff] }
 0x5f5   :  { %v1278_v15 = vadd.f32 %v4534_v58, %v1270_v10  ;;  %v6238_v10 = vmov 0.0|0.0  }
 0x5f6   :  { %v1283_v16 = vmax.f32 %v1279_v14, 0.0  ;;  %5613 = vmatprep.subr.bf16.mxu1 %v6238_v10  ;;  %v5614_v14 = vpack.c.bf16 %v79_v8, %v78_v7 }
 0x5f7   :  { %v1282_v17 = vmax.f32 %v1278_v15, 0.0  ;;  %v81_v15 = vld [vmem:[%s7581_s3 + $0x18] sm:$0xff] }
 0x5f8   :  { %5615 = vmatpush1.bf16.msra.mxu1 %v5614_v14 }
 0x5f9   :  { %v5585_v18 = vpack.c.bf16 %v1283_v16, %v1282_v17  ;;  %v5617_v16 = vpack.c.bf16 %v81_v15, %v80_v9  ;;  %5616 = vmatprep.subr.bf16.mxu1 %v6238_v10  ;;  %v82_v17 = vld [vmem:[%s7581_s3 + $0x20] sm:$0xff] }
 0x5fb   :  { %5586 = vmatprep.subr.bf16.mxu0 %v5585_v18 }
 0x5fc   :  { %5588 = vmatpush3.bf16.msra.mxu0 %v5585_v18  ;;  %v83_v18 = vld [vmem:[%s7581_s3 + $0x28] sm:$0xff]  ;;  %5618 = vmatpush1.bf16.msra.mxu1 %v5617_v16 }
 0x5fd   :  { %5590 = vmatprep.subr.bf16.mxu0 %v5589_v25  ;;  %5619 = vmatprep.subr.bf16.mxu1 %v6238_v10 }
 0x5ff   :  { %5046 = vmatmul.mubr.msk.f32.vlgmr.msra.gmra.mrb[16].mxu0 %vm835_vm4, %v41_v19  ;;  %v5620_v19 = vpack.c.bf16 %v83_v18, %v82_v17 }
 0x600   :  { %5048 = vmatprep.mubr.msk.f32.mxu0 %vm835_vm4, %v42_v20  ;;  %5592 = vmatpush3.bf16.msra.mxu0 %v5589_v25  ;;  %v84_v20 = vld [vmem:[%s7581_s3 + $0x30] sm:$0xff]  ;;  %v5626_v25 = vpack.c.bf16 %v87_v24, %v86_v23  ;;  %v110_v23 = vld [vmem:[%s7581_s3 + $0x100] sm:$0xff]  ;;  %v111_v24 = vld [vmem:[%s7581_s3 + $0x108] sm:$0xff] }
 0x601   :  { %5594 = vmatprep.subr.bf16.mxu0 %v5593_v27  ;;  %5621 = vmatpush1.bf16.msra.mxu1 %v5620_v19  ;;  %v108_v19 = vld [vmem:[%s7581_s3 + $0xf0] sm:$0xff] }
 0x602   :  { %5622 = vmatprep.subr.bf16.mxu1 %v6238_v10 }
 0x603   :  { %5049 = vmatmul.mubr.msk.f32.gmra.mrb[18].mxu0 %vm835_vm4, %v43_v21  ;;  %v85_v21 = vld [vmem:[%s7581_s3 + $0x38] sm:$0xff] }
 0x604   :  { %5596 = vmatpush3.bf16.msra.mxu0 %v5593_v27  ;;  %v5623_v22 = vpack.c.bf16 %v85_v21, %v84_v20  ;;  %v89_v27 = vld [vmem:[%s7581_s3 + $0x58] sm:$0xff] }
 0x605   :  { %5598 = vmatprep.subr.bf16.mxu0 %v5597_v3  ;;  %v5629_v28 = vpack.c.bf16 %v89_v27, %v88_v26  ;;  %v109_v20 = vld [vmem:[%s7581_s3 + $0xf8] sm:$0xff]  ;;  %v112_v26 = vld [vmem:[%s7581_s3 + $0x110] sm:$0xff] }
 0x606   :  { %5624 = vmatpush1.bf16.msra.mxu1 %v5623_v22  ;;  %v5661_v22 = vpack.c.bf16 %v109_v20, %v108_v19  ;;  %v113_v27 = vld [vmem:[%s7581_s3 + $0x118] sm:$0xff] }
 0x607   :  { %5625 = vmatprep.subr.bf16.mxu1 %v6238_v10 }
 0x608   :  { %5600 = vmatpush3.bf16.msra.mxu0 %v5597_v3  ;;  %v91_v3 = vld [vmem:[%s7581_s3 + $0x68] sm:$0xff] }
 0x609   :  { %5602 = vmatprep.subr.bf16.mxu0 %v5601_v32  ;;  %v5632_v30 = vpack.c.bf16 %v91_v3, %v90_v29 }
 0x60a   :  { %5627 = vmatpush1.bf16.msra.mxu1 %v5626_v25  ;;  %v5665_v25 = vpack.c.bf16 %v111_v24, %v110_v23 }
 0x60b   :  { %5628 = vmatprep.subr.bf16.mxu1 %v6238_v10 }
 0x60c   :  { %5604 = vmatpush3.bf16.msra.mxu0 %v5601_v32  ;;  %v93_v32 = vld [vmem:[%s7581_s3 + $0x78] sm:$0xff] }
 0x60d   :  { %5606 = vmatprep.subr.bf16.mxu0 %v5605_v35  ;;  %v5635_v33 = vpack.c.bf16 %v93_v32, %v92_v31 }
 0x60e   :  { %5630 = vmatpush1.bf16.msra.mxu1 %v5629_v28  ;;  %v5669_v28 = vpack.c.bf16 %v113_v27, %v112_v26 }
 0x60f   :  { %5631 = vmatprep.subr.bf16.mxu1 %v6238_v10 }
 0x610   :  { %5608 = vmatpush3.bf16.msra.mxu0 %v5605_v35  ;;  %v95_v35 = vld [vmem:[%s7581_s3 + $0x88] sm:$0xff] }
 0x611   :  { %5610 = vmatprep.subr.bf16.mxu0 %v5609_v40 }
 0x612   :  { %5633 = vmatpush1.bf16.msra.mxu1 %v5632_v30 }
 0x613   :  { %5634 = vmatprep.subr.bf16.mxu1 %v6238_v10 }
 0x614   :  { %5612 = vmatpush3.bf16.msra.mxu0 %v5609_v40  ;;  %v98_v40 = vld [vmem:[%s7581_s3 + $0xa0] sm:$0xff] }
 0x616   :  { %5636 = vmatpush1.bf16.msra.mxu1 %v5635_v33 }
 0x617   :  { %5637 = vmatprep.subr.bf16.mxu1 %v6238_v10 }
 0x6d2   :  { %v5047_v36 = vpop.f32.mrb[16].mxu0 }
 0x6d3   :  { %v1362_v37 = vpop.f32.mrb[17].mxu0 }
 0x6d6   :  { %v5050_v41 = vpop.f32.mrb[18].mxu0 }
 0x6d7   :  { %v1382_v13 = vmax.f32 %v5047_v36, %v5050_v41  ;;  %v1372_v11 = vpop.f32.mrb[19].mxu0  ;;  %v5638_v36 = vpack.c.bf16 %v95_v35, %v94_v34  ;;  %v99_v41 = vld [vmem:[%s7581_s3 + $0xa8] sm:$0xff]  ;;  %v114_v35 = vld [vmem:[%s7581_s3 + $0x120] sm:$0xff] }
 0x6d8   :  { %v1381_v38 = vmax.f32 %v1362_v37, %v1372_v11  ;;  %v96_v37 = vld [vmem:[%s7581_s3 + $0x90] sm:$0xff] }
 0x6d9   :  { %v1406_v42 = vrot.slane %v1382_v13, 7  ;;  %5639 = vmatpush1.bf16.msra.mxu1 %v5638_v36  ;;  %v5641_v39 = vpack.c.bf16 %v97_v12, %v96_v37  ;;  %v5644_v13 = vpack.c.bf16 %v99_v41, %v98_v40  ;;  %v100_v11 = vld [vmem:[%s7581_s3 + $0xb0] sm:$0xff]  ;;  %v115_v36 = vld [vmem:[%s7581_s3 + $0x128] sm:$0xff]  ;;  %v6240_v41 = vmov 0.0  }
 0x6da   :  { %v1384_v43 = vrot.slane %v1381_v38, 7  ;;  %5640 = vmatprep.subr.bf16.mxu1 %v6238_v10  ;;  %v101_v38 = vld [vmem:[%s7581_s3 + $0xb8] sm:$0xff]  ;;  %v5673_v37 = vpack.c.bf16 %v115_v36, %v114_v35  ;;  %v116_v12 = vld [vmem:[%s7581_s3 + $0x130] sm:$0xff] }
 0x6db   :  { %v1408_v44 = vsel %vm1386_vm10, 0.0, %v1406_v42  ;;  %v1409_v45 = vsel %vm1386_vm10, %v1406_v42, 0.0  ;;  %v5647_v42 = vpack.c.bf16 %v101_v38, %v100_v11  ;;  %v4546_v11 = vld [vmem:[%s7581_s3 + $0x284] ss:$0 sm:$0xff] }
 0x6dc   :  { %v1387_v46 = vsel %vm1386_vm10, 0.0, %v1384_v43  ;;  %v1388_v47 = vsel %vm1386_vm10, %v1384_v43, 0.0  ;;  %v1412_v53 = vrot.slane %v1408_v44, 1  ;;  %v1413_v54 = vrot.slane %v1409_v45, 1  ;;  %v4541_v43 = vld [vmem:[%s7580_s2 + $0xe0] ss:$0 sm:$0xff] }
 0x6dd   :  { %v1391_v49 = vrot.slane %v1387_v46, 1  ;;  %v1392_v50 = vrot.slane %v1388_v47, 1  ;;  %v1397_v51 = vrot.slane %v1387_v46, 2  ;;  %v1398_v52 = vrot.slane %v1388_v47, 2  ;;  %5642 = vmatpush1.bf16.msra.mxu1 %v5641_v39  ;;  %v117_v39 = vld [vmem:[%s7581_s3 + $0x138] sm:$0xff] }
 0x6de   :  { %v1418_v55 = vrot.slane %v1408_v44, 2  ;;  %v1419_v56 = vrot.slane %v1409_v45, 2  ;;  %v1414_v59 = vsel %vm197_vm0, %v1412_v53, %v1413_v54  ;;  %5643 = vmatprep.subr.bf16.mxu1 %v6238_v10  ;;  %v5677_v40 = vpack.c.bf16 %v117_v39, %v116_v12  ;;  %v122_v39 = vld [vmem:[%s7581_s3 + $0x160] sm:$0xff] }
 0x6df   :  { %v1399_v48 = vsel %vm229_vm1, %v1397_v51, %v1398_v52  ;;  %v1393_v57 = vsel %vm197_vm0, %v1391_v49, %v1392_v50 }
 0x6e0   :  { %1400 = vrot.lane.b32.xlu1 %v1399_v48, %s6237_s13  ;;  %1394 = vrot.lane.b32.xlu0 %v1393_v57, %s6235_s7  ;;  %v1420_v58 = vsel %vm229_vm1, %v1418_v55, %v1419_v56  ;;  %v102_v55 = vld [vmem:[%s7581_s3 + $0xc0] sm:$0xff]  ;;  %v103_v56 = vld [vmem:[%s7581_s3 + $0xc8] sm:$0xff] }
 0x6e1   :  { %5645 = vmatpush1.bf16.msra.mxu1 %v5644_v13  ;;  %v104_v48 = vld [vmem:[%s7581_s3 + $0xd0] sm:$0xff]  ;;  %v4545_v13 = vld [vmem:[%s7581_s3 + $0x283] ss:$0 sm:$0xff] }
 0x6e2   :  { %5646 = vmatprep.subr.bf16.mxu1 %v6238_v10 }
 0x6e4   :  { %1421 = vrot.lane.b32.xlu1 %v1420_v58, %s6237_s13  ;;  %1415 = vrot.lane.b32.xlu0 %v1414_v59, %s6235_s7  ;;  %v5649_v58 = vpack.c.bf16 %v103_v56, %v102_v55  ;;  %v105_v59 = vld [vmem:[%s7581_s3 + $0xd8] sm:$0xff]  ;;  %v120_v55 = vld [vmem:[%s7581_s3 + $0x150] sm:$0xff] }
 0x6e5   :  { %5648 = vmatpush1.bf16.msra.mxu1 %v5647_v42  ;;  %v121_v56 = vld [vmem:[%s7581_s3 + $0x158] sm:$0xff] }
 0x6e6   :  { %5687 = vmatprep.subr.bf16.mxu1 %v6238_v10  ;;  %5650 = vmatprep.subr.bf16.mxu0 %v5649_v58 }
 0x752   :  { %v1401_v60 = vpop.permute.xlu1 %1400  ;;  %v1395_v61 = vpop.permute.xlu0 %1394 }
 0x753   :  { %v1403_v62 = vsel %vm835_vm4, %v1387_v46, %v1395_v61 }
 0x754   :  { %v1404_v63 = vsel %vm467_vm3, %v1403_v62, %v1401_v60  ;;  %v5653_v62 = vpack.c.bf16 %v105_v59, %v104_v48  ;;  %v6857_v48 = vpack.c.bf16 %v121_v56, %v120_v55  ;;  %v6961_v56 = vld [vmem:[%s7581_s3 + $0x281] ss:$0 sm:$0xff] }
 0x755   :  { %5075 = vmatprep.mubr.msk.f32.mxu0 %vm1426_vm11, %v1404_v63  ;;  %v106_v63 = vld [vmem:[%s7581_s3 + $0xe0] sm:$0xff] }
 0x756   :  { %v1422_v0 = vpop.permute.xlu1 %1421  ;;  %v1416_v1 = vpop.permute.xlu0 %1415 }
 0x757   :  { %v1424_v5 = vsel %vm835_vm4, %v1408_v44, %v1416_v1  ;;  %v4542_v44 = vld [vmem:[%s7580_s2 + $0xe1] ss:$0 sm:$0xff] }
 0x758   :  { %v1425_v6 = vsel %vm467_vm3, %v1424_v5, %v1422_v0  ;;  %v107_v0 = vld [vmem:[%s7581_s3 + $0xe8] sm:$0xff] }
 0x759   :  { %5076 = vmatmul.mubr.msk.f32.vlgmr.msra.gmra.mrb[20].mxu0 %vm1426_vm11, %v1425_v6  ;;  %v5657_v16 = vpack.c.bf16 %v107_v0, %v106_v63 }
 0x75a   :  { %5652 = vmatpush3.bf16.msra.mxu0 %v5649_v58 }
 0x75b   :  { %5654 = vmatprep.subr.bf16.mxu0 %v5653_v62 }
 0x75e   :  { %5656 = vmatpush3.bf16.msra.mxu0 %v5653_v62 }
 0x75f   :  { %5658 = vmatprep.subr.bf16.mxu0 %v5657_v16 }
 0x762   :  { %5660 = vmatpush3.bf16.msra.mxu0 %v5657_v16 }
 0x763   :  { %5662 = vmatprep.subr.bf16.mxu0 %v5661_v22 }
 0x766   :  { %5664 = vmatpush3.bf16.msra.mxu0 %v5661_v22 }
 0x767   :  { %5666 = vmatprep.subr.bf16.mxu0 %v5665_v25 }
 0x76a   :  { %5668 = vmatpush3.bf16.msra.mxu0 %v5665_v25 }
 0x76b   :  { %5670 = vmatprep.subr.bf16.mxu0 %v5669_v28 }
 0x76e   :  { %5672 = vmatpush3.bf16.msra.mxu0 %v5669_v28 }
 0x76f   :  { %5674 = vmatprep.subr.bf16.mxu0 %v5673_v37 }
 0x772   :  { %5676 = vmatpush3.bf16.msra.mxu0 %v5673_v37 }
 0x773   :  { %5678 = vmatprep.subr.bf16.mxu0 %v5677_v40 }
 0x776   :  { %5680 = vmatpush3.bf16.msra.mxu0 %v5677_v40  ;;  %v123_v40 = vld [vmem:[%s7581_s3 + $0x168] sm:$0xff] }
 0x777   :  { %5681 = vmatprep.subr.bf16.mxu0 %v6238_v10 }
 0x82c   :  { %v5077_v45 = vpop.f32.mrb[20].mxu0 }
 0x82d   :  { %v1513_v46 = vmul.f32 %v5077_v45, %v4541_v43  ;;  %v1499_v47 = vpop.f32.mrb[21].mxu0 }
 0x82e   :  { %v1512_v49 = vmul.f32 %v4541_v43, %v1499_v47 }
 0x82f   :  { %v1519_v50 = vadd.f32 %v4542_v44, %v1513_v46 }
 0x830   :  { %v1518_v51 = vadd.f32 %v4542_v44, %v1512_v49 }
 0x831   :  { %v1521_v52 = vmax.f32 %v1519_v50, 0.0  ;;  %v118_v50 = vld [vmem:[%s7581_s3 + $0x140] sm:$0xff] }
 0x832   :  { %v1520_v53 = vmax.f32 %v1518_v51, 0.0  ;;  %v119_v51 = vld [vmem:[%s7581_s3 + $0x148] sm:$0xff] }
 0x833   :  { %v1540_v54 = vrot.slane %v1521_v52, 7 }
 0x834   :  { %v1523_v57 = vrot.slane %v1520_v53, 7  ;;  %v6848_v53 = vpack.c.bf16 %v119_v51, %v118_v50 }
 0x835   :  { %v1542_v60 = vsel %vm1386_vm10, 0.0, %v1540_v54  ;;  %v1543_v61 = vsel %vm1386_vm10, %v1540_v54, 0.0 }
 0x836   :  { %v1525_v1 = vsel %vm1386_vm10, 0.0, %v1523_v57  ;;  %v1526_v5 = vsel %vm1386_vm10, %v1523_v57, 0.0  ;;  %v1546_v8 = vrot.slane %v1542_v60, 1  ;;  %v1547_v9 = vrot.slane %v1543_v61, 1  ;;  %v4547_v57 = vld [vmem:[%s7581_s3 + $0x280] ss:$0 sm:$0xff] }
 0x837   :  { %v1535_v6 = vrot.slane %v1525_v1, 2  ;;  %v1536_v7 = vrot.slane %v1526_v5, 2  ;;  %v1529_v14 = vrot.slane %v1525_v1, 1  ;;  %v1530_v15 = vrot.slane %v1526_v5, 1 }
 0x838   :  { %v1548_v17 = vsel %vm197_vm0, %v1546_v8, %v1547_v9  ;;  %v1552_v29 = vrot.slane %v1542_v60, 2  ;;  %v1553_v3 = vrot.slane %v1543_v61, 2 }
 0x839   :  { %v1537_v18 = vsel %vm229_vm1, %v1535_v6, %v1536_v7  ;;  %1549 = vrot.lane.b32.xlu1 %v1548_v17, %s6237_s13  ;;  %v1531_v21 = vsel %vm197_vm0, %v1529_v14, %v1530_v15 }
 0x83a   :  { %4543 = vmatprep.mubr.msk.f32.mxu1 %vm467_vm3, %v1537_v18  ;;  %1532 = vrot.lane.b32.xlu0 %v1531_v21, %s6237_s13  ;;  %v1554_v33 = vsel %vm229_vm1, %v1552_v29, %v1553_v3 }
 0x8ab   :  { %v1550_v32 = vpop.permute.xlu1 %1549 }
 0x8ac   :  { %v1533_v30 = vpop.permute.xlu0 %1532  ;;  %v1555_v34 = vsel %vm467_vm3, %v1542_v60, %v1550_v32 }
 0x8ad   :  { %v1538_v31 = vsel %vm467_vm3, %v1525_v1, %v1533_v30 }
 0x8ae   :  { %1625 = vmatmul.mubr.f32.vlgmr.msra.gmra.mrb[20].mxu1 %v1538_v31 }
 0x8af   :  { %4544 = vmatprep.mubr.msk.f32.mxu1 %vm467_vm3, %v1554_v33 }
 0x8b2   :  { %1630 = vmatmul.mubr.f32.gmra.mrb[22].mxu1 %v1555_v34 }
 0x8b3   :  { %5140 = vmatprep.mubr.msk.f32.mxu1 %vm6239_vm12, %v6240_v41 }
 0x981   :  { %v1626_v38 = vpop.f32.mrb[20].mxu1 }
 0x982   :  { %v1639_v42 = vmul.f32 %v4545_v13, %v1626_v38  ;;  %v1628_v43 = vpop.f32.mrb[21].mxu1  ;;  %v125_v38 = vld [vmem:[%s7581_s3 + $0x178] sm:$0xff] }
 0x983   :  { %v126_v43 = vld [vmem:[%s7581_s3 + $0x180] sm:$0xff] }
 0x984   :  { %v1645_v44 = vadd.f32 %v4546_v11, %v1639_v42 }
 0x985   :  { %v1631_v45 = vpop.f32.mrb[22].mxu1 }
 0x986   :  { %v1647_v46 = vmax.f32 %v1645_v44, 0.0  ;;  %v1640_v47 = vmul.f32 %v4545_v13, %v1631_v45  ;;  %v1633_v49 = vpop.f32.mrb[23].mxu1  ;;  %v124_v13 = vld [vmem:[%s7581_s3 + $0x170] sm:$0xff]  ;;  %v127_v44 = vld [vmem:[%s7581_s3 + $0x188] sm:$0xff] }
 0x987   :  { %v6916_v42 = vpack.c.bf16 %v125_v38, %v124_v13  ;;  %v6926_v45 = vpack.c.bf16 %v127_v44, %v126_v43  ;;  %v136_v38 = vld [vmem:[%s7581_s3 + $0x1d0] sm:$0xff]  ;;  %v137_v43 = vld [vmem:[%s7581_s3 + $0x1d8] sm:$0xff] }
 0x988   :  { %1649 = vst [vmem:[#allocation3] sm:$0xff] %v1647_v46  ;;  %v1646_v52 = vadd.f32 %v4546_v11, %v1640_v47  ;;  %5110 = vmatprep.mubr.f32.mxu0 %v1647_v46  ;;  %v6910_v11 = vpack.c.bf16 %v123_v40, %v122_v39  ;;  %v128_v46 = vld [vmem:[%s7581_s3 + $0x190] sm:$0xff]  ;;  %v129_v47 = vld [vmem:[%s7581_s3 + $0x198] sm:$0xff]  ;;  %v7013_v44 = vpack.c.bf16 %v137_v43, %v136_v38 }
 0x989   :  { %v6937_v50 = vpack.c.bf16 %v129_v47, %v128_v46 }
 0x98a   :  { %v1648_v54 = vmax.f32 %v1646_v52, 0.0  ;;  %5689 = vmatpush3.bf16.msra.mxu1 %v6910_v11 }
 0x98b   :  { %5690 = vmatprep.subr.bf16.mxu1 %v6238_v10 }
 0x98c   :  { %1650 = vst [vmem:[#allocation3 + $0x8] sm:$0xff] %v1648_v54  ;;  %5111 = vmatmul.mubr.f32.vlgmr.msra.gmra.mrb[22].mxu0 %v1648_v54 }
 0x98d   :  { %5683 = vmatpush3.bf16.msra.mxu0 %v6848_v53  ;;  %5121 = vmatprep.mubr.msk.f32.mxu0 %vm6239_vm12, %v6240_v41 }
 0x98e   :  { %5684 = vmatprep.subr.bf16.mxu0 %v6238_v10  ;;  %5692 = vmatpush3.bf16.msra.mxu1 %v6916_v42 }
 0x98f   :  { %5693 = vmatprep.subr.bf16.mxu1 %v6238_v10 }
 0x991   :  { %5686 = vmatpush3.bf16.msra.mxu0 %v6857_v48 }
 0x992   :  { %5699 = vmatprep.subr.bf16.mxu0 %v6238_v10  ;;  %5695 = vmatpush3.bf16.msra.mxu1 %v6926_v45 }
 0x993   :  { %5696 = vmatprep.subr.bf16.mxu1 %v6238_v10 }
 0x994   :  { %5122 = vmatmul.mubr.f32.vlgmr.msra.gmra.mrb[24].mxu0 %v6240_v41 }
 0x995   :  { %5701 = vmatpush3.bf16.msra.mxu0 %v6848_v53  ;;  %5151 = vmatprep.mubr.msk.f32.mxu0 %vm6239_vm12, %v6240_v41 }
 0x996   :  { %5702 = vmatprep.subr.bf16.mxu0 %v6238_v10  ;;  %5698 = vmatpush3.bf16.msra.mxu1 %v6937_v50 }
 0x997   :  { %5717 = vmatprep.subr.bf16.mxu1 %v6238_v10 }
 0x999   :  { %5704 = vmatpush3.bf16.msra.mxu0 %v6857_v48 }
 0x99a   :  { %5705 = vmatprep.subr.bf16.mxu0 %v6238_v10 }
 0xa5f   :  { %v5112_v58 = vpop.f32.mrb[22].mxu0 }
 0xa60   :  { %v1727_v59 = vadd.f32 %v5112_v58, %v4547_v57  ;;  %v1721_v60 = vpop.f32.mrb[23].mxu0 }
 0xa61   :  { %v1722_v61 = vadd.f32 %v4547_v57, %v1721_v60 }
 0xa62   :  { %v1731_v62 = vrot.slane %v1727_v59, 7  ;;  %v2260_v63 = vrot.slane %v1727_v59, 1  ;;  %v2578_v0 = vrot.slane %v1727_v59, 2  ;;  %v2896_v1 = vrot.slane %v1727_v59, 3 }
 0xa63   :  { %v1939_v5 = vrot.slane %v1722_v61, 1  ;;  %v2258_v6 = vrot.slane %v1722_v61, 2  ;;  %v2576_v7 = vrot.slane %v1722_v61, 3  ;;  %v2894_v8 = vrot.slane %v1722_v61, 4 }
 0xa64   :  { %v1733_v9 = vsel %vm1386_vm10, %v1722_v61, %v1731_v62  ;;  %v3212_v14 = vrot.slane %v1722_v61, 5  ;;  %v3214_v15 = vrot.slane %v1727_v59, 4  ;;  %v3530_v16 = vrot.slane %v1722_v61, 6 }
 0xa65   :  { %v6876_v17 = vsel %vm1386_vm10, %v1939_v5, %v1727_v59  ;;  %v6879_v18 = vsel %vm1386_vm10, %v2258_v6, %v2260_v63  ;;  %v6882_v19 = vsel %vm1386_vm10, %v2576_v7, %v2578_v0  ;;  %v6885_v20 = vsel %vm1386_vm10, %v2894_v8, %v2896_v1 }
 0xa66   :  { %v6888_v21 = vsel %vm1386_vm10, %v3212_v14, %v3214_v15  ;;  %v3532_v22 = vrot.slane %v1727_v59, 5  ;;  %v3848_v23 = vrot.slane %v1722_v61, 7  ;;  %v3850_v24 = vrot.slane %v1727_v59, 6 }
 0xa67   :  { %v1803_v25 = vpop.f32.mrb[24].mxu0 }
 0xa68   :  { %v1807_v26 = vadd.f32 %v1803_v25, %v1733_v9  ;;  %v5123_v27 = vpop.f32.mrb[25].mxu0  ;;  %v6891_v28 = vsel %vm1386_vm10, %v3530_v16, %v3532_v22  ;;  %v6894_v29 = vsel %vm1386_vm10, %v3848_v23, %v3850_v24 }
 0xa6a   :  { %6001 = vtanh.f32 %v1807_v26  ;;  %v4548_v30 = vmul.f32 -1.442695, %v1807_v26 }
 0xa6c   :  { %6003 = vpow2.f32 %v4548_v30 }
 0xa74   :  { %v6002_v3 = vpop.eup %6001 }
 0xa75   :  { %1817 = vrot.lane.b32.xlu0 %v6002_v3, %s6237_s13 }
 0xa76   :  { %v6004_v31 = vpop.eup %6003 }
 0xa77   :  { %v1811_v32 = vadd.f32 1.0, %v6004_v31  ;;  %v130_v31 = vld [vmem:[%s7581_s3 + $0x1a0] sm:$0xff] }
 0xa79   :  { %6005 = vrcp.f32 %v1811_v32  ;;  %v131_v32 = vld [vmem:[%s7581_s3 + $0x1a8] sm:$0xff] }
 0xa83   :  { %v6006_v33 = vpop.eup %6005 }
 0xa84   :  { %v1815_v36 = vmul.f32 0.0, %v6006_v33 }
 0xae7   :  { %v1818_v34 = vpop.permute.xlu0 %1817 }
 0xae8   :  { %v1820_v35 = vmul.f32 %v6006_v33, %v1818_v34  ;;  %v6985_v34 = vpack.c.bf16 %v131_v32, %v130_v31 }
 0xaea   :  { %1822 = vrot.lane.b32.xlu1 %v1820_v35, %s6235_s7  ;;  %v133_v35 = vld [vmem:[%s7581_s3 + $0x1b8] sm:$0xff] }
 0xb5c   :  { %v1823_v37 = vpop.permute.xlu1 %1822 }
 0xb5d   :  { %v6898_v12 = vadd.f32 %v1823_v37, %v1815_v36  ;;  %v134_v37 = vld [vmem:[%s7581_s3 + $0x1c0] sm:$0xff] }
 0xb5f   :  { %6007 = vtanh.f32 %v6898_v12 }
 0xb69   :  { %v6008_v49 = vpop.eup %6007 }
 0xb6a   :  { %1828 = vrot.lane.b32.xlu0 %v6008_v49, %s6237_s13 }
 0xbdc   :  { %v1829_v51 = vpop.permute.xlu0 %1828 }
 0xbdd   :  { %v1831_v52 = vmul.f32 %v6006_v33, %v1829_v51  ;;  %v132_v33 = vld [vmem:[%s7581_s3 + $0x1b0] sm:$0xff] }
 0xbde   :  { %v6991_v36 = vpack.c.bf16 %v133_v35, %v132_v33 }
 0xbdf   :  { %1833 = vrot.lane.b32.xlu1 %v1831_v52, %s6235_s7 }
 0xc51   :  { %v1834_v54 = vpop.permute.xlu1 %1833 }
 0xc52   :  { %v1836_v55 = vsel %vm835_vm4, %v1834_v54, 0.0  ;;  %5152 = vmatmul.mubr.msk.f32.vlgmr.msra.gmra.mrb[26].mxu0 %vm835_vm4, %v1834_v54 }
 0xc53   :  { %5141 = vmatmul.mubr.msk.f32.vlgmr.msra.gmra.mrb[24].mxu1 %vm467_vm3, %v1836_v55  ;;  %5170 = vmatprep.mubr.msk.f32.mxu0 %vm6239_vm12, %v6240_v41 }
 0xc54   :  { %5719 = vmatpush3.bf16.msra.mxu1 %v6910_v11  ;;  %5189 = vmatprep.mubr.msk.f32.mxu1 %vm6239_vm12, %v6240_v41 }
 0xc55   :  { %5720 = vmatprep.subr.bf16.mxu1 %v6238_v10  ;;  %5707 = vmatpush3.bf16.msra.mxu0 %v6985_v34 }
 0xc56   :  { %5708 = vmatprep.subr.bf16.mxu0 %v6238_v10 }
 0xc58   :  { %5722 = vmatpush3.bf16.msra.mxu1 %v6916_v42 }
 0xc59   :  { %5723 = vmatprep.subr.bf16.mxu1 %v6238_v10  ;;  %5710 = vmatpush3.bf16.msra.mxu0 %v6991_v36 }
 0xc5a   :  { %5711 = vmatprep.subr.bf16.mxu0 %v6238_v10 }
 0xc5c   :  { %5725 = vmatpush3.bf16.msra.mxu1 %v6926_v45 }
 0xc5d   :  { %5726 = vmatprep.subr.bf16.mxu1 %v6238_v10 }
 0xc60   :  { %5728 = vmatpush3.bf16.msra.mxu1 %v6937_v50 }
 0xc61   :  { %5735 = vmatprep.subr.bf16.mxu1 %v6238_v10 }
 0xd25   :  { %v2010_v57 = vpop.f32.mrb[26].mxu0 }
 0xd26   :  { %v2014_v58 = vadd.f32 %v2010_v57, %v6876_v17  ;;  %v1910_v59 = vpop.f32.mrb[24].mxu1  ;;  %v5153_v60 = vpop.f32.mrb[27].mxu0 }
 0xd27   :  { %v1911_v61 = vadd.f32 %v6961_v56, %v1910_v59  ;;  %v5142_v62 = vpop.f32.mrb[25].mxu1  ;;  %v7055_v59 = vld [vmem:[%s7581_s3 + $0x282] ss:$0 sm:$0xff] }
 0xd28   :  { %6009 = vtanh.f32 %v2014_v58  ;;  %v4553_v1 = vmul.f32 -1.442695, %v2014_v58 }
 0xd29   :  { %6011 = vtanh.f32 %v1911_v61  ;;  %v4551_v5 = vmul.f32 -1.442695, %v1911_v61 }
 0xd2a   :  { %6013 = vpow2.f32 %v4553_v1 }
 0xd2b   :  { %6015 = vpow2.f32 %v4551_v5 }
 0xd32   :  { %v6010_v63 = vpop.eup %6009 }
 0xd33   :  { %v6012_v0 = vpop.eup %6011  ;;  %2024 = vrot.lane.b32.xlu1 %v6010_v63, %s6237_s13 }
 0xd34   :  { %1923 = vrot.lane.b32.xlu0 %v6012_v0, %s6237_s13  ;;  %v6014_v6 = vpop.eup %6013 }
 0xd35   :  { %v6016_v7 = vpop.eup %6015  ;;  %v2018_v8 = vadd.f32 1.0, %v6014_v6 }
 0xd36   :  { %v1917_v9 = vadd.f32 1.0, %v6016_v7 }
 0xd37   :  { %6017 = vrcp.f32 %v2018_v8 }
 0xd38   :  { %6019 = vrcp.f32 %v1917_v9 }
 0xd41   :  { %v6018_v14 = vpop.eup %6017 }
 0xd42   :  { %v6020_v16 = vpop.eup %6019  ;;  %v2022_v24 = vmul.f32 %v6018_v14, %v6898_v12  ;;  %v135_v12 = vld [vmem:[%s7581_s3 + $0x1c8] sm:$0xff] }
 0xd43   :  { %v1921_v26 = vmul.f32 0.0, %v6020_v16  ;;  %v7003_v13 = vpack.c.bf16 %v135_v12, %v134_v37 }
 0xd45   :  { %5713 = vmatpush3.bf16.msra.mxu0 %v7003_v13 }
 0xd46   :  { %5714 = vmatprep.subr.bf16.mxu0 %v6238_v10 }
 0xd49   :  { %5716 = vmatpush3.bf16.msra.mxu0 %v7013_v44 }
 0xd4a   :  { %5729 = vmatprep.subr.bf16.mxu0 %v6238_v10 }
 0xda5   :  { %v2025_v15 = vpop.permute.xlu1 %2024 }
 0xda6   :  { %v2027_v17 = vmul.f32 %v6018_v14, %v2025_v15  ;;  %v1924_v22 = vpop.permute.xlu0 %1923 }
 0xda7   :  { %v1926_v23 = vmul.f32 %v6020_v16, %v1924_v22 }
 0xda8   :  { %2029 = vrot.lane.b32.xlu1 %v2027_v17, %s6235_s7 }
 0xda9   :  { %1928 = vrot.lane.b32.xlu0 %v1926_v23, %s6235_s7 }
 0xe1a   :  { %v2030_v25 = vpop.permute.xlu1 %2029 }
 0xe1b   :  { %v6970_v27 = vadd.f32 %v2030_v25, %v2022_v24  ;;  %v1929_v3 = vpop.permute.xlu0 %1928 }
 0xe1c   :  { %v6972_v30 = vadd.f32 %v1929_v3, %v1921_v26 }
 0xe1d   :  { %6021 = vtanh.f32 %v6970_v27 }
 0xe1e   :  { %6023 = vtanh.f32 %v6972_v30 }
 0xe27   :  { %v6022_v39 = vpop.eup %6021 }
 0xe28   :  { %v6024_v40 = vpop.eup %6023  ;;  %2035 = vrot.lane.b32.xlu1 %v6022_v39, %s6237_s13 }
 0xe29   :  { %1934 = vrot.lane.b32.xlu0 %v6024_v40, %s6237_s13 }
 0xe9a   :  { %v2036_v46 = vpop.permute.xlu1 %2035 }
 0xe9b   :  { %v2038_v47 = vmul.f32 %v6018_v14, %v2036_v46  ;;  %v1935_v49 = vpop.permute.xlu0 %1934 }
 0xe9c   :  { %v1937_v51 = vmul.f32 %v6020_v16, %v1935_v49 }
 0xe9d   :  { %2154 = vrot.lane.b32.xlu1 %v2038_v47, %s6235_s7 }
 0xe9e   :  { %2040 = vrot.lane.b32.xlu0 %v1937_v51, %s6235_s7 }
 0xea2   :  { %2157 = vrot.lane.b32.xlu0 %v1937_v51, %s6237_s13 }
 0xf0f   :  { %v2155_v55 = vpop.permute.xlu1 %2154 }
 0xf10   :  { %v2041_v52 = vpop.permute.xlu0 %2040 }
 0xf11   :  { %v2043_v54 = vsel %vm835_vm4, %v2041_v52, 0.0 }
 0xf12   :  { %5171 = vmatmul.mubr.msk.f32.vlgmr.msra.gmra.mrb[28].mxu0 %vm467_vm3, %v2043_v54 }
 0xf13   :  { %5731 = vmatpush3.bf16.msra.mxu0 %v6848_v53  ;;  %5200 = vmatprep.mubr.msk.f32.mxu0 %vm6239_vm12, %v6240_v41 }
 0xf14   :  { %v2158_v57 = vpop.permute.xlu0 %2157  ;;  %5732 = vmatprep.subr.bf16.mxu0 %v6238_v10 }
 0xf15   :  { %v2160_v58 = vsel %vm835_vm4, %v2155_v55, %v2158_v57 }
 0xf16   :  { %5190 = vmatmul.mubr.msk.f32.vlgmr.msra.gmra.mrb[26].mxu1 %vm467_vm3, %v2160_v58 }
 0xf17   :  { %5734 = vmatpush3.bf16.msra.mxu0 %v6857_v48  ;;  %5737 = vmatpush3.bf16.msra.mxu1 %v6985_v34 }
 0xf18   :  { %5738 = vmatprep.subr.bf16.mxu1 %v6238_v10  ;;  %5747 = vmatprep.subr.bf16.mxu0 %v6238_v10 }
 0xf19   :  { %5219 = vmatprep.mubr.msk.f32.mxu1 %vm6239_vm12, %v6240_v41 }
 0xf1a   :  { %5201 = vmatmul.mubr.msk.f32.vlgmr.msra.gmra.mrb[30].mxu0 %vm835_vm4, %v2155_v55 }
 0xf1b   :  { %5740 = vmatpush3.bf16.msra.mxu1 %v6991_v36  ;;  %5749 = vmatpush3.bf16.msra.mxu0 %v6910_v11 }
 0xf1c   :  { %5741 = vmatprep.subr.bf16.mxu1 %v6238_v10  ;;  %5750 = vmatprep.subr.bf16.mxu0 %v6238_v10 }
 0xf1d   :  { %5238 = vmatprep.mubr.msk.f32.mxu0 %vm6239_vm12, %v6240_v41 }
 0xf1f   :  { %5743 = vmatpush3.bf16.msra.mxu1 %v7003_v13  ;;  %5752 = vmatpush3.bf16.msra.mxu0 %v6916_v42 }
 0xf20   :  { %5744 = vmatprep.subr.bf16.mxu1 %v6238_v10  ;;  %5753 = vmatprep.subr.bf16.mxu0 %v6238_v10 }
 0xf23   :  { %5746 = vmatpush3.bf16.msra.mxu1 %v7013_v44  ;;  %5755 = vmatpush3.bf16.msra.mxu0 %v6926_v45 }
 0xf24   :  { %5759 = vmatprep.subr.bf16.mxu1 %v6238_v10  ;;  %5756 = vmatprep.subr.bf16.mxu0 %v6238_v10 }
 0xf27   :  { %5758 = vmatpush3.bf16.msra.mxu0 %v6937_v50 }
 0xf28   :  { %5765 = vmatprep.subr.bf16.mxu0 %v6238_v10 }
 0xfe5   :  { %v2117_v60 = vpop.f32.mrb[28].mxu0 }
 0xfe6   :  { %v2118_v61 = vadd.f32 %v7055_v59, %v2117_v60  ;;  %v5172_v62 = vpop.f32.mrb[29].mxu0 }
 0xfe8   :  { %6025 = vtanh.f32 %v2118_v61  ;;  %v4556_v15 = vmul.f32 -1.442695, %v2118_v61 }
 0xfe9   :  { %v2230_v63 = vpop.f32.mrb[26].mxu1 }
 0xfea   :  { %v2231_v0 = vadd.f32 %v6961_v56, %v2230_v63  ;;  %v5191_v1 = vpop.f32.mrb[27].mxu1 }
 0xfec   :  { %6027 = vtanh.f32 %v2231_v0  ;;  %v4558_v16 = vmul.f32 -1.442695, %v2231_v0 }
 0xfed   :  { %v2331_v5 = vpop.f32.mrb[30].mxu0 }
 0xfee   :  { %v2335_v6 = vadd.f32 %v2331_v5, %v6879_v18  ;;  %v5202_v7 = vpop.f32.mrb[31].mxu0 }
 0xff0   :  { %6029 = vtanh.f32 %v2335_v6  ;;  %v4560_v17 = vmul.f32 -1.442695, %v2335_v6 }
 0xff1   :  { %6031 = vpow2.f32 %v4556_v15 }
 0xff2   :  { %v6026_v8 = vpop.eup %6025  ;;  %6033 = vpow2.f32 %v4558_v16 }
 0xff3   :  { %2130 = vrot.lane.b32.xlu1 %v6026_v8, %s6237_s13  ;;  %6035 = vpow2.f32 %v4560_v17 }
 0xff6   :  { %v6028_v9 = vpop.eup %6027 }
 0xff7   :  { %2243 = vrot.lane.b32.xlu0 %v6028_v9, %s6237_s13 }
 0xffa   :  { %v6030_v14 = vpop.eup %6029 }
 0xffb   :  { %2345 = vrot.lane.b32.xlu1 %v6030_v14, %s6237_s13  ;;  %v6032_v22 = vpop.eup %6031 }
 0xffc   :  { %v2124_v23 = vadd.f32 1.0, %v6032_v22  ;;  %v6034_v18 = vpop.eup %6033 }
 0xffd   :  { %v2237_v24 = vadd.f32 1.0, %v6034_v18  ;;  %v6036_v25 = vpop.eup %6035 }
 0xffe   :  { %6037 = vrcp.f32 %v2124_v23  ;;  %v2339_v26 = vadd.f32 1.0, %v6036_v25 }
 0xfff   :  { %6039 = vrcp.f32 %v2237_v24 }
0x1000   :  { %6041 = vrcp.f32 %v2339_v26 }
0x1008   :  { %v6038_v3 = vpop.eup %6037 }
0x1009   :  { %v6040_v33 = vpop.eup %6039  ;;  %v2128_v38 = vmul.f32 0.0, %v6038_v3 }
0x100a   :  { %v6042_v12 = vpop.eup %6041  ;;  %v2241_v47 = vmul.f32 %v6040_v33, %v6972_v30 }
0x100b   :  { %v2343_v52 = vmul.f32 %v6042_v12, %v6970_v27 }
0x1065   :  { %v2131_v31 = vpop.permute.xlu1 %2130 }
0x1066   :  { %v2133_v32 = vmul.f32 %v6038_v3, %v2131_v31 }
0x1068   :  { %2135 = vrot.lane.b32.xlu0 %v2133_v32, %s6235_s7 }
0x1069   :  { %v2244_v35 = vpop.permute.xlu0 %2243 }
0x106a   :  { %v2246_v37 = vmul.f32 %v6040_v33, %v2244_v35 }
0x106c   :  { %2248 = vrot.lane.b32.xlu1 %v2246_v37, %s6235_s7 }
0x106d   :  { %v2346_v39 = vpop.permute.xlu1 %2345 }
0x106e   :  { %v2348_v40 = vmul.f32 %v6042_v12, %v2346_v39 }
0x1070   :  { %2350 = vrot.lane.b32.xlu0 %v2348_v40, %s6235_s7 }
0x10da   :  { %v2136_v43 = vpop.permute.xlu0 %2135 }
0x10db   :  { %v7066_v46 = vadd.f32 %v2136_v43, %v2128_v38 }
0x10dd   :  { %6043 = vtanh.f32 %v7066_v46 }
0x10de   :  { %v2249_v49 = vpop.permute.xlu1 %2248 }
0x10df   :  { %v7070_v51 = vadd.f32 %v2249_v49, %v2241_v47 }
0x10e1   :  { %6045 = vtanh.f32 %v7070_v51 }
0x10e2   :  { %v2351_v54 = vpop.permute.xlu0 %2350 }
0x10e3   :  { %v7074_v55 = vadd.f32 %v2351_v54, %v2343_v52 }
0x10e5   :  { %6047 = vtanh.f32 %v7074_v55 }
0x10e7   :  { %v6044_v57 = vpop.eup %6043 }
0x10e8   :  { %2141 = vrot.lane.b32.xlu1 %v6044_v57, %s6237_s13 }
0x10eb   :  { %v6046_v58 = vpop.eup %6045 }
0x10ec   :  { %2254 = vrot.lane.b32.xlu0 %v6046_v58, %s6237_s13 }
0x10ef   :  { %v6048_v60 = vpop.eup %6047 }
0x10f0   :  { %2356 = vrot.lane.b32.xlu1 %v6048_v60, %s6237_s13 }
0x115a   :  { %v2142_v30 = vpop.permute.xlu1 %2141 }
0x115b   :  { %v7080_v61 = vmul.f32 %v6038_v3, %v2142_v30 }
0x115d   :  { %2364 = vrot.lane.b32.xlu1 %v7080_v61, %s6237_s13 }
0x115e   :  { %v2255_v27 = vpop.permute.xlu0 %2254 }
0x115f   :  { %v2257_v62 = vmul.f32 %v6040_v33, %v2255_v27 }
0x1161   :  { %2475 = vrot.lane.b32.xlu1 %v2257_v62, %s6237_s13  ;;  %2361 = vrot.lane.b32.xlu0 %v2257_v62, %s6235_s7 }
0x1162   :  { %v2357_v63 = vpop.permute.xlu1 %2356 }
0x1163   :  { %v2359_v0 = vmul.f32 %v6042_v12, %v2357_v63 }
0x1165   :  { %2472 = vrot.lane.b32.xlu0 %v2359_v0, %s6235_s7 }
0x11cf   :  { %v2365_v1 = vpop.permute.xlu1 %2364 }
0x11d3   :  { %v2362_v5 = vpop.permute.xlu0 %2361  ;;  %v2476_v7 = vpop.permute.xlu1 %2475 }
0x11d4   :  { %v2367_v6 = vsel %vm835_vm4, %v2362_v5, %v2365_v1 }
0x11d5   :  { %5220 = vmatmul.mubr.msk.f32.vlgmr.msra.gmra.mrb[28].mxu1 %vm467_vm3, %v2367_v6 }
0x11d6   :  { %5761 = vmatpush3.bf16.msra.mxu1 %v6848_v53  ;;  %5249 = vmatprep.mubr.msk.f32.mxu1 %vm6239_vm12, %v6240_v41 }
0x11d7   :  { %v2473_v8 = vpop.permute.xlu0 %2472  ;;  %5762 = vmatprep.subr.bf16.mxu1 %v6238_v10 }
0x11d8   :  { %v2478_v9 = vsel %vm835_vm4, %v2473_v8, %v2476_v7 }
0x11d9   :  { %5239 = vmatmul.mubr.msk.f32.vlgmr.msra.gmra.mrb[32].mxu0 %vm467_vm3, %v2478_v9 }
0x11da   :  { %5764 = vmatpush3.bf16.msra.mxu1 %v6857_v48  ;;  %5767 = vmatpush3.bf16.msra.mxu0 %v6985_v34 }
0x11db   :  { %5768 = vmatprep.subr.bf16.mxu0 %v6238_v10  ;;  %5777 = vmatprep.subr.bf16.mxu1 %v6238_v10 }
0x11dc   :  { %5268 = vmatprep.mubr.msk.f32.mxu0 %vm6239_vm12, %v6240_v41 }
0x11dd   :  { %5250 = vmatmul.mubr.msk.f32.vlgmr.msra.gmra.mrb[30].mxu1 %vm835_vm4, %v2473_v8 }
0x11de   :  { %5770 = vmatpush3.bf16.msra.mxu0 %v6991_v36  ;;  %5779 = vmatpush3.bf16.msra.mxu1 %v6910_v11 }
0x11df   :  { %5771 = vmatprep.subr.bf16.mxu0 %v6238_v10  ;;  %5780 = vmatprep.subr.bf16.mxu1 %v6238_v10 }
0x11e0   :  { %5287 = vmatprep.mubr.msk.f32.mxu1 %vm6239_vm12, %v6240_v41 }
0x11e2   :  { %5773 = vmatpush3.bf16.msra.mxu0 %v7003_v13  ;;  %5782 = vmatpush3.bf16.msra.mxu1 %v6916_v42 }
0x11e3   :  { %5774 = vmatprep.subr.bf16.mxu0 %v6238_v10  ;;  %5783 = vmatprep.subr.bf16.mxu1 %v6238_v10 }
0x11e6   :  { %5776 = vmatpush3.bf16.msra.mxu0 %v7013_v44  ;;  %5785 = vmatpush3.bf16.msra.mxu1 %v6926_v45 }
0x11e7   :  { %5789 = vmatprep.subr.bf16.mxu0 %v6238_v10  ;;  %5786 = vmatprep.subr.bf16.mxu1 %v6238_v10 }
0x11ea   :  { %5788 = vmatpush3.bf16.msra.mxu1 %v6937_v50 }
0x11eb   :  { %5795 = vmatprep.subr.bf16.mxu1 %v6238_v10 }
0x12a8   :  { %v2437_v14 = vpop.f32.mrb[28].mxu1 }
0x12a9   :  { %v2438_v15 = vadd.f32 %v7055_v59, %v2437_v14  ;;  %v5221_v16 = vpop.f32.mrb[29].mxu1 }
0x12ab   :  { %6049 = vtanh.f32 %v2438_v15  ;;  %v4562_v32 = vmul.f32 -1.442695, %v2438_v15 }
0x12ac   :  { %v2548_v17 = vpop.f32.mrb[32].mxu0 }
0x12ad   :  { %v2549_v22 = vadd.f32 %v6961_v56, %v2548_v17  ;;  %v5240_v23 = vpop.f32.mrb[33].mxu0 }
0x12af   :  { %6051 = vtanh.f32 %v2549_v22  ;;  %v4564_v33 = vmul.f32 -1.442695, %v2549_v22 }
0x12b0   :  { %v2649_v18 = vpop.f32.mrb[30].mxu1 }
0x12b1   :  { %v2653_v24 = vadd.f32 %v2649_v18, %v6882_v19  ;;  %v5251_v25 = vpop.f32.mrb[31].mxu1 }
0x12b3   :  { %6053 = vtanh.f32 %v2653_v24  ;;  %v4566_v35 = vmul.f32 -1.442695, %v2653_v24 }
0x12b4   :  { %6055 = vpow2.f32 %v4562_v32 }
0x12b5   :  { %v6050_v26 = vpop.eup %6049  ;;  %6057 = vpow2.f32 %v4564_v33 }
0x12b6   :  { %2450 = vrot.lane.b32.xlu0 %v6050_v26, %s6237_s13  ;;  %6059 = vpow2.f32 %v4566_v35 }
0x12b9   :  { %v6052_v3 = vpop.eup %6051 }
0x12ba   :  { %2561 = vrot.lane.b32.xlu1 %v6052_v3, %s6237_s13 }
0x12bd   :  { %v6054_v31 = vpop.eup %6053 }
0x12be   :  { %2663 = vrot.lane.b32.xlu0 %v6054_v31, %s6237_s13  ;;  %v6056_v37 = vpop.eup %6055 }
0x12bf   :  { %v2444_v12 = vadd.f32 1.0, %v6056_v37  ;;  %v6058_v19 = vpop.eup %6057 }
0x12c0   :  { %v2555_v39 = vadd.f32 1.0, %v6058_v19  ;;  %v6060_v40 = vpop.eup %6059 }
0x12c1   :  { %6061 = vrcp.f32 %v2444_v12  ;;  %v2657_v38 = vadd.f32 1.0, %v6060_v40 }
0x12c2   :  { %6063 = vrcp.f32 %v2555_v39 }
0x12c3   :  { %6065 = vrcp.f32 %v2657_v38 }
0x12cb   :  { %v6062_v43 = vpop.eup %6061 }
0x12cc   :  { %v6064_v52 = vpop.eup %6063  ;;  %v2448_v27 = vmul.f32 %v6062_v43, %v7066_v46 }
0x12cd   :  { %v6066_v58 = vpop.eup %6065  ;;  %v2559_v0 = vmul.f32 %v6064_v52, %v7070_v51 }
0x12ce   :  { %v2661_v6 = vmul.f32 %v6066_v58, %v7074_v55 }
0x1328   :  { %v2451_v47 = vpop.permute.xlu0 %2450 }
0x1329   :  { %v2453_v49 = vmul.f32 %v6062_v43, %v2451_v47 }
0x132b   :  { %2455 = vrot.lane.b32.xlu1 %v2453_v49, %s6235_s7 }
0x132c   :  { %v2562_v54 = vpop.permute.xlu1 %2561 }
0x132d   :  { %v2564_v57 = vmul.f32 %v6064_v52, %v2562_v54 }
0x132f   :  { %2566 = vrot.lane.b32.xlu0 %v2564_v57, %s6235_s7 }
0x1330   :  { %v2664_v60 = vpop.permute.xlu0 %2663 }
0x1331   :  { %v2666_v30 = vmul.f32 %v6066_v58, %v2664_v60 }
0x1333   :  { %2668 = vrot.lane.b32.xlu1 %v2666_v30, %s6235_s7 }
0x139d   :  { %v2456_v62 = vpop.permute.xlu1 %2455 }
0x139e   :  { %v7128_v63 = vadd.f32 %v2456_v62, %v2448_v27 }
0x13a0   :  { %6067 = vtanh.f32 %v7128_v63 }
0x13a1   :  { %v2567_v1 = vpop.permute.xlu0 %2566 }
0x13a2   :  { %v7132_v5 = vadd.f32 %v2567_v1, %v2559_v0 }
0x13a4   :  { %6069 = vtanh.f32 %v7132_v5 }
0x13a5   :  { %v2669_v7 = vpop.permute.xlu1 %2668 }
0x13a6   :  { %v7136_v8 = vadd.f32 %v2669_v7, %v2661_v6 }
0x13a8   :  { %6071 = vtanh.f32 %v7136_v8 }
0x13aa   :  { %v6068_v46 = vpop.eup %6067 }
0x13ab   :  { %2461 = vrot.lane.b32.xlu0 %v6068_v46, %s6237_s13 }
0x13ae   :  { %v6070_v9 = vpop.eup %6069 }
0x13af   :  { %2572 = vrot.lane.b32.xlu1 %v6070_v9, %s6237_s13 }
0x13b2   :  { %v6072_v14 = vpop.eup %6071 }
0x13b3   :  { %2674 = vrot.lane.b32.xlu0 %v6072_v14, %s6237_s13 }
0x141d   :  { %v2462_v51 = vpop.permute.xlu0 %2461 }
0x141e   :  { %v7142_v15 = vmul.f32 %v6062_v43, %v2462_v51 }
0x1420   :  { %2682 = vrot.lane.b32.xlu0 %v7142_v15, %s6237_s13 }
0x1421   :  { %v2573_v55 = vpop.permute.xlu1 %2572 }
0x1422   :  { %v2575_v16 = vmul.f32 %v6064_v52, %v2573_v55 }
0x1424   :  { %2679 = vrot.lane.b32.xlu1 %v2575_v16, %s6235_s7  ;;  %2793 = vrot.lane.b32.xlu0 %v2575_v16, %s6237_s13 }
0x1425   :  { %v2675_v17 = vpop.permute.xlu0 %2674 }
0x1426   :  { %v2677_v22 = vmul.f32 %v6066_v58, %v2675_v17 }
0x1428   :  { %2790 = vrot.lane.b32.xlu1 %v2677_v22, %s6235_s7 }
0x1492   :  { %v2683_v23 = vpop.permute.xlu0 %2682 }
0x1496   :  { %v2680_v18 = vpop.permute.xlu1 %2679  ;;  %v2794_v25 = vpop.permute.xlu0 %2793 }
0x1497   :  { %v2685_v24 = vsel %vm835_vm4, %v2680_v18, %v2683_v23 }
0x1498   :  { %5269 = vmatmul.mubr.msk.f32.vlgmr.msra.gmra.mrb[34].mxu0 %vm467_vm3, %v2685_v24 }
0x1499   :  { %5791 = vmatpush3.bf16.msra.mxu0 %v6848_v53  ;;  %5298 = vmatprep.mubr.msk.f32.mxu0 %vm6239_vm12, %v6240_v41 }
0x149a   :  { %v2791_v26 = vpop.permute.xlu1 %2790  ;;  %5792 = vmatprep.subr.bf16.mxu0 %v6238_v10 }
0x149b   :  { %v2796_v3 = vsel %vm835_vm4, %v2791_v26, %v2794_v25 }
0x149c   :  { %5288 = vmatmul.mubr.msk.f32.vlgmr.msra.gmra.mrb[32].mxu1 %vm467_vm3, %v2796_v3 }
0x149d   :  { %5794 = vmatpush3.bf16.msra.mxu0 %v6857_v48  ;;  %5797 = vmatpush3.bf16.msra.mxu1 %v6985_v34 }
0x149e   :  { %5798 = vmatprep.subr.bf16.mxu1 %v6238_v10  ;;  %5807 = vmatprep.subr.bf16.mxu0 %v6238_v10 }
0x149f   :  { %5317 = vmatprep.mubr.msk.f32.mxu1 %vm6239_vm12, %v6240_v41 }
0x14a0   :  { %5299 = vmatmul.mubr.msk.f32.vlgmr.msra.gmra.mrb[36].mxu0 %vm835_vm4, %v2791_v26 }
0x14a1   :  { %5800 = vmatpush3.bf16.msra.mxu1 %v6991_v36  ;;  %5809 = vmatpush3.bf16.msra.mxu0 %v6910_v11 }
0x14a2   :  { %5801 = vmatprep.subr.bf16.mxu1 %v6238_v10  ;;  %5810 = vmatprep.subr.bf16.mxu0 %v6238_v10 }
0x14a3   :  { %5336 = vmatprep.mubr.msk.f32.mxu0 %vm6239_vm12, %v6240_v41 }
0x14a5   :  { %5803 = vmatpush3.bf16.msra.mxu1 %v7003_v13  ;;  %5812 = vmatpush3.bf16.msra.mxu0 %v6916_v42 }
0x14a6   :  { %5804 = vmatprep.subr.bf16.mxu1 %v6238_v10  ;;  %5813 = vmatprep.subr.bf16.mxu0 %v6238_v10 }
0x14a9   :  { %5806 = vmatpush3.bf16.msra.mxu1 %v7013_v44  ;;  %5815 = vmatpush3.bf16.msra.mxu0 %v6926_v45 }
0x14aa   :  { %5819 = vmatprep.subr.bf16.mxu1 %v6238_v10  ;;  %5816 = vmatprep.subr.bf16.mxu0 %v6238_v10 }
0x14ad   :  { %5818 = vmatpush3.bf16.msra.mxu0 %v6937_v50 }
0x14ae   :  { %5825 = vmatprep.subr.bf16.mxu0 %v6238_v10 }
0x156b   :  { %v2755_v31 = vpop.f32.mrb[34].mxu0 }
0x156c   :  { %v2756_v32 = vadd.f32 %v7055_v59, %v2755_v31  ;;  %v5270_v33 = vpop.f32.mrb[35].mxu0 }
0x156e   :  { %6073 = vtanh.f32 %v2756_v32  ;;  %v4568_v49 = vmul.f32 -1.442695, %v2756_v32 }
0x156f   :  { %v2866_v35 = vpop.f32.mrb[32].mxu1 }
0x1570   :  { %v2867_v37 = vadd.f32 %v6961_v56, %v2866_v35  ;;  %v5289_v12 = vpop.f32.mrb[33].mxu1 }
0x1572   :  { %6075 = vtanh.f32 %v2867_v37  ;;  %v4570_v52 = vmul.f32 -1.442695, %v2867_v37 }
0x1573   :  { %v2967_v19 = vpop.f32.mrb[36].mxu0 }
0x1574   :  { %v2971_v39 = vadd.f32 %v2967_v19, %v6885_v20  ;;  %v5300_v40 = vpop.f32.mrb[37].mxu0 }
0x1576   :  { %6077 = vtanh.f32 %v2971_v39  ;;  %v4572_v54 = vmul.f32 -1.442695, %v2971_v39 }
0x1577   :  { %6079 = vpow2.f32 %v4568_v49 }
0x1578   :  { %v6074_v38 = vpop.eup %6073  ;;  %6081 = vpow2.f32 %v4570_v52 }
0x1579   :  { %2768 = vrot.lane.b32.xlu1 %v6074_v38, %s6237_s13  ;;  %6083 = vpow2.f32 %v4572_v54 }
0x157c   :  { %v6076_v43 = vpop.eup %6075 }
0x157d   :  { %2879 = vrot.lane.b32.xlu0 %v6076_v43, %s6237_s13 }
0x1580   :  { %v6078_v47 = vpop.eup %6077 }
0x1581   :  { %2981 = vrot.lane.b32.xlu1 %v6078_v47, %s6237_s13  ;;  %v6080_v57 = vpop.eup %6079 }
0x1582   :  { %v2762_v58 = vadd.f32 1.0, %v6080_v57  ;;  %v6082_v20 = vpop.eup %6081 }
0x1583   :  { %v2873_v60 = vadd.f32 1.0, %v6082_v20  ;;  %v6084_v30 = vpop.eup %6083 }
0x1584   :  { %6085 = vrcp.f32 %v2762_v58  ;;  %v2975_v27 = vadd.f32 1.0, %v6084_v30 }
0x1585   :  { %6087 = vrcp.f32 %v2873_v60 }
0x1586   :  { %6089 = vrcp.f32 %v2975_v27 }
0x158e   :  { %v6086_v62 = vpop.eup %6085 }
0x158f   :  { %v6088_v6 = vpop.eup %6087  ;;  %v2766_v55 = vmul.f32 %v6086_v62, %v7128_v63 }
0x1590   :  { %v6090_v9 = vpop.eup %6089  ;;  %v2877_v22 = vmul.f32 %v6088_v6, %v7132_v5 }
0x1591   :  { %v2979_v24 = vmul.f32 %v6090_v9, %v7136_v8 }
0x15eb   :  { %v2769_v0 = vpop.permute.xlu1 %2768 }
0x15ec   :  { %v2771_v1 = vmul.f32 %v6086_v62, %v2769_v0 }
0x15ee   :  { %2773 = vrot.lane.b32.xlu0 %v2771_v1, %s6235_s7 }
0x15ef   :  { %v2880_v7 = vpop.permute.xlu0 %2879 }
0x15f0   :  { %v2882_v46 = vmul.f32 %v6088_v6, %v2880_v7 }
0x15f2   :  { %2884 = vrot.lane.b32.xlu1 %v2882_v46, %s6235_s7 }
0x15f3   :  { %v2982_v14 = vpop.permute.xlu1 %2981 }
0x15f4   :  { %v2984_v51 = vmul.f32 %v6090_v9, %v2982_v14 }
0x15f6   :  { %2986 = vrot.lane.b32.xlu0 %v2984_v51, %s6235_s7 }
0x1660   :  { %v2774_v16 = vpop.permute.xlu0 %2773 }
0x1661   :  { %v7190_v17 = vadd.f32 %v2774_v16, %v2766_v55 }
0x1663   :  { %6091 = vtanh.f32 %v7190_v17 }
0x1664   :  { %v2885_v23 = vpop.permute.xlu1 %2884 }
0x1665   :  { %v7194_v18 = vadd.f32 %v2885_v23, %v2877_v22 }
0x1667   :  { %6093 = vtanh.f32 %v7194_v18 }
0x1668   :  { %v2987_v25 = vpop.permute.xlu0 %2986 }
0x1669   :  { %v7198_v26 = vadd.f32 %v2987_v25, %v2979_v24 }
0x166b   :  { %6095 = vtanh.f32 %v7198_v26 }
0x166d   :  { %v6092_v63 = vpop.eup %6091 }
0x166e   :  { %2779 = vrot.lane.b32.xlu1 %v6092_v63, %s6237_s13 }
0x1671   :  { %v6094_v3 = vpop.eup %6093 }
0x1672   :  { %2890 = vrot.lane.b32.xlu0 %v6094_v3, %s6237_s13 }
0x1675   :  { %v6096_v31 = vpop.eup %6095 }
0x1676   :  { %2992 = vrot.lane.b32.xlu1 %v6096_v31, %s6237_s13 }
0x16e0   :  { %v2780_v5 = vpop.permute.xlu1 %2779 }
0x16e1   :  { %v7204_v32 = vmul.f32 %v6086_v62, %v2780_v5 }
0x16e3   :  { %3000 = vrot.lane.b32.xlu1 %v7204_v32, %s6237_s13 }
0x16e4   :  { %v2891_v8 = vpop.permute.xlu0 %2890 }
0x16e5   :  { %v2893_v33 = vmul.f32 %v6088_v6, %v2891_v8 }
0x16e7   :  { %3111 = vrot.lane.b32.xlu1 %v2893_v33, %s6237_s13  ;;  %2997 = vrot.lane.b32.xlu0 %v2893_v33, %s6235_s7 }
0x16e8   :  { %v2993_v35 = vpop.permute.xlu1 %2992 }
0x16e9   :  { %v2995_v37 = vmul.f32 %v6090_v9, %v2993_v35 }
0x16eb   :  { %3108 = vrot.lane.b32.xlu0 %v2995_v37, %s6235_s7 }
0x1755   :  { %v3001_v12 = vpop.permute.xlu1 %3000 }
0x1759   :  { %v2998_v19 = vpop.permute.xlu0 %2997  ;;  %v3112_v40 = vpop.permute.xlu1 %3111 }
0x175a   :  { %v3003_v39 = vsel %vm835_vm4, %v2998_v19, %v3001_v12 }
0x175b   :  { %5318 = vmatmul.mubr.msk.f32.vlgmr.msra.gmra.mrb[34].mxu1 %vm467_vm3, %v3003_v39 }
0x175c   :  { %5821 = vmatpush3.bf16.msra.mxu1 %v6848_v53  ;;  %5347 = vmatprep.mubr.msk.f32.mxu1 %vm6239_vm12, %v6240_v41 }
0x175d   :  { %v3109_v38 = vpop.permute.xlu0 %3108  ;;  %5822 = vmatprep.subr.bf16.mxu1 %v6238_v10 }
0x175e   :  { %v3114_v43 = vsel %vm835_vm4, %v3109_v38, %v3112_v40 }
0x175f   :  { %5337 = vmatmul.mubr.msk.f32.vlgmr.msra.gmra.mrb[38].mxu0 %vm467_vm3, %v3114_v43 }
0x1760   :  { %5824 = vmatpush3.bf16.msra.mxu1 %v6857_v48  ;;  %5827 = vmatpush3.bf16.msra.mxu0 %v6985_v34 }
0x1761   :  { %5828 = vmatprep.subr.bf16.mxu0 %v6238_v10  ;;  %5837 = vmatprep.subr.bf16.mxu1 %v6238_v10 }
0x1762   :  { %5366 = vmatprep.mubr.msk.f32.mxu0 %vm6239_vm12, %v6240_v41 }
0x1763   :  { %5348 = vmatmul.mubr.msk.f32.vlgmr.msra.gmra.mrb[36].mxu1 %vm835_vm4, %v3109_v38 }
0x1764   :  { %5830 = vmatpush3.bf16.msra.mxu0 %v6991_v36  ;;  %5839 = vmatpush3.bf16.msra.mxu1 %v6910_v11 }
0x1765   :  { %5831 = vmatprep.subr.bf16.mxu0 %v6238_v10  ;;  %5840 = vmatprep.subr.bf16.mxu1 %v6238_v10 }
0x1766   :  { %5385 = vmatprep.mubr.msk.f32.mxu1 %vm6239_vm12, %v6240_v41 }
0x1768   :  { %5833 = vmatpush3.bf16.msra.mxu0 %v7003_v13  ;;  %5842 = vmatpush3.bf16.msra.mxu1 %v6916_v42 }
0x1769   :  { %5834 = vmatprep.subr.bf16.mxu0 %v6238_v10  ;;  %5843 = vmatprep.subr.bf16.mxu1 %v6238_v10 }
0x176c   :  { %5836 = vmatpush3.bf16.msra.mxu0 %v7013_v44  ;;  %5845 = vmatpush3.bf16.msra.mxu1 %v6926_v45 }
0x176d   :  { %5849 = vmatprep.subr.bf16.mxu0 %v6238_v10  ;;  %5846 = vmatprep.subr.bf16.mxu1 %v6238_v10 }
0x1770   :  { %5848 = vmatpush3.bf16.msra.mxu1 %v6937_v50 }
0x1771   :  { %5855 = vmatprep.subr.bf16.mxu1 %v6238_v10 }
0x182e   :  { %v3073_v47 = vpop.f32.mrb[34].mxu1 }
0x182f   :  { %v3074_v49 = vadd.f32 %v7055_v59, %v3073_v47  ;;  %v5319_v52 = vpop.f32.mrb[35].mxu1 }
0x1831   :  { %6097 = vtanh.f32 %v3074_v49  ;;  %v4574_v1 = vmul.f32 -1.442695, %v3074_v49 }
0x1832   :  { %v3184_v54 = vpop.f32.mrb[38].mxu0 }
0x1833   :  { %v3185_v57 = vadd.f32 %v6961_v56, %v3184_v54  ;;  %v5338_v58 = vpop.f32.mrb[39].mxu0 }
0x1835   :  { %6099 = vtanh.f32 %v3185_v57  ;;  %v4576_v6 = vmul.f32 -1.442695, %v3185_v57 }
0x1836   :  { %v3285_v20 = vpop.f32.mrb[36].mxu1 }
0x1837   :  { %v3289_v60 = vadd.f32 %v3285_v20, %v6888_v21  ;;  %v5349_v30 = vpop.f32.mrb[37].mxu1 }
0x1839   :  { %6101 = vtanh.f32 %v3289_v60  ;;  %v4578_v56 = vmul.f32 -1.442695, %v3289_v60 }
0x183a   :  { %6103 = vpow2.f32 %v4574_v1 }
0x183b   :  { %v6098_v27 = vpop.eup %6097  ;;  %6105 = vpow2.f32 %v4576_v6 }
0x183c   :  { %3086 = vrot.lane.b32.xlu0 %v6098_v27, %s6237_s13  ;;  %6107 = vpow2.f32 %v4578_v56  ;;  %v7308_v56 = vld [vmem:[%s7581_s3 + $0x281] ss:$0 sm:$0xff] }
0x183f   :  { %v6100_v62 = vpop.eup %6099 }
0x1840   :  { %3197 = vrot.lane.b32.xlu1 %v6100_v62, %s6237_s13 }
0x1843   :  { %v6102_v0 = vpop.eup %6101 }
0x1844   :  { %3299 = vrot.lane.b32.xlu0 %v6102_v0, %s6237_s13  ;;  %v6104_v7 = vpop.eup %6103 }
0x1845   :  { %v3080_v46 = vadd.f32 1.0, %v6104_v7  ;;  %v6106_v21 = vpop.eup %6105 }
0x1846   :  { %v3191_v9 = vadd.f32 1.0, %v6106_v21  ;;  %v6108_v14 = vpop.eup %6107 }
0x1847   :  { %6109 = vrcp.f32 %v3080_v46  ;;  %v3293_v51 = vadd.f32 1.0, %v6108_v14 }
0x1848   :  { %6111 = vrcp.f32 %v3191_v9 }
0x1849   :  { %6113 = vrcp.f32 %v3293_v51 }
0x1851   :  { %v6110_v55 = vpop.eup %6109 }
0x1852   :  { %v6112_v23 = vpop.eup %6111  ;;  %v3084_v5 = vmul.f32 %v6110_v55, %v7190_v17 }
0x1853   :  { %v6114_v63 = vpop.eup %6113  ;;  %v3195_v35 = vmul.f32 %v6112_v23, %v7194_v18 }
0x1854   :  { %v3297_v19 = vmul.f32 %v6114_v63, %v7198_v26 }
0x18ae   :  { %v3087_v16 = vpop.permute.xlu0 %3086 }
0x18af   :  { %v3089_v22 = vmul.f32 %v6110_v55, %v3087_v16 }
0x18b1   :  { %3091 = vrot.lane.b32.xlu1 %v3089_v22, %s6235_s7 }
0x18b2   :  { %v3198_v24 = vpop.permute.xlu1 %3197 }
0x18b3   :  { %v3200_v25 = vmul.f32 %v6112_v23, %v3198_v24 }
0x18b5   :  { %3202 = vrot.lane.b32.xlu0 %v3200_v25, %s6235_s7 }
0x18b6   :  { %v3300_v3 = vpop.permute.xlu0 %3299 }
0x18b7   :  { %v3302_v31 = vmul.f32 %v6114_v63, %v3300_v3 }
0x18b9   :  { %3304 = vrot.lane.b32.xlu1 %v3302_v31, %s6235_s7 }
0x1923   :  { %v3092_v8 = vpop.permute.xlu1 %3091 }
0x1924   :  { %v7252_v33 = vadd.f32 %v3092_v8, %v3084_v5 }
0x1926   :  { %6115 = vtanh.f32 %v7252_v33 }
0x1927   :  { %v3203_v37 = vpop.permute.xlu0 %3202 }
0x1928   :  { %v7256_v12 = vadd.f32 %v3203_v37, %v3195_v35 }
0x192a   :  { %6117 = vtanh.f32 %v7256_v12 }
0x192b   :  { %v3305_v39 = vpop.permute.xlu1 %3304 }
0x192c   :  { %v7260_v40 = vadd.f32 %v3305_v39, %v3297_v19 }
0x192e   :  { %6119 = vtanh.f32 %v7260_v40 }
0x1930   :  { %v6116_v17 = vpop.eup %6115 }
0x1931   :  { %3097 = vrot.lane.b32.xlu0 %v6116_v17, %s6237_s13 }
0x1934   :  { %v6118_v38 = vpop.eup %6117 }
0x1935   :  { %3208 = vrot.lane.b32.xlu1 %v6118_v38, %s6237_s13 }
0x1938   :  { %v6120_v43 = vpop.eup %6119 }
0x1939   :  { %3310 = vrot.lane.b32.xlu0 %v6120_v43, %s6237_s13 }
0x19a3   :  { %v3098_v18 = vpop.permute.xlu0 %3097 }
0x19a4   :  { %v7266_v47 = vmul.f32 %v6110_v55, %v3098_v18 }
0x19a6   :  { %3318 = vrot.lane.b32.xlu0 %v7266_v47, %s6237_s13 }
0x19a7   :  { %v3209_v26 = vpop.permute.xlu1 %3208 }
0x19a8   :  { %v3211_v49 = vmul.f32 %v6112_v23, %v3209_v26 }
0x19aa   :  { %3315 = vrot.lane.b32.xlu1 %v3211_v49, %s6235_s7  ;;  %3429 = vrot.lane.b32.xlu0 %v3211_v49, %s6237_s13 }
0x19ab   :  { %v3311_v52 = vpop.permute.xlu0 %3310 }
0x19ac   :  { %v3313_v54 = vmul.f32 %v6114_v63, %v3311_v52 }
0x19ae   :  { %3426 = vrot.lane.b32.xlu1 %v3313_v54, %s6235_s7 }
0x1a18   :  { %v3319_v57 = vpop.permute.xlu0 %3318 }
0x1a1c   :  { %v3316_v58 = vpop.permute.xlu1 %3315  ;;  %v3430_v60 = vpop.permute.xlu0 %3429 }
0x1a1d   :  { %v3321_v20 = vsel %vm835_vm4, %v3316_v58, %v3319_v57 }
0x1a1e   :  { %5367 = vmatmul.mubr.msk.f32.vlgmr.msra.gmra.mrb[40].mxu0 %vm467_vm3, %v3321_v20 }
0x1a1f   :  { %5851 = vmatpush3.bf16.msra.mxu0 %v6848_v53  ;;  %5396 = vmatprep.mubr.msk.f32.mxu0 %vm6239_vm12, %v6240_v41 }
0x1a20   :  { %v3427_v30 = vpop.permute.xlu1 %3426  ;;  %5852 = vmatprep.subr.bf16.mxu0 %v6238_v10 }
0x1a21   :  { %v3432_v27 = vsel %vm835_vm4, %v3427_v30, %v3430_v60 }
0x1a22   :  { %5386 = vmatmul.mubr.msk.f32.vlgmr.msra.gmra.mrb[38].mxu1 %vm467_vm3, %v3432_v27 }
0x1a23   :  { %5854 = vmatpush3.bf16.msra.mxu0 %v6857_v48  ;;  %5857 = vmatpush3.bf16.msra.mxu1 %v6985_v34 }
0x1a24   :  { %5858 = vmatprep.subr.bf16.mxu1 %v6238_v10  ;;  %5867 = vmatprep.subr.bf16.mxu0 %v6238_v10 }
0x1a25   :  { %5415 = vmatprep.mubr.msk.f32.mxu1 %vm6239_vm12, %v6240_v41 }
0x1a26   :  { %5397 = vmatmul.mubr.msk.f32.vlgmr.msra.gmra.mrb[42].mxu0 %vm835_vm4, %v3427_v30 }
0x1a27   :  { %5860 = vmatpush3.bf16.msra.mxu1 %v6991_v36  ;;  %5869 = vmatpush3.bf16.msra.mxu0 %v6910_v11 }
0x1a28   :  { %5861 = vmatprep.subr.bf16.mxu1 %v6238_v10  ;;  %5870 = vmatprep.subr.bf16.mxu0 %v6238_v10 }
0x1a29   :  { %5434 = vmatprep.mubr.msk.f32.mxu0 %vm6239_vm12, %v6240_v41 }
0x1a2b   :  { %5863 = vmatpush3.bf16.msra.mxu1 %v7003_v13  ;;  %5872 = vmatpush3.bf16.msra.mxu0 %v6916_v42 }
0x1a2c   :  { %5864 = vmatprep.subr.bf16.mxu1 %v6238_v10  ;;  %5873 = vmatprep.subr.bf16.mxu0 %v6238_v10 }
0x1a2f   :  { %5866 = vmatpush3.bf16.msra.mxu1 %v7013_v44  ;;  %5875 = vmatpush3.bf16.msra.mxu0 %v6926_v45 }
0x1a30   :  { %5879 = vmatprep.subr.bf16.mxu1 %v6238_v10  ;;  %5876 = vmatprep.subr.bf16.mxu0 %v6238_v10 }
0x1a33   :  { %5878 = vmatpush3.bf16.msra.mxu0 %v6937_v50 }
0x1a34   :  { %5885 = vmatprep.subr.bf16.mxu0 %v6238_v10 }
0x1af1   :  { %v3391_v62 = vpop.f32.mrb[40].mxu0 }
0x1af2   :  { %v3392_v0 = vadd.f32 %v7055_v59, %v3391_v62  ;;  %v5368_v1 = vpop.f32.mrb[41].mxu0 }
0x1af4   :  { %6121 = vtanh.f32 %v3392_v0  ;;  %v4580_v16 = vmul.f32 -1.442695, %v3392_v0 }
0x1af5   :  { %v3502_v6 = vpop.f32.mrb[38].mxu1 }
0x1af6   :  { %v3503_v7 = vadd.f32 %v7308_v56, %v3502_v6  ;;  %v5387_v46 = vpop.f32.mrb[39].mxu1 }
0x1af8   :  { %6123 = vtanh.f32 %v3503_v7  ;;  %v4582_v22 = vmul.f32 -1.442695, %v3503_v7 }
0x1af9   :  { %v3603_v21 = vpop.f32.mrb[42].mxu0 }
0x1afa   :  { %v3607_v9 = vadd.f32 %v3603_v21, %v6891_v28  ;;  %v5398_v14 = vpop.f32.mrb[43].mxu0 }
0x1afc   :  { %6125 = vtanh.f32 %v3607_v9  ;;  %v4584_v23 = vmul.f32 -1.442695, %v3607_v9 }
0x1afd   :  { %6127 = vpow2.f32 %v4580_v16 }
0x1afe   :  { %v6122_v51 = vpop.eup %6121  ;;  %6129 = vpow2.f32 %v4582_v22 }
0x1aff   :  { %3404 = vrot.lane.b32.xlu1 %v6122_v51, %s6237_s13  ;;  %6131 = vpow2.f32 %v4584_v23 }
0x1b02   :  { %v6124_v59 = vpop.eup %6123 }
0x1b03   :  { %3515 = vrot.lane.b32.xlu0 %v6124_v59, %s6237_s13 }
0x1b06   :  { %v6126_v55 = vpop.eup %6125 }
0x1b07   :  { %3617 = vrot.lane.b32.xlu1 %v6126_v55, %s6237_s13  ;;  %v6128_v24 = vpop.eup %6127 }
0x1b08   :  { %v3398_v25 = vadd.f32 1.0, %v6128_v24  ;;  %v6130_v28 = vpop.eup %6129 }
0x1b09   :  { %v3509_v63 = vadd.f32 1.0, %v6130_v28  ;;  %v6132_v3 = vpop.eup %6131 }
0x1b0a   :  { %6133 = vrcp.f32 %v3398_v25  ;;  %v3611_v31 = vadd.f32 1.0, %v6132_v3 }
0x1b0b   :  { %6135 = vrcp.f32 %v3509_v63 }
0x1b0c   :  { %6137 = vrcp.f32 %v3611_v31 }
0x1b14   :  { %v6134_v5 = vpop.eup %6133 }
0x1b15   :  { %v6136_v37 = vpop.eup %6135  ;;  %v3402_v18 = vmul.f32 %v6134_v5, %v7252_v33 }
0x1b16   :  { %v6138_v17 = vpop.eup %6137  ;;  %v3513_v52 = vmul.f32 %v6136_v37, %v7256_v12 }
0x1b17   :  { %v3615_v58 = vmul.f32 %v6138_v17, %v7260_v40 }
0x1b71   :  { %v3405_v8 = vpop.permute.xlu1 %3404 }
0x1b72   :  { %v3407_v35 = vmul.f32 %v6134_v5, %v3405_v8 }
0x1b74   :  { %3409 = vrot.lane.b32.xlu0 %v3407_v35, %s6235_s7 }
0x1b75   :  { %v3516_v19 = vpop.permute.xlu0 %3515 }
0x1b76   :  { %v3518_v39 = vmul.f32 %v6136_v37, %v3516_v19 }
0x1b78   :  { %3520 = vrot.lane.b32.xlu1 %v3518_v39, %s6235_s7 }
0x1b79   :  { %v3618_v38 = vpop.permute.xlu1 %3617 }
0x1b7a   :  { %v3620_v43 = vmul.f32 %v6138_v17, %v3618_v38 }
0x1b7c   :  { %3622 = vrot.lane.b32.xlu0 %v3620_v43, %s6235_s7 }
0x1be6   :  { %v3410_v26 = vpop.permute.xlu0 %3409 }
0x1be7   :  { %v7319_v49 = vadd.f32 %v3410_v26, %v3402_v18 }
0x1be9   :  { %6139 = vtanh.f32 %v7319_v49 }
0x1bea   :  { %v3521_v54 = vpop.permute.xlu1 %3520 }
0x1beb   :  { %v7323_v57 = vadd.f32 %v3521_v54, %v3513_v52 }
0x1bed   :  { %6141 = vtanh.f32 %v7323_v57 }
0x1bee   :  { %v3623_v20 = vpop.permute.xlu0 %3622 }
0x1bef   :  { %v7327_v60 = vadd.f32 %v3623_v20, %v3615_v58 }
0x1bf1   :  { %6143 = vtanh.f32 %v7327_v60 }
0x1bf3   :  { %v6140_v33 = vpop.eup %6139 }
0x1bf4   :  { %3415 = vrot.lane.b32.xlu1 %v6140_v33, %s6237_s13 }
0x1bf7   :  { %v6142_v30 = vpop.eup %6141 }
0x1bf8   :  { %3526 = vrot.lane.b32.xlu0 %v6142_v30, %s6237_s13 }
0x1bfb   :  { %v6144_v27 = vpop.eup %6143 }
0x1bfc   :  { %3628 = vrot.lane.b32.xlu1 %v6144_v27, %s6237_s13 }
0x1c66   :  { %v3416_v12 = vpop.permute.xlu1 %3415 }
0x1c67   :  { %v7333_v62 = vmul.f32 %v6134_v5, %v3416_v12 }
0x1c69   :  { %3636 = vrot.lane.b32.xlu1 %v7333_v62, %s6237_s13 }
0x1c6a   :  { %v3527_v40 = vpop.permute.xlu0 %3526 }
0x1c6b   :  { %v3529_v0 = vmul.f32 %v6136_v37, %v3527_v40 }
0x1c6d   :  { %3747 = vrot.lane.b32.xlu1 %v3529_v0, %s6237_s13  ;;  %3633 = vrot.lane.b32.xlu0 %v3529_v0, %s6235_s7 }
0x1c6e   :  { %v3629_v1 = vpop.permute.xlu1 %3628 }
0x1c6f   :  { %v3631_v6 = vmul.f32 %v6138_v17, %v3629_v1 }
0x1c71   :  { %3744 = vrot.lane.b32.xlu0 %v3631_v6, %s6235_s7 }
0x1cdb   :  { %v3637_v7 = vpop.permute.xlu1 %3636 }
0x1cdf   :  { %v3634_v46 = vpop.permute.xlu0 %3633  ;;  %v3748_v9 = vpop.permute.xlu1 %3747 }
0x1ce0   :  { %v3639_v21 = vsel %vm835_vm4, %v3634_v46, %v3637_v7 }
0x1ce1   :  { %5416 = vmatmul.mubr.msk.f32.vlgmr.msra.gmra.mrb[40].mxu1 %vm467_vm3, %v3639_v21 }
0x1ce2   :  { %5881 = vmatpush3.bf16.msra.mxu1 %v6848_v53  ;;  %5445 = vmatprep.mubr.msk.f32.mxu1 %vm6239_vm12, %v6240_v41 }
0x1ce3   :  { %v3745_v14 = vpop.permute.xlu0 %3744  ;;  %5882 = vmatprep.subr.bf16.mxu1 %v6238_v10 }
0x1ce4   :  { %v3750_v51 = vsel %vm835_vm4, %v3745_v14, %v3748_v9 }
0x1ce5   :  { %5435 = vmatmul.mubr.msk.f32.vlgmr.msra.gmra.mrb[44].mxu0 %vm467_vm3, %v3750_v51 }
0x1ce6   :  { %5884 = vmatpush3.bf16.msra.mxu1 %v6857_v48  ;;  %5887 = vmatpush3.bf16.msra.mxu0 %v6985_v34  ;;  %v7374_v48 = vld [vmem:[%s7581_s3 + $0x282] ss:$0 sm:$0xff] }
0x1ce7   :  { %5888 = vmatprep.subr.bf16.mxu0 %v6238_v10  ;;  %5897 = vmatprep.subr.bf16.mxu1 %v6238_v10 }
0x1ce8   :  { %5464 = vmatprep.mubr.msk.f32.mxu0 %vm6239_vm12, %v6240_v41 }
0x1ce9   :  { %5446 = vmatmul.mubr.msk.f32.vlgmr.msra.gmra.mrb[42].mxu1 %vm835_vm4, %v3745_v14 }
0x1cea   :  { %5890 = vmatpush3.bf16.msra.mxu0 %v6991_v36  ;;  %5899 = vmatpush3.bf16.msra.mxu1 %v6910_v11 }
0x1ceb   :  { %5891 = vmatprep.subr.bf16.mxu0 %v6238_v10  ;;  %5900 = vmatprep.subr.bf16.mxu1 %v6238_v10 }
0x1cec   :  { %5483 = vmatprep.mubr.msk.f32.mxu1 %vm6239_vm12, %v6240_v41 }
0x1cee   :  { %5893 = vmatpush3.bf16.msra.mxu0 %v7003_v13  ;;  %5902 = vmatpush3.bf16.msra.mxu1 %v6916_v42 }
0x1cef   :  { %5894 = vmatprep.subr.bf16.mxu0 %v6238_v10  ;;  %5903 = vmatprep.subr.bf16.mxu1 %v6238_v10 }
0x1cf2   :  { %5896 = vmatpush3.bf16.msra.mxu0 %v7013_v44  ;;  %5905 = vmatpush3.bf16.msra.mxu1 %v6926_v45 }
0x1cf3   :  { %5906 = vmatprep.subr.bf16.mxu1 %v6238_v10  ;;  %5909 = vmatprep.subr.bf16.mxu0 %v6238_v10 }
0x1cf6   :  { %5908 = vmatpush3.bf16.msra.mxu1 %v6937_v50 }
0x1cf7   :  { %5921 = vmatprep.subr.bf16.mxu1 %v6238_v10 }
0x1db4   :  { %v3709_v53 = vpop.f32.mrb[40].mxu1 }
0x1db5   :  { %v3710_v11 = vadd.f32 %v7374_v48, %v3709_v53  ;;  %v5417_v42 = vpop.f32.mrb[41].mxu1 }
0x1db7   :  { %6145 = vtanh.f32 %v3710_v11  ;;  %v4586_v28 = vmul.f32 -1.442695, %v3710_v11 }
0x1db8   :  { %v3820_v59 = vpop.f32.mrb[44].mxu0 }
0x1db9   :  { %v3821_v45 = vadd.f32 %v7308_v56, %v3820_v59  ;;  %v5436_v55 = vpop.f32.mrb[45].mxu0 }
0x1dbb   :  { %6147 = vtanh.f32 %v3821_v45  ;;  %v4588_v63 = vmul.f32 -1.442695, %v3821_v45 }
0x1dbc   :  { %v3921_v16 = vpop.f32.mrb[42].mxu1 }
0x1dbd   :  { %v3925_v50 = vadd.f32 %v3921_v16, %v6894_v29  ;;  %v5447_v22 = vpop.f32.mrb[43].mxu1 }
0x1dbf   :  { %6149 = vtanh.f32 %v3925_v50  ;;  %v4590_v3 = vmul.f32 -1.442695, %v3925_v50 }
0x1dc0   :  { %6151 = vpow2.f32 %v4586_v28 }
0x1dc1   :  { %v6146_v23 = vpop.eup %6145  ;;  %6153 = vpow2.f32 %v4588_v63 }
0x1dc2   :  { %3722 = vrot.lane.b32.xlu0 %v6146_v23, %s6237_s13  ;;  %6155 = vpow2.f32 %v4590_v3 }
0x1dc5   :  { %v6148_v24 = vpop.eup %6147 }
0x1dc6   :  { %3833 = vrot.lane.b32.xlu1 %v6148_v24, %s6237_s13 }
0x1dc9   :  { %v6150_v25 = vpop.eup %6149 }
0x1dca   :  { %3935 = vrot.lane.b32.xlu0 %v6150_v25, %s6237_s13  ;;  %v6152_v31 = vpop.eup %6151 }
0x1dcb   :  { %v3716_v5 = vadd.f32 1.0, %v6152_v31  ;;  %v6154_v29 = vpop.eup %6153 }
0x1dcc   :  { %v3827_v8 = vadd.f32 1.0, %v6154_v29  ;;  %v6156_v35 = vpop.eup %6155 }
0x1dcd   :  { %6157 = vrcp.f32 %v3716_v5  ;;  %v3929_v37 = vadd.f32 1.0, %v6156_v35 }
0x1dce   :  { %6159 = vrcp.f32 %v3827_v8 }
0x1dcf   :  { %6161 = vrcp.f32 %v3929_v37 }
0x1dd7   :  { %v6158_v19 = vpop.eup %6157 }
0x1dd8   :  { %v6160_v38 = vpop.eup %6159  ;;  %v3720_v58 = vmul.f32 %v6158_v19, %v7319_v49 }
0x1dd9   :  { %v6162_v26 = vpop.eup %6161  ;;  %v3831_v30 = vmul.f32 %v6160_v38, %v7323_v57 }
0x1dda   :  { %v3933_v40 = vmul.f32 %v6162_v26, %v7327_v60 }
0x1e34   :  { %v3723_v39 = vpop.permute.xlu0 %3722 }
0x1e35   :  { %v3725_v17 = vmul.f32 %v6158_v19, %v3723_v39 }
0x1e37   :  { %3727 = vrot.lane.b32.xlu1 %v3725_v17, %s6235_s7 }
0x1e38   :  { %v3834_v43 = vpop.permute.xlu1 %3833 }
0x1e39   :  { %v3836_v18 = vmul.f32 %v6160_v38, %v3834_v43 }
0x1e3b   :  { %3838 = vrot.lane.b32.xlu0 %v3836_v18, %s6235_s7 }
0x1e3c   :  { %v3936_v52 = vpop.permute.xlu0 %3935 }
0x1e3d   :  { %v3938_v54 = vmul.f32 %v6162_v26, %v3936_v52 }
0x1e3f   :  { %3940 = vrot.lane.b32.xlu1 %v3938_v54, %s6235_s7 }
0x1ea9   :  { %v3728_v20 = vpop.permute.xlu1 %3727 }
0x1eaa   :  { %v7386_v33 = vadd.f32 %v3728_v20, %v3720_v58 }
0x1eac   :  { %6163 = vtanh.f32 %v7386_v33 }
0x1ead   :  { %v3839_v27 = vpop.permute.xlu0 %3838 }
0x1eae   :  { %v7390_v12 = vadd.f32 %v3839_v27, %v3831_v30 }
0x1eb0   :  { %6165 = vtanh.f32 %v7390_v12 }
0x1eb1   :  { %v3941_v0 = vpop.permute.xlu1 %3940 }
0x1eb2   :  { %v3943_v1 = vadd.f32 %v3941_v0, %v3933_v40 }
0x1eb4   :  { %6167 = vtanh.f32 %v3943_v1 }
0x1eb6   :  { %v6164_v6 = vpop.eup %6163 }
0x1eb7   :  { %3733 = vrot.lane.b32.xlu0 %v6164_v6, %s6237_s13 }
0x1eba   :  { %v6166_v49 = vpop.eup %6165 }
0x1ebb   :  { %3844 = vrot.lane.b32.xlu1 %v6166_v49, %s6237_s13 }
0x1ebe   :  { %v6168_v7 = vpop.eup %6167 }
0x1ebf   :  { %3946 = vrot.lane.b32.xlu0 %v6168_v7, %s6237_s13 }
0x1f29   :  { %v3734_v57 = vpop.permute.xlu0 %3733 }
0x1f2a   :  { %v7397_v46 = vmul.f32 %v6158_v19, %v3734_v57 }
0x1f2c   :  { %3954 = vrot.lane.b32.xlu0 %v7397_v46, %s6237_s13 }
0x1f2d   :  { %v3845_v21 = vpop.permute.xlu1 %3844 }
0x1f2e   :  { %v3847_v60 = vmul.f32 %v6160_v38, %v3845_v21 }
0x1f30   :  { %3951 = vrot.lane.b32.xlu1 %v3847_v60, %s6235_s7  ;;  %4065 = vrot.lane.b32.xlu0 %v3847_v60, %s6237_s13 }
0x1f31   :  { %v3947_v9 = vpop.permute.xlu0 %3946 }
0x1f32   :  { %v3949_v14 = vmul.f32 %v6162_v26, %v3947_v9 }
0x1f34   :  { %4062 = vrot.lane.b32.xlu1 %v3949_v14, %s6235_s7 }
0x1f9e   :  { %v3955_v51 = vpop.permute.xlu0 %3954 }
0x1fa2   :  { %v3952_v53 = vpop.permute.xlu1 %3951  ;;  %v4066_v42 = vpop.permute.xlu0 %4065 }
0x1fa3   :  { %v3957_v11 = vsel %vm835_vm4, %v3952_v53, %v3955_v51  ;;  %v6207_v53 = vld [vmem:[#allocation3] sm:$0xff] }
0x1fa4   :  { %5465 = vmatmul.mubr.msk.f32.vlgmr.msra.gmra.mrb[46].mxu0 %vm467_vm3, %v3957_v11  ;;  %v4318_v11 = vrot.slane %v6207_v53, 4 }
0x1fa5   :  { %5911 = vmatpush3.bf16.msra.mxu0 %v6985_v34  ;;  %5502 = vmatprep.mubr.msk.f32.mxu0 %vm6239_vm12, %v6240_v41 }
0x1fa6   :  { %v4063_v59 = vpop.permute.xlu1 %4062  ;;  %5912 = vmatprep.subr.bf16.mxu0 %v6238_v10 }
0x1fa7   :  { %v4068_v45 = vsel %vm835_vm4, %v4063_v59, %v4066_v42  ;;  %v4319_v42 = vmax.f32 %v6207_v53, %v4318_v11 }
0x1fa8   :  { %5484 = vmatmul.mubr.msk.f32.vlgmr.msra.gmra.mrb[44].mxu1 %vm467_vm3, %v4068_v45 }
0x1fa9   :  { %5914 = vmatpush3.bf16.msra.mxu0 %v6991_v36  ;;  %v4320_v59 = vrot.slane %v4319_v42, 2 }
0x1faa   :  { %5915 = vmatprep.subr.bf16.mxu0 %v6238_v10 }
0x1fab   :  { %v4321_v45 = vmax.f32 %v4319_v42, %v4320_v59 }
0x1fad   :  { %5917 = vmatpush3.bf16.msra.mxu0 %v7003_v13 }
0x1fae   :  { %5918 = vmatprep.subr.bf16.mxu0 %v6238_v10 }
0x1fb1   :  { %5920 = vmatpush3.bf16.msra.mxu0 %v7013_v44 }
0x2077   :  { %v4027_v34 = vpop.f32.mrb[46].mxu0 }
0x2078   :  { %v4028_v41 = vadd.f32 %v7374_v48, %v4027_v34  ;;  %v5466_v55 = vpop.f32.mrb[47].mxu0 }
0x2079   :  { %v4322_v55 = vrot.slane %v4321_v45, 1 }
0x207a   :  { %6169 = vtanh.f32 %v4028_v41  ;;  %v4592_v13 = vmul.f32 -1.442695, %v4028_v41 }
0x207b   :  { %v4138_v16 = vpop.f32.mrb[44].mxu1 }
0x207c   :  { %v4139_v50 = vadd.f32 %v7308_v56, %v4138_v16  ;;  %v5485_v22 = vpop.f32.mrb[45].mxu1 }
0x207e   :  { %6171 = vtanh.f32 %v4139_v50  ;;  %v4594_v24 = vmul.f32 -1.442695, %v4139_v50 }
0x207f   :  { %6173 = vpow2.f32 %v4592_v13  ;;  %v4597_v13 = vld [vmem:[%s7579_s1 + $0xc5] ss:$0 sm:$0xff] }
0x2080   :  { %6175 = vpow2.f32 %v4594_v24 }
0x2084   :  { %v6170_v23 = vpop.eup %6169 }
0x2085   :  { %4040 = vrot.lane.b32.xlu1 %v6170_v23, %s6237_s13 }
0x2088   :  { %v6172_v36 = vpop.eup %6171 }
0x2089   :  { %4151 = vrot.lane.b32.xlu0 %v6172_v36, %s6237_s13  ;;  %v6174_v44 = vpop.eup %6173 }
0x208a   :  { %v4034_v25 = vadd.f32 1.0, %v6174_v44  ;;  %v6176_v28 = vpop.eup %6175 }
0x208b   :  { %v4145_v63 = vadd.f32 1.0, %v6176_v28 }
0x208c   :  { %6177 = vrcp.f32 %v4034_v25 }
0x208d   :  { %6179 = vrcp.f32 %v4145_v63 }
0x2096   :  { %v6178_v3 = vpop.eup %6177 }
0x2097   :  { %v6180_v5 = vpop.eup %6179  ;;  %v4038_v35 = vmul.f32 %v6178_v3, %v7386_v33 }
0x2098   :  { %v4149_v39 = vmul.f32 %v6180_v5, %v7390_v12 }
0x20f7   :  { %v4041_v56 = vpop.permute.xlu1 %4040 }
0x20f8   :  { %v4043_v31 = vmul.f32 %v6178_v3, %v4041_v56  ;;  %v6208_v56 = vld [vmem:[#allocation3 + $0x8] sm:$0xff] }
0x20fa   :  { %4045 = vrot.lane.b32.xlu1 %v4043_v31, %s6235_s7  ;;  %v4354_v31 = vrot.slane %v6208_v56, 4 }
0x20fb   :  { %v4152_v29 = vpop.permute.xlu0 %4151 }
0x20fc   :  { %v4154_v8 = vmul.f32 %v6180_v5, %v4152_v29 }
0x20fe   :  { %4156 = vrot.lane.b32.xlu0 %v4154_v8, %s6235_s7 }
0x216c   :  { %v4046_v37 = vpop.permute.xlu1 %4045 }
0x216d   :  { %v4048_v19 = vadd.f32 %v4046_v37, %v4038_v35 }
0x216f   :  { %6181 = vtanh.f32 %v4048_v19 }
0x2170   :  { %v4157_v17 = vpop.permute.xlu0 %4156 }
0x2171   :  { %v4159_v38 = vadd.f32 %v4157_v17, %v4149_v39  ;;  %v139_v39 = vld [vmem:[%s7581_s3 + $0x1e8] sm:$0xff] }
0x2173   :  { %6183 = vtanh.f32 %v4159_v38  ;;  %v140_v38 = vld [vmem:[%s7581_s3 + $0x1f0] sm:$0xff] }
0x2179   :  { %v6182_v43 = vpop.eup %6181 }
0x217a   :  { %4051 = vrot.lane.b32.xlu1 %v6182_v43, %s6237_s13  ;;  %v141_v43 = vld [vmem:[%s7581_s3 + $0x1f8] sm:$0xff] }
0x217d   :  { %v6184_v18 = vpop.eup %6183 }
0x217e   :  { %4162 = vrot.lane.b32.xlu0 %v6184_v18, %s6237_s13  ;;  %v5925_v18 = vpack.c.bf16 %v141_v43, %v140_v38 }
0x21ec   :  { %v4052_v26 = vpop.permute.xlu1 %4051 }
0x21ed   :  { %v4054_v52 = vmul.f32 %v6178_v3, %v4052_v26  ;;  %v142_v26 = vld [vmem:[%s7581_s3 + $0x200] sm:$0xff] }
0x21ef   :  { %4170 = vrot.lane.b32.xlu0 %v4054_v52, %s6237_s13 }
0x21f0   :  { %v4163_v54 = vpop.permute.xlu0 %4162 }
0x21f1   :  { %v4165_v58 = vmul.f32 %v6180_v5, %v4163_v54  ;;  %v4355_v5 = vmax.f32 %v6208_v56, %v4354_v31 }
0x21f3   :  { %4167 = vrot.lane.b32.xlu1 %v4165_v58, %s6235_s7  ;;  %v4356_v29 = vrot.slane %v4355_v5, 2  ;;  %v144_v58 = vld [vmem:[%s7581_s3 + $0x210] sm:$0xff] }
0x21f5   :  { %v4357_v8 = vmax.f32 %v4355_v5, %v4356_v29 }
0x21f7   :  { %v4358_v35 = vrot.slane %v4357_v8, 1 }
0x21f9   :  { %v4359_v37 = vmax.f32 %v4357_v8, %v4358_v35 }
0x2261   :  { %v4171_v20 = vpop.permute.xlu0 %4170 }
0x2265   :  { %v4168_v33 = vpop.permute.xlu1 %4167 }
0x2266   :  { %v4173_v30 = vsel %vm835_vm4, %v4168_v33, %v4171_v20  ;;  %v145_v20 = vld [vmem:[%s7581_s3 + $0x218] sm:$0xff] }
0x2267   :  { %5503 = vmatmul.mubr.msk.f32.vlgmr.msra.gmra.mrb[48].mxu0 %vm467_vm3, %v4173_v30  ;;  %v5931_v33 = vpack.c.bf16 %v145_v20, %v144_v58  ;;  %v146_v30 = vld [vmem:[%s7581_s3 + $0x220] sm:$0xff] }
0x233a   :  { %v4243_v27 = vpop.f32.mrb[48].mxu0 }
0x233b   :  { %v4244_v12 = vadd.f32 %v7374_v48, %v4243_v27  ;;  %v5504_v40 = vpop.f32.mrb[49].mxu0  ;;  %v147_v27 = vld [vmem:[%s7581_s3 + $0x228] sm:$0xff] }
0x233c   :  { %v148_v40 = vld [vmem:[%s7581_s3 + $0x230] sm:$0xff] }
0x233d   :  { %6185 = vtanh.f32 %v4244_v12  ;;  %v4596_v1 = vmul.f32 -1.442695, %v4244_v12  ;;  %v5934_v12 = vpack.c.bf16 %v147_v27, %v146_v30 }
0x233f   :  { %6187 = vpow2.f32 %v4596_v1 }
0x2347   :  { %v6186_v0 = vpop.eup %6185 }
0x2348   :  { %4256 = vrot.lane.b32.xlu1 %v6186_v0, %s6237_s13  ;;  %v149_v0 = vld [vmem:[%s7581_s3 + $0x238] sm:$0xff] }
0x2349   :  { %v6188_v6 = vpop.eup %6187  ;;  %v5937_v1 = vpack.c.bf16 %v149_v0, %v148_v40 }
0x234a   :  { %v4250_v49 = vadd.f32 1.0, %v6188_v6  ;;  %v150_v6 = vld [vmem:[%s7581_s3 + $0x240] sm:$0xff] }
0x234c   :  { %6189 = vrcp.f32 %v4250_v49  ;;  %v151_v49 = vld [vmem:[%s7581_s3 + $0x248] sm:$0xff] }
0x2356   :  { %v6190_v7 = vpop.eup %6189 }
0x2357   :  { %v4254_v48 = vmul.f32 %v6190_v7, %v4048_v19  ;;  %v138_v19 = vld [vmem:[%s7581_s3 + $0x1e0] sm:$0xff] }
0x2358   :  { %v5922_v17 = vpack.c.bf16 %v139_v39, %v138_v19 }
0x235a   :  { %5923 = vmatpush1.bf16.msra.mxu1 %v5922_v17 }
0x235b   :  { %5924 = vmatprep.subr.bf16.mxu1 %v6238_v10 }
0x235e   :  { %5926 = vmatpush1.bf16.msra.mxu1 %v5925_v18 }
0x235f   :  { %5927 = vmatprep.subr.bf16.mxu1 %v6238_v10 }
0x23ba   :  { %v4257_v57 = vpop.permute.xlu1 %4256 }
0x23bb   :  { %v4259_v21 = vmul.f32 %v6190_v7, %v4257_v57  ;;  %v152_v57 = vld [vmem:[%s7581_s3 + $0x250] sm:$0xff] }
0x23bd   :  { %4261 = vrot.lane.b32.xlu0 %v4259_v21, %s6235_s7  ;;  %v153_v21 = vld [vmem:[%s7581_s3 + $0x258] sm:$0xff] }
0x23c1   :  { %2146 = vrot.lane.b32.xlu0 %v7080_v61, %s6235_s7 }
0x23c5   :  { %2784 = vrot.lane.b32.xlu0 %v7204_v32, %s6235_s7 }
0x23c9   :  { %3420 = vrot.lane.b32.xlu0 %v7333_v62, %s6235_s7 }
0x23cd   :  { %4056 = vrot.lane.b32.xlu0 %v4054_v52, %s6235_s7  ;;  %v143_v52 = vld [vmem:[%s7581_s3 + $0x208] sm:$0xff] }
0x23ce   :  { %v5928_v54 = vpack.c.bf16 %v143_v52, %v142_v26 }
0x23d0   :  { %5929 = vmatpush1.bf16.msra.mxu1 %v5928_v54 }
0x23d1   :  { %5930 = vmatprep.subr.bf16.mxu1 %v6238_v10 }
0x23d4   :  { %5932 = vmatpush1.bf16.msra.mxu1 %v5931_v33 }
0x23d5   :  { %5933 = vmatprep.subr.bf16.mxu1 %v6238_v10 }
0x23d8   :  { %5935 = vmatpush1.bf16.msra.mxu1 %v5934_v12 }
0x23d9   :  { %5936 = vmatprep.subr.bf16.mxu1 %v6238_v10 }
0x23dc   :  { %5938 = vmatpush1.bf16.msra.mxu1 %v5937_v1 }
0x23dd   :  { %5939 = vmatprep.subr.bf16.mxu1 %v6238_v10 }
0x242f   :  { %v4262_v60 = vpop.permute.xlu0 %4261 }
0x2430   :  { %v4264_v9 = vadd.f32 %v4262_v60, %v4254_v48  ;;  %v5943_v48 = vpack.c.bf16 %v153_v21, %v152_v57  ;;  %v154_v60 = vld [vmem:[%s7581_s3 + $0x260] sm:$0xff] }
0x2432   :  { %6191 = vtanh.f32 %v4264_v9  ;;  %v155_v9 = vld [vmem:[%s7581_s3 + $0x268] sm:$0xff] }
0x2433   :  { %v2147_v14 = vpop.permute.xlu0 %2146 }
0x2434   :  { %2150 = vst.msk [vmem:[#allocation2] sm:$0x1] %vm2149_vm13, %v2147_v14 }
0x2435   :  { %2152 = vst.msk [vmem:[#allocation2 + $0x7] sm:$0x2] %vm2151_vm14, %v2147_v14  ;;  %v5946_v14 = vpack.c.bf16 %v155_v9, %v154_v60 }
0x2437   :  { %v2785_v61 = vpop.permute.xlu0 %2784 }
0x2438   :  { %2787 = vst.msk [vmem:[#allocation2 + $0x2] sm:$0x1] %vm2149_vm13, %v2785_v61 }
0x2439   :  { %2788 = vst.msk [vmem:[#allocation2 + $0x9] sm:$0x2] %vm2151_vm14, %v2785_v61  ;;  %v156_v61 = vld [vmem:[%s7581_s3 + $0x270] sm:$0xff] }
0x243b   :  { %v3421_v32 = vpop.permute.xlu0 %3420 }
0x243c   :  { %v6192_v62 = vpop.eup %6191  ;;  %3423 = vst.msk [vmem:[#allocation2 + $0x4] sm:$0x1] %vm2149_vm13, %v3421_v32 }
0x243d   :  { %3424 = vst.msk [vmem:[#allocation2 + $0xb] sm:$0x2] %vm2151_vm14, %v3421_v32  ;;  %4267 = vrot.lane.b32.xlu1 %v6192_v62, %s6237_s13  ;;  %v157_v32 = vld [vmem:[%s7581_s3 + $0x278] sm:$0xff] }
0x243e   :  { %v5949_v62 = vpack.c.bf16 %v157_v32, %v156_v61 }
0x243f   :  { %v4057_v51 = vpop.permute.xlu0 %4056 }
0x2440   :  { %4059 = vst.msk [vmem:[#allocation2 + $0x6] sm:$0x1] %vm2149_vm13, %v4057_v51 }
0x2441   :  { %4060 = vst.msk [vmem:[#allocation2 + $0xd] sm:$0x2] %vm2151_vm14, %v4057_v51  ;;  %2466 = vrot.lane.b32.xlu1 %v7142_v15, %s6235_s7  ;;  %v4323_v15 = vmax.f32 %v4321_v45, %v4322_v55 }
0x2445   :  { %3102 = vrot.lane.b32.xlu1 %v7266_v47, %s6235_s7 }
0x2449   :  { %3738 = vrot.lane.b32.xlu1 %v7397_v46, %s6235_s7 }
0x24af   :  { %v4268_v34 = vpop.permute.xlu1 %4267 }
0x24b0   :  { %v4270_v41 = vmul.f32 %v6190_v7, %v4268_v34  ;;  %v5940_v7 = vpack.c.bf16 %v151_v49, %v150_v6 }
0x24b2   :  { %4272 = vrot.lane.b32.xlu1 %v4270_v41, %s6235_s7  ;;  %5941 = vmatpush1.bf16.msra.mxu1 %v5940_v7 }
0x24b3   :  { %v2467_v16 = vpop.permute.xlu1 %2466  ;;  %5942 = vmatprep.subr.bf16.mxu1 %v6238_v10 }
0x24b4   :  { %2469 = vst.msk [vmem:[#allocation2 + $0x1] sm:$0x1] %vm2149_vm13, %v2467_v16 }
0x24b5   :  { %2470 = vst.msk [vmem:[#allocation2 + $0x8] sm:$0x2] %vm2151_vm14, %v2467_v16 }
0x24b6   :  { %4325 = vrot.lane.b32.xlu1 %v4323_v15, %s6235_s7  ;;  %5944 = vmatpush1.bf16.msra.mxu1 %v5943_v48 }
0x24b7   :  { %v3103_v47 = vpop.permute.xlu1 %3102  ;;  %5945 = vmatprep.subr.bf16.mxu1 %v6238_v10 }
0x24b8   :  { %3105 = vst.msk [vmem:[#allocation2 + $0x3] sm:$0x1] %vm2149_vm13, %v3103_v47 }
0x24b9   :  { %3106 = vst.msk [vmem:[#allocation2 + $0xa] sm:$0x2] %vm2151_vm14, %v3103_v47 }
0x24ba   :  { %5947 = vmatpush1.bf16.msra.mxu1 %v5946_v14 }
0x24bb   :  { %v3739_v46 = vpop.permute.xlu1 %3738  ;;  %5948 = vmatprep.subr.bf16.mxu1 %v6238_v10 }
0x24bc   :  { %3741 = vst.msk [vmem:[#allocation2 + $0x5] sm:$0x1] %vm2149_vm13, %v3739_v46 }
0x24bd   :  { %3742 = vst.msk [vmem:[#allocation2 + $0xc] sm:$0x2] %vm2151_vm14, %v3739_v46 }
0x24be   :  { %5950 = vmatpush1.bf16.msra.mxu1 %v5949_v62 }
0x2524   :  { %v4273_v50 = vpop.permute.xlu1 %4272 }
0x2525   :  { %4275 = vst.msk [vmem:[#allocation2 + $0x7] sm:$0x1] %vm2149_vm13, %v4273_v50 }
0x2526   :  { %4276 = vst.msk [vmem:[#allocation2 + $0xe] sm:$0x2] %vm2151_vm14, %v4273_v50 }
0x2528   :  { %v7466_v22 = vpop.permute.xlu1 %4325 }
0x2529   :  { %4598 = vmatprep.mubr.msk.f32.mxu1 %vm835_vm4, %v7466_v22 }
0x252c   :  { %v7472_v36 = vld [vmem:[#allocation2] sm:$0xff] }
0x252d   :  { %v7470_v23 = vld [vmem:[#allocation2 + $0x8] sm:$0xff] }
0x252e   :  { %6193 = vtanh.f32 %v7470_v23 }
0x252f   :  { %6195 = vtanh.f32 %v7472_v36 }
0x2538   :  { %v6194_v24 = vpop.eup %6193 }
0x2539   :  { %v6196_v44 = vpop.eup %6195  ;;  %v4286_v25 = vmul.f32 %v6194_v24, %v4597_v13 }
0x253a   :  { %v4285_v28 = vmul.f32 %v6196_v44, %v4597_v13 }
0x253b   :  { %v4290_v63 = vsel %vm835_vm4, %v4286_v25, 0.0 }
0x253c   :  { %4291 = vadd.xlane.f32.xlu1 %v4290_v63  ;;  %v4287_v3 = vsel %vm835_vm4, %v4285_v28, 0.0 }
0x253d   :  { %4288 = vadd.xlane.f32.xlu0 %v4287_v3 }
0x2553   :  { %4361 = vrot.lane.b32.xlu0 %v4359_v37, %s6235_s7 }
0x25c9   :  { %v4292_v35 = vpop.xlane.xlu1 %4291 }
0x25ca   :  { %v4289_v51 = vpop.xlane.xlu0 %4288  ;;  %v4329_v37 = vrot.slane %v4292_v35, 4 }
0x25cb   :  { %v4293_v53 = vrot.slane %v4289_v51, 4 }
0x25cd   :  { %v4294_v11 = vmax.f32 %v4289_v51, %v4293_v53 }
0x25cf   :  { %v4295_v42 = vrot.slane %v4294_v11, 2 }
0x25d1   :  { %v4296_v59 = vmax.f32 %v4294_v11, %v4295_v42 }
0x25d3   :  { %v4297_v45 = vrot.slane %v4296_v59, 1 }
0x25d5   :  { %v4298_v34 = vmax.f32 %v4296_v59, %v4297_v45 }
0x25d7   :  { %v4299_v41 = vsub.f32 %v4289_v51, %v4298_v34 }
0x25d9   :  { %v4300_v55 = vmul.f32 1.442695, %v4299_v41 }
0x25db   :  { %6197 = vpow2.f32 %v4300_v55 }
0x25e5   :  { %v6198_v10 = vpop.eup %6197 }
0x25e6   :  { %v4302_v16 = vrot.slane %v6198_v10, 4 }
0x25e8   :  { %v4303_v15 = vadd.f32 %v6198_v10, %v4302_v16 }
0x25ea   :  { %v4304_v47 = vrot.slane %v4303_v15, 2 }
0x25ec   :  { %v4305_v46 = vadd.f32 %v4304_v47, %v4303_v15 }
0x25ee   :  { %v4306_v50 = vrot.slane %v4305_v46, 1 }
0x25f0   :  { %v4307_v13 = vadd.f32 %v4306_v50, %v4305_v46 }
0x25f2   :  { %6199 = vrcp.f32 %v4307_v13 }
0x25fc   :  { %v6200_v24 = vpop.eup %6199 }
0x25fd   :  { %v4309_v44 = vmul.f32 %v6200_v24, %v6198_v10 }
0x25ff   :  { %v4310_v25 = vmul.f32 %v4309_v44, %v7472_v36 }
0x2601   :  { %v4311_v28 = vsel %vm835_vm4, %v4310_v25, 0.0 }
0x2602   :  { %v4312_v63 = vrot.slane %v4311_v28, 4 }
0x2604   :  { %v4313_v3 = vadd.f32 %v4312_v63, %v4311_v28 }
0x2606   :  { %v4314_v56 = vrot.slane %v4313_v3, 2 }
0x2608   :  { %v4315_v31 = vadd.f32 %v4314_v56, %v4313_v3 }
0x260a   :  { %v4316_v5 = vrot.slane %v4315_v31, 1 }
0x260c   :  { %v4317_v29 = vadd.f32 %v4316_v5, %v4315_v31 }
0x260e   :  { %v4328_v8 = vsel %vm835_vm4, %v4317_v29, %v7466_v22 }
0x260f   :  { %4432 = vmatmul.mubr.f32.vlgmr.msra.gmra.mrb[46].mxu1 %v4328_v8 }
0x2610   :  { %6220 = shalt.err (!%p6217_p4)
}
0x2611   :  { %s6221_s0 = scalar_lea.hbm %s7583_s5, 256 }
0x2612   :  { %p6222_p5 = scmp.ne.s32.totalorder %s7583_s5, %s6221_s0  ;;  %p6225_p6 = scmp.lt.u32.totalorder %s6221_s0, %s7583_s5 }
0x2614   :  { %p6227_p7 = pnand %p6225_p6, %p6222_p5 }
0x2616   :  { %6230 = shalt.err (!%p6227_p7)
}
0x2617   :  { %s6242_s11 = smov 128   ;;  %s6243_s12 = smov 8   ;;  %v4330_v22 = vmax.f32 %v4292_v35, %v4329_v37  ;;  %v6244_v7 = vmov 1966171168   ;;  %v163_v9 = vld [vmem:[%s7581_s3 + $0x285] sm:$0x1]  ;;  %v4362_v32 = vpop.permute.xlu0 %4361 }
0x2618   :  { %4481 = dma.vmem_to_hbm [thread:$0]  %s4476_s28, 256, %s7583_s5, [#allocation4], %s6242_s11, %s6242_s11, %s6243_s12   ;;  %v4441_v57 = vunpack.c.l.s4 %v6244_v7  ;;  %vm4465_vm15 = vcmp.lt.s32.totalorder %v175_v2, 288 }
0x2619   :  { %v4331_v36 = vrot.slane %v4330_v22, 2 }
0x261a   :  { %v4442_v48 = vunpack.c.0.s8 %v4441_v57 }
0x261b   :  { %v4332_v19 = vmax.f32 %v4330_v22, %v4331_v36 }
0x261c   :  { %v4445_v61 = vsub.s32 %v4442_v48, %v6284_v4 }
0x261d   :  { %v4333_v39 = vrot.slane %v4332_v19, 1 }
0x261e   :  { %v4453_v11 = vrot.slane %v4362_v32, %v4445_v61 }
0x261f   :  { %v4334_v17 = vmax.f32 %v4332_v19, %v4333_v39 }
0x2621   :  { %v4335_v38 = vsub.f32 %v4292_v35, %v4334_v17 }
0x2623   :  { %v4336_v43 = vmul.f32 1.442695, %v4335_v38 }
0x2625   :  { %6201 = vpow2.f32 %v4336_v43 }
0x262f   :  { %v6202_v18 = vpop.eup %6201 }
0x2630   :  { %v4338_v26 = vrot.slane %v6202_v18, 4 }
0x2632   :  { %v4339_v52 = vadd.f32 %v6202_v18, %v4338_v26 }
0x2634   :  { %v4340_v54 = vrot.slane %v4339_v52, 2 }
0x2636   :  { %v4341_v58 = vadd.f32 %v4340_v54, %v4339_v52 }
0x2638   :  { %v4342_v20 = vrot.slane %v4341_v58, 1 }
0x263a   :  { %v4343_v33 = vadd.f32 %v4342_v20, %v4341_v58 }
0x263c   :  { %6203 = vrcp.f32 %v4343_v33 }
0x2646   :  { %v6204_v30 = vpop.eup %6203 }
0x2647   :  { %v4345_v27 = vmul.f32 %v6204_v30, %v6202_v18 }
0x2649   :  { %v4346_v12 = vmul.f32 %v4345_v27, %v7470_v23 }
0x264b   :  { %v4347_v40 = vsel %vm835_vm4, %v4346_v12, 0.0 }
0x264c   :  { %v4348_v0 = vrot.slane %v4347_v40, 4 }
0x264e   :  { %v4349_v1 = vadd.f32 %v4348_v0, %v4347_v40 }
0x2650   :  { %v4350_v6 = vrot.slane %v4349_v1, 2 }
0x2652   :  { %v4351_v49 = vadd.f32 %v4350_v6, %v4349_v1 }
0x2654   :  { %v4352_v21 = vrot.slane %v4351_v49, 1 }
0x2656   :  { %v4353_v60 = vadd.f32 %v4352_v21, %v4351_v49 }
0x2658   :  { %v4364_v51 = vsel %vm835_vm4, %v4353_v60, %v4362_v32 }
0x26e2   :  { %v4433_v14 = vpop.f32.mrb[46].mxu1 }
0x26e3   :  { %v4434_v23 = vadd.f32 %v4433_v14, %v163_v9  ;;  %v4435_v62 = vpop.f32.mrb[47].mxu1 }
0x26e5   :  { %v4439_v53 = vcombine.low %v4434_v23, %v4364_v51 }
0x26e7   :  { %v4446_v42 = vrot.slane %v4439_v53, %v4445_v61 }
0x26e9   :  { %v4454_v59 = vcombine.low %v4446_v42, %v4453_v11 }
0x26eb   :  { %v4461_v45 = vrot.slane %v4454_v59, %v4445_v61 }
0x26ed   :  { %4467 = vst.msk [vmem:[%s7582_s4] sm:$0x7] %vm4465_vm15, %v4461_v45 }
0x26ee   :  { %6231 = dma.done.wait [#allocation4], 256  }
0x26ef   :  { %6232 = vsyncadd [#allocation4], 4294967040 }
0x26f0   :  { %4487 = vsyncpa [#allocation4], 1 }

</bundles_post_ra>
